<compile_context>
chip_gen: v7x
topology: tpu7x:2x2x1
jax: 0.10.0
libtpu: 0.0.40
codegen_flags: <defaults>
</compile_context>

<pallas_src>
import functools
import math

import numpy as np
import jax
import jax.numpy as jnp
from jax.experimental import pallas as pl
from jax.experimental.pallas import tpu as pltpu

CHANNELS = 64          # hard-coded in get_model.__init__
ANG = 5                # angRes (BasicGroup hard-codes u=v=5)
SPA_DIM = CHANNELS * 2
HEADS = 8
SCALE = 2              # scale_factor

_F32 = jnp.float32
_BF16 = jnp.bfloat16


# ------------------------------------------------------------------ helpers --
def _lrelu(x, slope):
    return jnp.where(x >= 0, x, slope * x)


def _largest_divisor(n, cap):
    cap = max(1, min(n, cap))
    for d in range(cap, 0, -1):
        if n % d == 0:
            return d
    return 1


def _pick_tile_m(m, cap=512):
    """Largest row-tile <= cap that divides m and is a multiple of 8 (or m)."""
    if m <= cap:
        return m
    best = 1
    for d in range(8, cap + 1, 8):
        if m % d == 0:
            best = d
    return best if best > 1 else m


def _full_spec(a):
    nd = a.ndim
    return pl.BlockSpec(a.shape, lambda i: (0,) * nd)


def _pad_hw(x):
    """Zero-pad H and W of an [N, H, W, C] value by 1 on each side (in VMEM)."""
    n, h, w, c = x.shape
    zr = jnp.zeros((n, 1, w, c), x.dtype)
    x = jnp.concatenate([zr, x, zr], axis=1)
    zc = jnp.zeros((n, h + 2, 1, c), x.dtype)
    return jnp.concatenate([zc, x, zc], axis=2)


# -------------------------------------------------------- fused dense chain --
def _dense_chain_kernel(*refs, n_w, slopes):
    o_ref = refs[-1]
    h = refs[0][...]
    for i in range(n_w):
        w = refs[1 + i][...].astype(_BF16)
        h = jnp.dot(h.astype(_BF16), w, preferred_element_type=_F32)
        if slopes[i] is not None:
            h = _lrelu(h, slopes[i])
    o_ref[...] = h.astype(o_ref.dtype)


@functools.partial(jax.jit, static_argnames=('slopes', 'out_dtype'))
def pallas_dense_chain(x, weights, slopes, out_dtype=_F32):
    M, K = x.shape
    n_out = weights[-1].shape[1]
    TM = _pick_tile_m(M, 512)
    in_specs = [pl.BlockSpec((TM, K), lambda i: (i, 0))]
    for w in weights:
        in_specs.append(_full_spec(w))
    return pl.pallas_call(
        functools.partial(_dense_chain_kernel, n_w=len(weights),
                          slopes=tuple(slopes)),
        out_shape=jax.ShapeDtypeStruct((M, n_out), out_dtype),
        grid=(M // TM,),
        in_specs=in_specs,
        out_specs=pl.BlockSpec((TM, n_out), lambda i: (i, 0)),
        compiler_params=pltpu.CompilerParams(
            dimension_semantics=("parallel",)),
    )(x, *weights)


# -------------------------------------------- fused BasicTrans (EPI block) ---
def _basic_trans_kernel(tok_ref, mask_ref, lin_in_ref, ng_ref, nb_ref,
                        wqk_ref, wv_ref, wo_ref, fg_ref, fb_ref,
                        w1_ref, w2_ref, lout_ref, o_ref):
    TB, S, C = tok_ref.shape
    D = lin_in_ref.shape[1]
    heads = HEADS
    hd = D // heads
    scale = 1.0 / math.sqrt(hd)

    def ln(x, g, b):
        mu = jnp.mean(x, axis=-1, keepdims=True)
        xc = x - mu
        var = jnp.mean(xc * xc, axis=-1, keepdims=True)
        return xc * jax.lax.rsqrt(var + 1e-5) * g + b

    tok = tok_ref[...].reshape(TB * S, C).astype(_BF16)
    epi = jnp.dot(tok, lin_in_ref[...].astype(_BF16),
                  preferred_element_type=_F32)                    # [TB*S, D]
    epi_n = ln(epi, ng_ref[...], nb_ref[...])

    # fused Q/K projection (one wide matmul) and V projection; value path uses
    # the un-normalized token (matches torch reference).
    qk = jnp.dot(epi_n.astype(_BF16), wqk_ref[...].astype(_BF16),
                 preferred_element_type=_F32)                     # [TB*S, 2D]
    vv = jnp.dot(epi.astype(_BF16), wv_ref[...].astype(_BF16),
                 preferred_element_type=_F32)                     # [TB*S, D]

    q3 = qk[:, :D].reshape(TB, S, D).astype(_BF16)
    k3 = qk[:, D:].reshape(TB, S, D).astype(_BF16)
    v3 = vv.reshape(TB, S, D).astype(_BF16)
    mask = mask_ref[...][None, :, :]                              # [1, S, S]

    head_outs = []
    for hh in range(heads):
        lo, hi = hh * hd, (hh + 1) * hd
        qh = q3[:, :, lo:hi]
        kh = k3[:, :, lo:hi]
        vh = v3[:, :, lo:hi]
        s = jnp.einsum('bqd,bkd->bqk', qh, kh,
                       preferred_element_type=_F32) * scale + mask
        mx = jnp.max(s, axis=-1, keepdims=True)
        p = jnp.exp(s - mx)
        p = p / jnp.sum(p, axis=-1, keepdims=True)
        head_outs.append(jnp.einsum('bqk,bkd->bqd', p.astype(_BF16), vh,
                                    preferred_element_type=_F32))
    o = jnp.concatenate(head_outs, axis=-1).reshape(TB * S, D)

    attn = jnp.dot(o.astype(_BF16), wo_ref[...].astype(_BF16),
                   preferred_element_type=_F32)
    epi2 = attn + epi

    ffx = ln(epi2, fg_ref[...], fb_ref[...])
    hmid = jnp.maximum(jnp.dot(ffx.astype(_BF16), w1_ref[...].astype(_BF16),
                               preferred_element_type=_F32), 0.0)
    epi3 = jnp.dot(hmid.astype(_BF16), w2_ref[...].astype(_BF16),
                   preferred_element_type=_F32) + epi2
    out = jnp.dot(epi3.astype(_BF16), lout_ref[...].astype(_BF16),
                  preferred_element_type=_F32)
    o_ref[...] = out.reshape(TB, S, C).astype(o_ref.dtype)


@jax.jit
def pallas_basic_trans(tok, p, mask):
    """tok: [B, S, C] -> [B, S, C] (whole BasicTrans in one kernel)."""
    B, S, C = tok.shape
    TB = _largest_divisor(B, max(1, B // 4))        # >=4 grid steps when possible
    in_specs = [
        pl.BlockSpec((TB, S, C), lambda i: (i, 0, 0)),
        pl.BlockSpec((S, S), lambda i: (0, 0)),
        _full_spec(p['lin_in_w']), _full_spec(p['norm_g']), _full_spec(p['norm_b']),
        _full_spec(p['w_qk']), _full_spec(p['w_v']), _full_spec(p['w_o']),
        _full_spec(p['ff_norm_g']), _full_spec(p['ff_norm_b']),
        _full_spec(p['ff_w1']), _full_spec(p['ff_w2']), _full_spec(p['lin_out_w']),
    ]
    return pl.pallas_call(
        _basic_trans_kernel,
        out_shape=jax.ShapeDtypeStruct((B, S, C), _BF16),
        grid=(B // TB,),
        in_specs=in_specs,
        out_specs=pl.BlockSpec((TB, S, C), lambda i: (i, 0, 0)),
        compiler_params=pltpu.CompilerParams(
            dimension_semantics=("parallel",)),
    )(tok, mask, p['lin_in_w'], p['norm_g'], p['norm_b'],
      p['w_qk'], p['w_v'], p['w_o'],
      p['ff_norm_g'], p['ff_norm_b'], p['ff_w1'], p['ff_w2'], p['lin_out_w'])


# -------------------------------------------------- fused 3x3 conv chain -----
def _conv_chain_kernel(*refs, n_w, slopes, n_res, cins, couts, has_scratch):
    x_ref = refs[0]
    w_refs = refs[1:1 + n_w]
    res_refs = refs[1 + n_w:1 + n_w + n_res]
    o_ref = refs[1 + n_w + n_res]
    pad_ref = refs[1 + n_w + n_res + 1] if has_scratch else None

    nb, H, W = x_ref.shape[0], x_ref.shape[1], x_ref.shape[2]

    if has_scratch:
        pad_ref[...] = jnp.zeros_like(pad_ref)     # zero border once per step

    x = x_ref[...].astype(_F32)

    for li in range(n_w):
        cin, cout = cins[li], couts[li]
        if cin == 1:
            # tiny first layer: 9 VPU multiply-adds in f32
            xp = _pad_hw(x)                                   # [nb,H+2,W+2,1]
            wfull = w_refs[li][...].astype(_F32)              # [9, cout]
            acc = jnp.zeros((nb, H, W, cout), _F32)
            for t in range(9):
                dy, dx = t // 3, t % 3
                wt = wfull[t:t + 1, :].reshape(1, 1, 1, cout)
                acc = acc + xp[:, dy:dy + H, dx:dx + W, :] * wt
            y = acc
        else:
            # im2col: one K=9*cin matmul per layer
            pad_ref[:, 1:H + 1, 1:W + 1, :cin] = x.astype(_BF16)
            xp = pad_ref[...]
            taps = [xp[:, dy:dy + H, dx:dx + W, :cin]
                    for dy in range(3) for dx in range(3)]
            xs = jnp.concatenate(taps, axis=-1).reshape(nb * H * W, 9 * cin)
            y = jnp.dot(xs, w_refs[li][...].astype(_BF16),
                        preferred_element_type=_F32).reshape(nb, H, W, cout)
        if slopes[li] is not None:
            y = _lrelu(y, slopes[li])
        x = y

    for r in res_refs:
        x = x + r[...].astype(_F32)
    o_ref[...] = x.astype(o_ref.dtype)


@functools.partial(jax.jit,
                   static_argnames=('post_slopes', 'block_cap', 'out_dtype'))
def pallas_conv_chain(x, weights, post_slopes, residuals=(), block_cap=8,
                      out_dtype=_BF16):
    """Chained 3x3 (cross-correlation, pad=1) convs on [N,H,W,C] NHWC tensors."""
    N, H, W, Cin0 = x.shape
    cins = tuple(w.shape[0] // 9 for w in weights)
    couts = tuple(w.shape[1] for w in weights)
    cout_f = couts[-1]
    Nb = _largest_divisor(N, block_cap)

    in_specs = [pl.BlockSpec((Nb, H, W, Cin0), lambda i: (i, 0, 0, 0))]
    args = [x]
    for w in weights:
        in_specs.append(_full_spec(w))
        args.append(w)
    for r in residuals:
        in_specs.append(pl.BlockSpec((Nb, H, W, cout_f), lambda i: (i, 0, 0, 0)))
        args.append(r)

    mm_cins = [c for c in cins if c > 1]
    scratch = []
    if mm_cins:
        scratch.append(pltpu.VMEM((Nb, H + 2, W + 2, max(mm_cins)), _BF16))

    kernel = functools.partial(
        _conv_chain_kernel, n_w=len(weights), slopes=tuple(post_slopes),
        n_res=len(residuals), cins=cins, couts=couts,
        has_scratch=bool(mm_cins))
    return pl.pallas_call(
        kernel,
        out_shape=jax.ShapeDtypeStruct((N, H, W, cout_f), out_dtype),
        grid=(N // Nb,),
        in_specs=in_specs,
        out_specs=pl.BlockSpec((Nb, H, W, cout_f), lambda i: (i, 0, 0, 0)),
        scratch_shapes=scratch,
        compiler_params=pltpu.CompilerParams(
            dimension_semantics=("parallel",)),
    )(*args)


# ---------------------------------------------------------- fused DABlock ----
def _dablock_kernel(x_ref, code_ref, gk1_ref, gk2_ref, c11_ref,
                    caw1a_ref, caw1b_ref, cab1_ref, caw2_ref, cab2_ref,
                    o_ref, pad_ref):
    nb, H, W, C = x_ref.shape
    pad_ref[...] = jnp.zeros_like(pad_ref)          # zero border every step

    x = x_ref[...].astype(_F32)
    code = code_ref[...].reshape(nb, code_ref.shape[-1]).astype(_F32)  # [nb,16]

    # dynamic per-sample depthwise 3x3 kernel: one wide N=9*C matmul, hoisted
    k1 = _lrelu(jnp.dot(code.astype(_BF16), gk1_ref[...].astype(_BF16),
                        preferred_element_type=_F32), 0.1)             # [nb,64]
    wt_all = jnp.dot(k1.astype(_BF16), gk2_ref[...].astype(_BF16),
                     preferred_element_type=_F32)                      # [nb,9*C]

    pad_ref[:, 1:H + 1, 1:W + 1, :] = x
    xp = pad_ref[...]
    acc = jnp.zeros((nb, H, W, C), _F32)
    for t in range(9):
        dy, dx = t // 3, t % 3
        wt = wt_all[:, t * C:(t + 1) * C]                              # [nb, C]
        acc = acc + xp[:, dy:dy + H, dx:dx + W, :] * wt[:, None, None, :]
    fea = _lrelu(acc, 0.1)

    fea_da = jnp.dot(fea.reshape(nb * H * W, C).astype(_BF16),
                     c11_ref[...].astype(_BF16),
                     preferred_element_type=_F32).reshape(nb, H, W, C)

    # CA layer (f32 around the sigmoid)
    pooled = jnp.mean(fea_da.reshape(nb, H * W, C), axis=1)            # [nb, C]
    a1 = (jnp.dot(pooled.astype(_BF16), caw1a_ref[...].astype(_BF16),
                  preferred_element_type=_F32)
          + jnp.dot(code.astype(_BF16), caw1b_ref[...].astype(_BF16),
                    preferred_element_type=_F32)
          + cab1_ref[...])
    a1 = _lrelu(a1, 0.1)
    logits = jnp.dot(a1.astype(_BF16), caw2_ref[...].astype(_BF16),
                     preferred_element_type=_F32) + cab2_ref[...]
    att = jax.nn.sigmoid(logits)                                       # [nb, C]

    out = fea_da + fea_da * att[:, None, None, :] + x
    o_ref[...] = out.astype(o_ref.dtype)


@jax.jit
def pallas_dablock(x, code_flat, p):
    """x: [b*u*v, H, W, C], code_flat: [b*u*v, 16] -> [b*u*v, H, W, C]."""
    N, H, W, C = x.shape
    code3 = code_flat.reshape(N, 1, code_flat.shape[-1])
    Nb = _largest_divisor(N, 8)
    in_specs = [
        pl.BlockSpec((Nb, H, W, C), lambda i: (i, 0, 0, 0)),
        pl.BlockSpec((Nb, 1, code3.shape[-1]), lambda i: (i, 0, 0)),
        _full_spec(p['gk_w1']), _full_spec(p['gk_w2']), _full_spec(p['conv1x1_w']),
        _full_spec(p['ca_w1a']), _full_spec(p['ca_w1b']), _full_spec(p['ca_b1']),
        _full_spec(p['ca_w2']), _full_spec(p['ca_b2']),
    ]
    return pl.pallas_call(
        _dablock_kernel,
        out_shape=jax.ShapeDtypeStruct((N, H, W, C), _BF16),
        grid=(N // Nb,),
        in_specs=in_specs,
        out_specs=pl.BlockSpec((Nb, H, W, C), lambda i: (i, 0, 0, 0)),
        scratch_shapes=[pltpu.VMEM((Nb, H + 2, W + 2, C), _F32)],
        compiler_params=pltpu.CompilerParams(
            dimension_semantics=("parallel",)),
    )(x, code3, p['gk_w1'], p['gk_w2'], p['conv1x1_w'],
      p['ca_w1a'], p['ca_w1b'], p['ca_b1'], p['ca_w2'], p['ca_b2'])


# --------------------------------------------- final (upsampling) 3x3 conv ---
def _tail_conv_kernel(x_ref, w_ref, o_ref, *, slope):
    _, THp, Wp, C = x_ref.shape
    TH, W = THp - 2, Wp - 2
    x = _lrelu(x_ref[...], slope)                  # LeakyReLU fused in prologue
    taps = [x[:, dy:dy + TH, dx:dx + W, :] for dy in range(3) for dx in range(3)]
    xs = jnp.concatenate(taps, axis=-1).reshape(TH * W, 9 * C)
    y = jnp.dot(xs.astype(_BF16), w_ref[...].astype(_BF16),
                preferred_element_type=_F32)
    o_ref[...] = y.reshape(1, TH, W, o_ref.shape[-1])


@functools.partial(jax.jit, static_argnames=('slope',))
def pallas_tail_conv(bands, w, slope):
    """bands: [NB, TH+2, W+2, C] pre-padded row bands -> [NB, TH, W, Cout]."""
    NB, THp, Wp, C = bands.shape
    TH, W = THp - 2, Wp - 2
    cout = w.shape[1]
    return pl.pallas_call(
        functools.partial(_tail_conv_kernel, slope=slope),
        out_shape=jax.ShapeDtypeStruct((NB, TH, W, cout), _F32),
        grid=(NB,),
        in_specs=[pl.BlockSpec((1, THp, Wp, C), lambda i: (i, 0, 0, 0)),
                  _full_spec(w)],
        out_specs=pl.BlockSpec((1, TH, W, cout), lambda i: (i, 0, 0, 0)),
        compiler_params=pltpu.CompilerParams(
            dimension_semantics=("parallel",)),
    )(bands, w)


# ------------------------------------------------------------------- glue ----
_YCBCR_MAT = np.array([[65.481, 128.553, 24.966],
                       [-37.797, -74.203, 112.0],
                       [112.0, -93.786, -18.214]], dtype=np.float32)
_YCBCR_OFF = np.array([16.0, 128.0, 128.0], dtype=np.float32)


def lf_rgb2ycbcr(x):   # x: [b,3,u,v,h,w] in [0,1]
    m = jnp.asarray(_YCBCR_MAT)
    off = jnp.asarray(_YCBCR_OFF)[None, :, None, None, None, None]
    return (jnp.einsum('ij,bjuvhw->biuvhw', m, x) + off) / 255.0


def lf_ycbcr2rgb(x):
    m_inv = jnp.asarray(np.linalg.inv(_YCBCR_MAT))
    off = jnp.asarray(_YCBCR_OFF)[None, :, None, None, None, None]
    return jnp.einsum('ij,bjuvhw->biuvhw', m_inv, x * 255.0 - off)


def lf_interpolate(x, scale):
    # TODO(synk): torch bicubic uses cubic a=-0.75; jax.image.resize uses a=-0.5
    b, c, u, v, h, w = x.shape
    flat = x.reshape(b * c * u * v, h, w)
    out = jax.image.resize(flat, (b * c * u * v, h * scale, w * scale),
                           method='bicubic')
    return out.reshape(b, c, u, v, h * scale, w * scale)


@functools.lru_cache(maxsize=None)
def gen_mask(h, w, k_h, k_w):
    k_h_left, k_h_right = k_h // 2, k_h - k_h // 2
    k_w_left, k_w_right = k_w // 2, k_w - k_w // 2
    i = np.arange(h)[:, None, None, None]
    j = np.arange(w)[None, :, None, None]
    r = np.arange(h)[None, None, :, None]
    s = np.arange(w)[None, None, None, :]
    allowed = ((r >= i - k_h_left) & (r < i + k_h_right)
               & (s >= j - k_w_left) & (s < j + k_w_right))
    mask = np.where(allowed, 0.0, -np.inf).astype(np.float32)
    return jnp.asarray(mask.reshape(h * w, h * w))


# -------------------------------------------------------------- sub modules --
def alt_filter(buf, p, b, u, v, h, w, mask_uh, mask_vw, final_extra_res=()):
    """buf: [b*u*v, h, w, C] -> same shape (bf16)."""
    C = buf.shape[-1]
    shortcut = buf
    conv_ws = [p['conv_w1'], p['conv_w2'], p['conv_w3']]

    # pass 1: sequence = (u, h), batch = (b, v, w)
    x6 = buf.reshape(b, u, v, h, w, C)
    tok = x6.transpose(0, 2, 4, 1, 3, 5).reshape(b * v * w, u * h, C)
    tok = pallas_basic_trans(tok, p['epi'], mask_uh)
    x6 = tok.reshape(b, v, w, u, h, C).transpose(0, 3, 1, 4, 2, 5)
    buf = pallas_conv_chain(x6.reshape(b * u * v, h, w, C), conv_ws,
                            post_slopes=(0.2, 0.2, None), residuals=(shortcut,))

    # pass 2: sequence = (v, w), batch = (b, u, h)
    x6 = buf.reshape(b, u, v, h, w, C)
    tok = x6.transpose(0, 1, 3, 2, 4, 5).reshape(b * u * h, v * w, C)
    tok = pallas_basic_trans(tok, p['epi'], mask_vw)
    x6 = tok.reshape(b, u, h, v, w, C).transpose(0, 1, 3, 2, 4, 5)
    # group / global skip connections are folded into this last conv kernel
    buf = pallas_conv_chain(x6.reshape(b * u * v, h, w, C), conv_ws,
                            post_slopes=(0.2, 0.2, None),
                            residuals=(shortcut,) + tuple(final_extra_res))
    return buf


def basic_group(buf, code_flat, p, b, u, v, h, w, mask_uh, mask_vw,
                extra_res=()):
    tmp = buf
    buf = pallas_dablock(buf, code_flat, p['dab'])
    buf = alt_filter(buf, p['alt'], b, u, v, h, w, mask_uh, mask_vw,
                     final_extra_res=(tmp,) + tuple(extra_res))
    return buf


def gen_code_fn(sigmas, params):
    b, _, u, v = sigmas.shape
    ks = 21
    ax = jnp.arange(ks, dtype=_F32) - (ks // 2)
    xx_yy = -(ax[None, :] ** 2 + ax[:, None] ** 2)                # [21, 21]
    sig = sigmas.reshape(-1, 1, 1)
    kern = jnp.exp(xx_yy[None, :, :] / (2.0 * sig ** 2))
    kern = kern / jnp.sum(kern, axis=(1, 2), keepdims=True)
    feat = kern.reshape(b * u * v, ks * ks)                       # channel = h*21+w
    out = pallas_dense_chain(feat, params['gen_code_ws'],
                             slopes=(0.1, 0.1, 0.1, 0.1, None), out_dtype=_F32)
    return out.reshape(b, u, v, -1).transpose(0, 3, 1, 2)         # [b, 15, u, v]


def get_model_forward(lr, info, params):
    b, _, u, v, h, w = lr.shape
    C = CHANNELS
    lr_ycbcr = lf_rgb2ycbcr(lr)
    sr_ycbcr = lf_interpolate(lr_ycbcr, SCALE)

    # initial feature extraction, channels-last [b*u*v, h, w, C] (bf16)
    x0 = lr_ycbcr[:, 0].reshape(b * u * v, h, w)[..., None]
    buf = pallas_conv_chain(x0, [params['init0_w']], post_slopes=(None,))
    buf = pallas_conv_chain(buf,
                            [params['init_w1'], params['init_w2'], params['init_w3']],
                            post_slopes=(0.2, 0.2, 0.2), residuals=(buf,))

    # degradation code
    _, sigmas, noise_levels = info
    code = gen_code_fn(sigmas, params)                            # [b, 15, u, v]
    code = jnp.concatenate([code, noise_levels], axis=1)          # [b, 16, u, v]
    code_flat = code.transpose(0, 2, 3, 1).reshape(b * u * v, 16)

    mask_uh = gen_mask(u, h, ANG * 2, 11)
    mask_vw = gen_mask(v, w, ANG * 2, 11)

    tmp1 = buf
    for g in range(5):
        extra = (tmp1,) if g == 4 else ()
        buf = basic_group(buf, code_flat, params['groups'][g],
                          b, u, v, h, w, mask_uh, mask_vw, extra_res=extra)

    # upsampling: 'b c (u v) h w -> b c (u h) (v w)' in channels-last form
    H2, W2 = u * h, v * w
    nhwc = buf.reshape(b, u, v, h, w, C).transpose(0, 1, 3, 2, 4, 5) \
              .reshape(b, H2, W2, C)
    up = pallas_dense_chain(nhwc.reshape(b * H2 * W2, C), [params['up_w1']],
                            slopes=(None,), out_dtype=_BF16)
    # pixel shuffle (r=2)
    Hs, Ws = H2 * SCALE, W2 * SCALE
    up = up.reshape(b, H2, W2, C, SCALE, SCALE).transpose(0, 1, 4, 2, 5, 3) \
           .reshape(b, Hs, Ws, C)
    # final 3x3 conv: spatially tiled row bands (1-px halo), LeakyReLU(0.2)
    # fused into the kernel prologue, narrow (8-wide, real Cout=1) output.
    upp = jnp.pad(up, ((0, 0), (1, 1), (1, 1), (0, 0)))
    TH = _largest_divisor(Hs, max(8, Hs // 4))
    nbands = Hs // TH
    bands = jnp.stack([upp[:, i * TH:i * TH + TH + 2] for i in range(nbands)],
                      axis=1).reshape(b * nbands, TH + 2, Ws + 2, C)
    y = pallas_tail_conv(bands, params['up_w2'], 0.2)             # [b*nb, TH, Ws, 8]
    yimg = y.reshape(b, Hs, Ws, 8)[..., 0:1]                      # real Cout = 1
    hs, ws = h * SCALE, w * SCALE
    yimg = yimg.reshape(b, u, hs, v, ws, 1).transpose(0, 5, 1, 3, 2, 4)

    sr_ycbcr = sr_ycbcr.at[:, 0:1].add(yimg)
    return {'SR': lf_ycbcr2rgb(sr_ycbcr)}


# -------------------------------------------------------------- parameters --
class _Init:
    def __init__(self, seed):
        self._key = jax.random.PRNGKey(seed)

    def _next(self):
        self._key, sub = jax.random.split(self._key)
        return sub

    def w(self, shape, fan_in=None):
        if fan_in is None:
            fan_in = shape[0] if len(shape) == 2 else int(np.prod(shape[:-1]))
        bound = 1.0 / math.sqrt(fan_in)
        return jax.random.uniform(self._next(), shape, _F32, -bound, bound)


def make_params(seed=0):
    ini = _Init(seed)
    C, S = CHANNELS, SPA_DIM

    def dense(shape):                        # MXU weights stored in bf16
        return ini.w(shape).astype(_BF16)

    def conv(shape):                         # [9, Cin, Cout] -> [9*Cin, Cout]
        return ini.w(shape).reshape(shape[0] * shape[1], shape[2]).astype(_BF16)

    p = {
        'gen_code_ws': [dense((441, 64)), dense((64, 64)), dense((64, 64)),
                        dense((64, 64)), dense((64, 15))],
        'init0_w': conv((9, 1, C)),
        'init_w1': conv((9, C, C)),
        'init_w2': conv((9, C, C)),
        'init_w3': conv((9, C, C)),
        'up_w1': dense((C, C * SCALE * SCALE)),
        # final 3x3 conv: real Cout=1, zero-padded to 8 output lanes
        'up_w2': jnp.pad(conv((9, C, 1)), ((0, 0), (0, 7))),
    }
    groups = []
    for _ in range(5):
        dab = dict(gk_w1=dense((16, 64)),
                   gk_w2=dense((64, 9 * C)),     # columns ordered (tap, channel)
                   conv1x1_w=dense((C, C)),
                   ca_w1a=dense((C, 16)),
                   ca_w1b=dense((16, 16)),
                   ca_b1=ini.w((1, 16), fan_in=C + 16),
                   ca_w2=dense((16, C)),
                   ca_b2=ini.w((1, C), fan_in=16))
        epi = dict(lin_in_w=dense((C, S)),
                   norm_g=jnp.ones((1, S), _F32), norm_b=jnp.zeros((1, S), _F32),
                   w_qk=dense((S, 2 * S)),       # fused Q|K projection
                   w_v=dense((S, S)),
                   w_o=dense((S, S)),
                   ff_norm_g=jnp.ones((1, S), _F32),
                   ff_norm_b=jnp.zeros((1, S), _F32),
                   ff_w1=dense((S, 2 * S)), ff_w2=dense((2 * S, S)),
                   lin_out_w=dense((S, C)))
        alt = dict(epi=epi, conv_w1=conv((9, C, C)),
                   conv_w2=conv((9, C, C)), conv_w3=conv((9, C, C)))
        groups.append(dict(dab=dab, alt=alt))
    p['groups'] = groups
    return p


if __name__ == "__main__":
    key = jax.random.PRNGKey(0)
    k1, k2, k3 = jax.random.split(key, 3)
    b, u, v, h, w = 1, ANG, ANG, 8, 8
    lr = jax.random.uniform(k1, (b, 3, u, v, h, w), _F32)
    sigmas = jax.random.uniform(k2, (b, 1, u, v), _F32, 0.5, 2.0)
    noise_levels = jax.random.uniform(k3, (b, 1, u, v), _F32, 0.0, 0.1)
    info = (None, sigmas, noise_levels)

    params = make_params(0)
    out = get_model_forward(lr, info, params)['SR']
    out = jax.block_until_ready(out)
    assert out.shape == (b, 3, u, v, h * SCALE, w * SCALE), out.shape
    assert bool(jnp.all(jnp.isfinite(out)))
    print("KERNEL_OK")
</pallas_src>

<mosaic_0001>
module attributes {stable_mosaic.version = 11 : i64} {
  func.func @_conv_chain_kernel(%arg0: i32, %arg1: memref<5x8x8x1xf32, #tpu.memory_space<vmem>>, %arg2: memref<9x64xbf16, #tpu.memory_space<vmem>>, %arg3: memref<5x8x8x64xbf16, #tpu.memory_space<vmem>>) attributes {dimension_semantics = [#tpu.dimension_semantics<parallel>], iteration_bounds = array<i64: 5>, scalar_prefetch = 0 : i64, scratch_operands = 0 : i64, tpu.core_type = #tpu.core_type<tc>, window_params = [{transform_indices = @transform_0, window_bounds = array<i64: 5, 8, 8, 1>}, {pipeline_mode = #tpu.pipeline_mode<synchronous>, transform_indices = @transform_1, window_bounds = array<i64: 9, 64>}, {transform_indices = @transform_2, window_bounds = array<i64: 5, 8, 8, 64>}]} {
    %c0 = arith.constant 0 : index
    %c0_0 = arith.constant 0 : index
    %c0_1 = arith.constant 0 : index
    %c0_2 = arith.constant 0 : index
    %0 = vector.load %arg1[%c0, %c0_0, %c0_1, %c0_2] : memref<5x8x8x1xf32, #tpu.memory_space<vmem>>, vector<5x8x8x1xf32>
    %cst = arith.constant 0.000000e+00 : f32
    %1 = vector.broadcast %cst : f32 to vector<5x1x8x1xf32>
    %2 = tpu.concatenate %1, %0, %1 in 1 : vector<5x1x8x1xf32>, vector<5x8x8x1xf32>, vector<5x1x8x1xf32> -> vector<5x10x8x1xf32>
    %cst_3 = arith.constant 0.000000e+00 : f32
    %3 = vector.broadcast %cst_3 : f32 to vector<5x10x1x1xf32>
    %4 = tpu.concatenate %3, %2, %3 in 2 : vector<5x10x1x1xf32>, vector<5x10x8x1xf32>, vector<5x10x1x1xf32> -> vector<5x10x10x1xf32>
    %c0_4 = arith.constant 0 : index
    %c0_5 = arith.constant 0 : index
    %5 = vector.load %arg2[%c0_4, %c0_5] : memref<9x64xbf16, #tpu.memory_space<vmem>>, vector<9x64xbf16>
    %6 = arith.extf %5 : vector<9x64xbf16> to vector<9x64xf32>
    %cst_6 = arith.constant 0.000000e+00 : f32
    %7 = vector.broadcast %cst_6 : f32 to vector<5x8x8x64xf32>
    %8 = vector.extract_strided_slice %6 {offsets = [0, 0], sizes = [1, 64], strides = [1, 1]} : vector<9x64xf32> to vector<1x64xf32>
    %9 = vector.shape_cast %8 : vector<1x64xf32> to vector<1x1x1x64xf32>
    %10 = vector.extract_strided_slice %4 {offsets = [0, 0, 0, 0], sizes = [5, 8, 8, 1], strides = [1, 1, 1, 1]} : vector<5x10x10x1xf32> to vector<5x8x8x1xf32>
    %11 = vector.broadcast %10 : vector<5x8x8x1xf32> to vector<5x8x8x64xf32>
    %12 = vector.broadcast %9 : vector<1x1x1x64xf32> to vector<5x8x8x64xf32>
    %13 = arith.mulf %11, %12 : vector<5x8x8x64xf32>
    %14 = arith.addf %7, %13 : vector<5x8x8x64xf32>
    %15 = vector.extract_strided_slice %6 {offsets = [1, 0], sizes = [1, 64], strides = [1, 1]} : vector<9x64xf32> to vector<1x64xf32>
    %16 = vector.shape_cast %15 : vector<1x64xf32> to vector<1x1x1x64xf32>
    %17 = vector.extract_strided_slice %4 {offsets = [0, 0, 1, 0], sizes = [5, 8, 8, 1], strides = [1, 1, 1, 1]} : vector<5x10x10x1xf32> to vector<5x8x8x1xf32>
    %18 = vector.broadcast %17 : vector<5x8x8x1xf32> to vector<5x8x8x64xf32>
    %19 = vector.broadcast %16 : vector<1x1x1x64xf32> to vector<5x8x8x64xf32>
    %20 = arith.mulf %18, %19 : vector<5x8x8x64xf32>
    %21 = arith.addf %14, %20 : vector<5x8x8x64xf32>
    %22 = vector.extract_strided_slice %6 {offsets = [2, 0], sizes = [1, 64], strides = [1, 1]} : vector<9x64xf32> to vector<1x64xf32>
    %23 = vector.shape_cast %22 : vector<1x64xf32> to vector<1x1x1x64xf32>
    %24 = vector.extract_strided_slice %4 {offsets = [0, 0, 2, 0], sizes = [5, 8, 8, 1], strides = [1, 1, 1, 1]} : vector<5x10x10x1xf32> to vector<5x8x8x1xf32>
    %25 = vector.broadcast %24 : vector<5x8x8x1xf32> to vector<5x8x8x64xf32>
    %26 = vector.broadcast %23 : vector<1x1x1x64xf32> to vector<5x8x8x64xf32>
    %27 = arith.mulf %25, %26 : vector<5x8x8x64xf32>
    %28 = arith.addf %21, %27 : vector<5x8x8x64xf32>
    %29 = vector.extract_strided_slice %6 {offsets = [3, 0], sizes = [1, 64], strides = [1, 1]} : vector<9x64xf32> to vector<1x64xf32>
    %30 = vector.shape_cast %29 : vector<1x64xf32> to vector<1x1x1x64xf32>
    %31 = vector.extract_strided_slice %4 {offsets = [0, 1, 0, 0], sizes = [5, 8, 8, 1], strides = [1, 1, 1, 1]} : vector<5x10x10x1xf32> to vector<5x8x8x1xf32>
    %32 = vector.broadcast %31 : vector<5x8x8x1xf32> to vector<5x8x8x64xf32>
    %33 = vector.broadcast %30 : vector<1x1x1x64xf32> to vector<5x8x8x64xf32>
    %34 = arith.mulf %32, %33 : vector<5x8x8x64xf32>
    %35 = arith.addf %28, %34 : vector<5x8x8x64xf32>
    %36 = vector.extract_strided_slice %6 {offsets = [4, 0], sizes = [1, 64], strides = [1, 1]} : vector<9x64xf32> to vector<1x64xf32>
    %37 = vector.shape_cast %36 : vector<1x64xf32> to vector<1x1x1x64xf32>
    %38 = vector.extract_strided_slice %4 {offsets = [0, 1, 1, 0], sizes = [5, 8, 8, 1], strides = [1, 1, 1, 1]} : vector<5x10x10x1xf32> to vector<5x8x8x1xf32>
    %39 = vector.broadcast %38 : vector<5x8x8x1xf32> to vector<5x8x8x64xf32>
    %40 = vector.broadcast %37 : vector<1x1x1x64xf32> to vector<5x8x8x64xf32>
    %41 = arith.mulf %39, %40 : vector<5x8x8x64xf32>
    %42 = arith.addf %35, %41 : vector<5x8x8x64xf32>
    %43 = vector.extract_strided_slice %6 {offsets = [5, 0], sizes = [1, 64], strides = [1, 1]} : vector<9x64xf32> to vector<1x64xf32>
    %44 = vector.shape_cast %43 : vector<1x64xf32> to vector<1x1x1x64xf32>
    %45 = vector.extract_strided_slice %4 {offsets = [0, 1, 2, 0], sizes = [5, 8, 8, 1], strides = [1, 1, 1, 1]} : vector<5x10x10x1xf32> to vector<5x8x8x1xf32>
    %46 = vector.broadcast %45 : vector<5x8x8x1xf32> to vector<5x8x8x64xf32>
    %47 = vector.broadcast %44 : vector<1x1x1x64xf32> to vector<5x8x8x64xf32>
    %48 = arith.mulf %46, %47 : vector<5x8x8x64xf32>
    %49 = arith.addf %42, %48 : vector<5x8x8x64xf32>
    %50 = vector.extract_strided_slice %6 {offsets = [6, 0], sizes = [1, 64], strides = [1, 1]} : vector<9x64xf32> to vector<1x64xf32>
    %51 = vector.shape_cast %50 : vector<1x64xf32> to vector<1x1x1x64xf32>
    %52 = vector.extract_strided_slice %4 {offsets = [0, 2, 0, 0], sizes = [5, 8, 8, 1], strides = [1, 1, 1, 1]} : vector<5x10x10x1xf32> to vector<5x8x8x1xf32>
    %53 = vector.broadcast %52 : vector<5x8x8x1xf32> to vector<5x8x8x64xf32>
    %54 = vector.broadcast %51 : vector<1x1x1x64xf32> to vector<5x8x8x64xf32>
    %55 = arith.mulf %53, %54 : vector<5x8x8x64xf32>
    %56 = arith.addf %49, %55 : vector<5x8x8x64xf32>
    %57 = vector.extract_strided_slice %6 {offsets = [7, 0], sizes = [1, 64], strides = [1, 1]} : vector<9x64xf32> to vector<1x64xf32>
    %58 = vector.shape_cast %57 : vector<1x64xf32> to vector<1x1x1x64xf32>
    %59 = vector.extract_strided_slice %4 {offsets = [0, 2, 1, 0], sizes = [5, 8, 8, 1], strides = [1, 1, 1, 1]} : vector<5x10x10x1xf32> to vector<5x8x8x1xf32>
    %60 = vector.broadcast %59 : vector<5x8x8x1xf32> to vector<5x8x8x64xf32>
    %61 = vector.broadcast %58 : vector<1x1x1x64xf32> to vector<5x8x8x64xf32>
    %62 = arith.mulf %60, %61 : vector<5x8x8x64xf32>
    %63 = arith.addf %56, %62 : vector<5x8x8x64xf32>
    %64 = vector.extract_strided_slice %6 {offsets = [8, 0], sizes = [1, 64], strides = [1, 1]} : vector<9x64xf32> to vector<1x64xf32>
    %65 = vector.shape_cast %64 : vector<1x64xf32> to vector<1x1x1x64xf32>
    %66 = vector.extract_strided_slice %4 {offsets = [0, 2, 2, 0], sizes = [5, 8, 8, 1], strides = [1, 1, 1, 1]} : vector<5x10x10x1xf32> to vector<5x8x8x1xf32>
    %67 = vector.broadcast %66 : vector<5x8x8x1xf32> to vector<5x8x8x64xf32>
    %68 = vector.broadcast %65 : vector<1x1x1x64xf32> to vector<5x8x8x64xf32>
    %69 = arith.mulf %67, %68 : vector<5x8x8x64xf32>
    %70 = arith.addf %63, %69 : vector<5x8x8x64xf32>
    %71 = arith.truncf %70 : vector<5x8x8x64xf32> to vector<5x8x8x64xbf16>
    %c0_7 = arith.constant 0 : index
    %c0_8 = arith.constant 0 : index
    %c0_9 = arith.constant 0 : index
    %c0_10 = arith.constant 0 : index
    %72 = vector.load %arg3[%c0_7, %c0_8, %c0_9, %c0_10] : memref<5x8x8x64xbf16, #tpu.memory_space<vmem>>, vector<5x8x8x64xbf16>
    tpu.vector_store %arg3[%c0_7, %c0_8, %c0_9, %c0_10], %71 {strides = array<i32>} : memref<5x8x8x64xbf16, #tpu.memory_space<vmem>>, vector<5x8x8x64xbf16>,
    return
  }
  func.func @transform_0(%arg0: i32) -> (i32, i32, i32, i32) {
    %c0_i32 = arith.constant 0 : i32
    %c0_i32_0 = arith.constant 0 : i32
    %c0_i32_1 = arith.constant 0 : i32
    %c0_i32_2 = arith.constant 0 : i32
    return %arg0, %c0_i32, %c0_i32_0, %c0_i32_1 : i32, i32, i32, i32
  }
  func.func @transform_1(%arg0: i32) -> (i32, i32) {
    %c0_i32 = arith.constant 0 : i32
    %c0_i32_0 = arith.constant 0 : i32
    %c0_i32_1 = arith.constant 0 : i32
    return %c0_i32, %c0_i32_0 : i32, i32
  }
  func.func @transform_2(%arg0: i32) -> (i32, i32, i32, i32) {
    %c0_i32 = arith.constant 0 : i32
    %c0_i32_0 = arith.constant 0 : i32
    %c0_i32_1 = arith.constant 0 : i32
    %c0_i32_2 = arith.constant 0 : i32
    return %arg0, %c0_i32, %c0_i32_0, %c0_i32_1 : i32, i32, i32, i32
  }
}

</mosaic_0001>

<bundles_post_ra>
// kernel: pallas_conv_chain.1
= control target key start
LH: loop header
LB: loop body
LE: loop exit
PB: predicated region body
PF: predicated region fallthrough
CT: control target
= control target key end

     0   :  { %7 = vsyncpa [#allocation3], 0  ;;  %s6203_s0 = inlined_call_operand.vmem [shape: f32[25,8,8,1], index: 0, kind: input, shape index: {}]   ;;  %s6204_s1 = inlined_call_operand.vmem [shape: bf16[9,64], index: 1, kind: input, shape index: {}]   ;;  %s6205_s2 = inlined_call_operand.hbm [shape: bf16[25,8,8,64], index: 2, kind: output, shape index: {}]  }
   0x1   :  { %9 = vsyncpa [#allocation3 + $0x1], 0  ;;  %s3405_s9 = smov 0   ;;  %s3407_s10 = smov 0  }
   0x2   :  { %s3409_s11 = smov 0   ;;  %s3411_s12 = smov 0  }
   0x3 LB: > { %s3426_s13 = sadd.s32 4294967295, %s3383_s12   ;;  %s3256_s14 = sadd.s32 4294967294, %s3383_s12   ;;  %s3383_s12 = sphi %s3411_s12, %s6858_s12   ;;  %s3379_s11 = sphi %s3409_s11, %s6857_s11   ;;  %s3375_s10 = sphi %s3407_s10, %s6856_s10   ;;  %s3371_s9 = sphi %s3405_s9, %s6855_s9  }
   0x4   : > { %s3430_s15 = sadd.s32 1, %s3383_s12   ;;  %s69_s16 = sadd.s32 1, %s3379_s11 }
   0x5   : > { %s66_s17 = ssub.s32 %s3383_s12, %s3430_s15  ;;  %p79_p0 = scmp.ne.s32.totalorder %s3379_s11, %s3375_s10 }
   0x6   : > { %p67_p1 = scmp.eq.s32.totalorder %s66_s17, 0  ;;  %p80_p2 = scmp.eq.s32.totalorder %s3426_s13, 4 }
   0x7   : > { %p85_p3 = scmp.ne.s32.totalorder %s3375_s10, %s3371_s9  ;;  %p86_p4 = scmp.eq.s32.totalorder %s3256_s14, 4 }
   0x8   : > { %s3441_s18 = scalar_select %p67_p1, %s3379_s11, %s69_s16  }
   0x9   : > { %p3443_p5 = por %p80_p2, %p79_p0  ;;  %p3447_p6 = por %p86_p4, %p85_p3 }
   0xa   : > { %p3259_p7 = scmp.ge.s32.totalorder %s3383_s12, 1  ;;  %p117_p8 = scmp.lt.s32.totalorder %s3383_s12, 6 }
   0xc   : > { %p118_p9 = pnand %p3259_p7, %p117_p8 }
   0xe   : > { %121 = sbr.rel (%p118_p9) target bundleno = 611 (0x263), region = 28 }
  0x15   : > { %vm311_vm0 = vcmask 1040384   ;;  %s140_s21 = smul.u32 5, %s3426_s13  ;;  %v3385_v0 = vmov 0   ;;  %v3386_v1 = vmov 0.0   ;;  %vm982_vm1 = vcmask 1046528   ;;  %s137_s30 = sand.u32 1, %s3375_s10  }
  0x16   : > { %3314 = vset.pattern.permute.xlu0 %v3385_v0  ;;  %v229_v2 = vrot.slane %v3386_v1, 7  ;;  %3320 = vset.pattern.permute.xlu1 %v3385_v0  ;;  %vm1311_vm2 = vcmask 1045504   ;;  %vm3138_vm3 = vcmask 519168   ;;  %s3270_s3 = smul.u32 160, %s137_s30  ;;  %s3387_s17 = smov [#allocation2]  }
  0x17   : > { %p141_p10 = scmp.lt.s32.totalorder %s140_s21, 24  ;;  %s3269_s5 = smul.u32 2560, %s3426_s13 }
  0x18   : > { %v312_v3 = vsel %vm311_vm0, 0.0, %v229_v2  ;;  %v353_v4 = vsel %vm311_vm0, %v229_v2, 0.0  ;;  %s4845_s4 = scalar_lea.vmem [#allocation2], %s3270_s3  ;;  %s6162_s13 = scalar_lea.sflag [#allocation3], %s137_s30 }
  0x19   : > { %v3315_v5 = vpack.i.bf16 %v353_v4, %v312_v3  ;;  %s6860_s21 = smov (!%p141_p10, %s140_s21), 24  ;;  %s3194_s6 = sshll.u32 %s4845_s4, 4  ;;  %s6156_s6 = int_to_ptr.vmem [resolvable:$true] %s3194_s6 }
  0x1a   : > { %s3266_s22 = sshll.u32 %s6860_s21, 6  ;;  %s6152_s14 = scalar_lea.hbm %s6205_s2, %s3269_s5 }
  0x1b   : > { %3316 = vperm.xlu0 %3314, %v3315_v5   ;;  %s3459_s25 = scalar_lea.vmem %s6203_s0, %s3266_s22  ;;  %s3321_s16 = scalar_lea.vmem %s6156_s6, 2560 }
  0x1c   : > { %v3462_v6 = vld [vmem:[%s3459_s25 + $0x8] sm:$0xff]  ;;  %v3465_v7 = vld [vmem:[%s3459_s25] sm:$0xff]  ;;  %v3468_v8 = vld [vmem:[%s3459_s25 + $0x10] sm:$0xff]  ;;  %p3322_p11 = scmp.ne.s32.totalorder %s6156_s6, %s3321_s16  ;;  %s3325_s21 = sshll.u32 %s3387_s17, 4  ;;  %s3326_s21 = int_to_ptr.vmem [resolvable:$false] %s3325_s21 }
  0x1d   : > { %v231_v9 = vrot.slane %v3462_v6, 7  ;;  %v230_v10 = vrot.slane %v3465_v7, 7  ;;  %v232_v11 = vrot.slane %v3468_v8, 7  ;;  %v3474_v12 = vld [vmem:[%s3459_s25 + $0x18] sm:$0xff]  ;;  %v3477_v13 = vld [vmem:[%s3459_s25 + $0x20] sm:$0xff]  ;;  %v3481_v15 = vld [vmem:[%s3459_s25 + $0x28] sm:$0xff]  ;;  %p3328_p0 = scmp.lt.s32.totalorder %s6156_s6, %s3326_s21 }
  0x1e   : > { %v233_v14 = vrot.slane %v3474_v12, 7  ;;  %v3484_v16 = vld [vmem:[%s3459_s25 + $0x30] sm:$0xff]  ;;  %v3493_v19 = vld [vmem:[%s3459_s25 + $0x40] sm:$0xff]  ;;  %v3496_v20 = vld [vmem:[%s3459_s25 + $0x48] sm:$0xff]  ;;  %v234_v22 = vrot.slane %v3477_v13, 7  ;;  %v235_v27 = vrot.slane %v3481_v15, 7  ;;  %p3323_p12 = pnand %p3322_p11, %p3443_p5 }
  0x1f   : > { %v314_v17 = vsel %vm311_vm0, 0.0, %v231_v9  ;;  %v313_v18 = vsel %vm311_vm0, 0.0, %v230_v10  ;;  %v3499_v21 = vld [vmem:[%s3459_s25 + $0x50] sm:$0xff]  ;;  %v3503_v23 = vld [vmem:[%s3459_s25 + $0x58] sm:$0xff]  ;;  %v3506_v24 = vld [vmem:[%s3459_s25 + $0x60] sm:$0xff]  ;;  %v315_v25 = vsel %vm311_vm0, 0.0, %v232_v11 }
  0x20   : > { %410 = vperm.xlu1 %3320, %v314_v17   ;;  %405 = vperm.xlu0 %3314, %v313_v18   ;;  %v316_v26 = vsel %vm311_vm0, 0.0, %v233_v14  ;;  %v236_v28 = vrot.slane %v3484_v16, 7  ;;  %v3517_v29 = vld [vmem:[%s3459_s25 + $0x68] sm:$0xff]  ;;  %v3520_v30 = vld [vmem:[%s3459_s25 + $0x70] sm:$0xff]  ;;  %v238_v31 = vrot.slane %v3493_v19, 7  ;;  %v239_v32 = vrot.slane %v3496_v20, 7  ;;  %p3324_p13 = pneg %p3323_p12 }
  0x21   : > { %v240_v33 = vrot.slane %v3499_v21, 7  ;;  %v241_v34 = vrot.slane %v3503_v23, 7  ;;  %v242_v35 = vrot.slane %v3506_v24, 7  ;;  %v6207_v36 = vrot.slane %v3517_v29, 7  ;;  %v3530_v38 = vld [vmem:[%s3459_s25 + $0x80] sm:$0xff]  ;;  %v3542_v42 = vld [vmem:[%s3459_s25 + $0x88] sm:$0xff] }
  0x22   : > { %v6206_v37 = vrot.slane %v3520_v30, 7  ;;  %v317_v39 = vsel %vm311_vm0, 0.0, %v234_v22  ;;  %v318_v40 = vsel %vm311_vm0, 0.0, %v235_v27  ;;  %v319_v41 = vsel %vm311_vm0, 0.0, %v236_v28  ;;  %v3545_v43 = vld [vmem:[%s3459_s25 + $0x90] sm:$0xff]  ;;  %v3548_v44 = vld [vmem:[%s3459_s25 + $0x98] sm:$0xff] }
  0x23   : > { %v321_v45 = vsel %vm311_vm0, 0.0, %v238_v31  ;;  %v322_v46 = vsel %vm311_vm0, 0.0, %v239_v32  ;;  %v323_v47 = vsel %vm311_vm0, 0.0, %v240_v33  ;;  %v3560_v48 = vld [vmem:[%s3459_s25 + $0xa0] sm:$0xff]  ;;  %v3563_v49 = vld [vmem:[%s3459_s25 + $0xa8] sm:$0xff]  ;;  %v3566_v50 = vld [vmem:[%s3459_s25 + $0xb0] sm:$0xff] }
  0x24   : > { %415 = vperm.xlu1 %3320, %v315_v25   ;;  %420 = vperm.xlu0 %3314, %v316_v26   ;;  %v3571_v51 = vsel %vm311_vm0, 0.0, %v241_v34  ;;  %v3576_v52 = vsel %vm311_vm0, 0.0, %v242_v35  ;;  %v3580_v54 = vld [vmem:[%s3459_s25 + $0xc0] sm:$0xff]  ;;  %v3583_v55 = vld [vmem:[%s3459_s25 + $0xc8] sm:$0xff]  ;;  %v3586_v56 = vld [vmem:[%s3459_s25 + $0xd0] sm:$0xff]  ;;  %v3591_v57 = vsel %vm311_vm0, 0.0, %v6207_v36 }
  0x25   : > { %v3596_v58 = vsel %vm311_vm0, 0.0, %v6206_v37  ;;  %v3600_v60 = vld [vmem:[%s3459_s25 + $0xd8] sm:$0xff]  ;;  %v3603_v61 = vld [vmem:[%s3459_s25 + $0xe0] sm:$0xff]  ;;  %v3606_v62 = vld [vmem:[%s3459_s25 + $0xe8] sm:$0xff]  ;;  %v3675_v6 = vsel %vm311_vm0, %v233_v14, 0.0  ;;  %v3680_v8 = vsel %vm311_vm0, %v234_v22, 0.0 }
  0x26   : > { %v3612_v2 = vld [vmem:[%s3459_s25 + $0xf0] sm:$0xff]  ;;  %v3615_v3 = vld [vmem:[%s3459_s25 + $0x100] sm:$0xff]  ;;  %v3618_v4 = vld [vmem:[%s3459_s25 + $0x108] sm:$0xff]  ;;  %v6208_v18 = vrot.slane %v3606_v62, 7  ;;  %v3700_v12 = vsel %vm311_vm0, %v239_v32, 0.0  ;;  %v3705_v13 = vsel %vm311_vm0, %v240_v33, 0.0 }
  0x27   : > { %v3625_v26 = vld [vmem:[%s3459_s25 + $0x110] sm:$0xff]  ;;  %v3632_v63 = vld [vmem:[%s3459_s25 + $0x118] sm:$0xff]  ;;  %v3635_v59 = vld [vmem:[%s3459_s25 + $0x128] sm:$0xff]  ;;  %v6209_v25 = vrot.slane %v3612_v2, 7  ;;  %v6210_v17 = vrot.slane %v3615_v3, 7  ;;  %v3710_v14 = vsel %vm311_vm0, %v241_v34, 0.0 }
  0x28   : > { %425 = vperm.xlu1 %3320, %v317_v39   ;;  %430 = vperm.xlu0 %3314, %v318_v40   ;;  %v184_v39 = vld [vmem:[%s3459_s25 + $0x120] sm:$0xff]  ;;  %v3638_v5 = vld [vmem:[%s3459_s25 + $0x130] sm:$0xff]  ;;  %v6211_v40 = vrot.slane %v3618_v4, 7  ;;  %v6212_v1 = vrot.slane %v3625_v26, 7  ;;  %v267_v0 = vrot.slane %v3635_v59, 7  ;;  %v3715_v15 = vsel %vm311_vm0, %v242_v35, 0.0 }
  0x29   : > { %v266_v53 = vrot.slane %v184_v39, 7  ;;  %v268_v37 = vrot.slane %v3638_v5, 7  ;;  %v3661_v39 = vsel %vm311_vm0, %v232_v11, 0.0  ;;  %v3695_v11 = vsel %vm311_vm0, %v238_v31, 0.0  ;;  %v171_v36 = vld [vmem:[%s3459_s25 + $0xb8] sm:$0xff]  ;;  %s3327_s22 = scalar_lea.vmem %s3326_s21, 5120 }
  0x2a   : > { %v3667_v5 = vsel %vm311_vm0, 0.0, %v267_v0  ;;  %v6336_v16 = vrot.slane %v3517_v29, 7  ;;  %v6337_v20 = vrot.slane %v3520_v30, 7  ;;  %v6338_v22 = vrot.slane %v3530_v38, 7  ;;  %p3329_p1 = scmp.lt.s32.totalorder %s3327_s22, %s3321_s16 }
  0x2b   : > { %v3664_v59 = vsel %vm311_vm0, 0.0, %v266_v53  ;;  %v3670_v7 = vsel %vm311_vm0, 0.0, %v268_v37  ;;  %v6339_v24 = vrot.slane %v3542_v42, 7  ;;  %v6341_v30 = vrot.slane %v3548_v44, 7 }
  0x2c   : > { %435 = vperm.xlu1 %3320, %v319_v41   ;;  %440 = vperm.xlu0 %3314, %v321_v45   ;;  %v3651_v41 = vsel %vm311_vm0, %v230_v10, 0.0  ;;  %v3656_v45 = vsel %vm311_vm0, %v231_v9, 0.0  ;;  %v3685_v9 = vsel %vm311_vm0, %v235_v27, 0.0  ;;  %v3690_v10 = vsel %vm311_vm0, %v236_v28, 0.0  ;;  %p3330_p2 = por %p3329_p1, %p3328_p0 }
  0x2d   : > { %v3720_v19 = vsel %vm311_vm0, %v6336_v16, 0.0  ;;  %v3725_v21 = vsel %vm311_vm0, %v6337_v20, 0.0  ;;  %v3730_v23 = vsel %vm311_vm0, %v6338_v22, 0.0  ;;  %v3735_v27 = vsel %vm311_vm0, %v6339_v24, 0.0 }
  0x2e   : > { %v6340_v28 = vrot.slane %v3545_v43, 7  ;;  %v3745_v31 = vsel %vm311_vm0, %v6341_v30, 0.0  ;;  %v6342_v32 = vrot.slane %v3560_v48, 7  ;;  %v6343_v34 = vrot.slane %v3563_v49, 7  ;;  %p3331_p3 = pnand %p3330_p2, %p3324_p13 }
  0x2f   : > { %v6345_v16 = vrot.slane %v3580_v54, 7  ;;  %v6346_v22 = vrot.slane %v3583_v55, 7 }
  0x30   : > { %445 = vperm.xlu1 %3320, %v322_v46   ;;  %450 = vperm.xlu0 %3314, %v323_v47   ;;  %v3740_v29 = vsel %vm311_vm0, %v6340_v28, 0.0  ;;  %v3750_v33 = vsel %vm311_vm0, %v6342_v32, 0.0  ;;  %v3755_v35 = vsel %vm311_vm0, %v6343_v34, 0.0  ;;  %v6344_v46 = vrot.slane %v3566_v50, 7 }
  0x31   : > { %v3767_v20 = vsel %vm311_vm0, %v6345_v16, 0.0  ;;  %v3772_v24 = vsel %vm311_vm0, %v6346_v22, 0.0  ;;  %v6348_v28 = vrot.slane %v3600_v60, 7  ;;  %v6350_v32 = vrot.slane %v3603_v61, 7 }
  0x32   : > { %v3762_v47 = vsel %vm311_vm0, %v6344_v46, 0.0  ;;  %v3792_v46 = vsel %vm311_vm0, %v6208_v18, 0.0  ;;  %v3797_v16 = vsel %vm311_vm0, %v6209_v25, 0.0  ;;  %v3802_v22 = vsel %vm311_vm0, %v6210_v17, 0.0 }
  0x33   : > { %v3782_v30 = vsel %vm311_vm0, %v6348_v28, 0.0  ;;  %v3787_v34 = vsel %vm311_vm0, %v6350_v32, 0.0  ;;  %6352 = vst [vmem:[#allocation7_spill] sm:$0xff] %v3792_v46  ;;  %6353 = vst [vmem:[#allocation8_spill] sm:$0xff] %v3797_v16  ;;  %v163_v28 = vld [vmem:[%s3459_s25 + $0x78] sm:$0xff]  ;;  %v3810_v32 = vsel %vm311_vm0, %v6211_v40, 0.0 }
  0x34   : > { %455 = vperm.xlu1 %3320, %v3571_v51   ;;  %460 = vperm.xlu0 %3314, %v3576_v52   ;;  %v6347_v51 = vrot.slane %v3586_v56, 7  ;;  %6349 = vst [vmem:[#allocation5_spill] sm:$0xff] %v3782_v30  ;;  %6351 = vst [vmem:[#allocation6_spill] sm:$0xff] %v3787_v34  ;;  %v3815_v18 = vsel %vm311_vm0, %v6212_v1, 0.0  ;;  %v6357_v25 = vrot.slane %v3632_v63, 7  ;;  %v3823_v17 = vsel %vm311_vm0, %v266_v53, 0.0 }
  0x35   : > { %6354 = vst [vmem:[#allocation9_spill] sm:$0xff] %v3802_v22  ;;  %6355 = vst [vmem:[#allocation10_spill] sm:$0xff] %v3810_v32  ;;  %v179_v22 = vld [vmem:[%s3459_s25 + $0xf8] sm:$0xff]  ;;  %v6360_v40 = vrot.slane %v3530_v38, 7  ;;  %v6361_v1 = vrot.slane %v3542_v42, 7  ;;  %v3839_v53 = vsel %vm311_vm0, %v268_v37, 0.0 }
  0x36   : > { %v3777_v52 = vsel %vm311_vm0, %v6347_v51, 0.0  ;;  %v155_v51 = vld [vmem:[%s3459_s25 + $0x38] sm:$0xff]  ;;  %6356 = vst [vmem:[#allocation11_spill] sm:$0xff] %v3815_v18  ;;  %v3820_v16 = vsel %vm311_vm0, %v6357_v25, 0.0  ;;  %6359 = vst [vmem:[#allocation13_spill] sm:$0xff] %v3823_v17  ;;  %v3836_v25 = vsel %vm311_vm0, %v267_v0, 0.0 }
  0x37   : > { %6358 = vst [vmem:[#allocation12_spill] sm:$0xff] %v3820_v16  ;;  %v187_v46 = vld [vmem:[%s3459_s25 + $0x138] sm:$0xff]  ;;  %v329_v32 = vsel %vm311_vm0, 0.0, %v6360_v40  ;;  %v330_v18 = vsel %vm311_vm0, 0.0, %v6361_v1  ;;  %v237_v17 = vrot.slane %v155_v51, 7  ;;  %v245_v16 = vrot.slane %v163_v28, 7 }
  0x38   : > { %465 = vperm.xlu1 %3320, %v3591_v57   ;;  %470 = vperm.xlu0 %3314, %v3596_v58   ;;  %v253_v34 = vrot.slane %v171_v36, 7  ;;  %v261_v57 = vrot.slane %v179_v22, 7  ;;  %v269_v30 = vrot.slane %v187_v46, 7  ;;  %v6362_v46 = vrot.slane %v3545_v43, 7 }
  0x39   : > { %v3842_v58 = vsel %vm311_vm0, 0.0, %v237_v17  ;;  %v3845_v38 = vsel %vm311_vm0, 0.0, %v245_v16  ;;  %v3851_v0 = vsel %vm311_vm0, %v237_v17, 0.0  ;;  %v3860_v1 = vsel %vm311_vm0, %v245_v16, 0.0 }
  0x3a   : > { %v3848_v42 = vsel %vm311_vm0, 0.0, %v253_v34  ;;  %v3854_v37 = vsel %vm311_vm0, 0.0, %v261_v57  ;;  %v3857_v36 = vsel %vm311_vm0, 0.0, %v269_v30  ;;  %v3863_v40 = vsel %vm311_vm0, %v253_v34, 0.0 }
  0x3b   : > { %v331_v22 = vsel %vm311_vm0, 0.0, %v6362_v46  ;;  %v6363_v17 = vrot.slane %v3548_v44, 7  ;;  %v3872_v51 = vsel %vm311_vm0, %v261_v57, 0.0  ;;  %v3875_v28 = vsel %vm311_vm0, %v269_v30, 0.0 }
  0x3c   : > { %475 = vperm.xlu1 %3320, %v329_v32   ;;  %480 = vperm.xlu0 %3314, %v330_v18   ;;  %v6364_v16 = vrot.slane %v3560_v48, 7  ;;  %v6365_v43 = vrot.slane %v3563_v49, 7  ;;  %v6366_v44 = vrot.slane %v3566_v50, 7  ;;  %v6367_v46 = vrot.slane %v3580_v54, 7 }
  0x3d   : > { %v332_v18 = vsel %vm311_vm0, 0.0, %v6363_v17  ;;  %v6368_v48 = vrot.slane %v3583_v55, 7  ;;  %v6369_v49 = vrot.slane %v3586_v56, 7  ;;  %v6370_v50 = vrot.slane %v3600_v60, 7 }
  0x3e   : > { %v333_v34 = vsel %vm311_vm0, 0.0, %v6364_v16  ;;  %v334_v32 = vsel %vm311_vm0, 0.0, %v6365_v43  ;;  %v335_v57 = vsel %vm311_vm0, 0.0, %v6366_v44  ;;  %v337_v30 = vsel %vm311_vm0, 0.0, %v6367_v46 }
  0x3f   : > { %v339_v17 = vsel %vm311_vm0, 0.0, %v6369_v49  ;;  %v6371_v54 = vrot.slane %v3603_v61, 7  ;;  %v6372_v55 = vrot.slane %v3606_v62, 7  ;;  %v6373_v56 = vrot.slane %v3612_v2, 7 }
  0x40   : > { %485 = vperm.xlu1 %3320, %v331_v22   ;;  %490 = vperm.xlu0 %3314, %v332_v18   ;;  %v338_v22 = vsel %vm311_vm0, 0.0, %v6368_v48  ;;  %v340_v18 = vsel %vm311_vm0, 0.0, %v6370_v50  ;;  %v6374_v60 = vrot.slane %v3615_v3, 7  ;;  %v6375_v61 = vrot.slane %v3618_v4, 7  ;;  %v394_v4 = vld [vmem:[%s6204_s1] sm:$0xf] }
  0x41   : > { %v341_v16 = vsel %vm311_vm0, 0.0, %v6371_v54  ;;  %v343_v43 = vsel %vm311_vm0, 0.0, %v6373_v56  ;;  %v6376_v62 = vrot.slane %v3625_v26, 7  ;;  %v6377_v2 = vrot.slane %v3632_v63, 7  ;;  %v395_v26 = vld [vmem:[%s6204_s1 + $0x4] sm:$0x1] }
  0x42   : > { %v346_v44 = vsel %vm311_vm0, 0.0, %v6375_v61  ;;  %v578_v63 = vlaneseq  ;;  %v6383_v48 = vld [vmem:[#allocation8_spill] sm:$0xff]  ;;  %v6384_v50 = vld [vmem:[#allocation9_spill] sm:$0xff] }
  0x43   : > { %v348_v46 = vsel %vm311_vm0, 0.0, %v6377_v2 }
  0x44   : > { %495 = vperm.xlu1 %3320, %v333_v34   ;;  %500 = vperm.xlu0 %3314, %v334_v32   ;;  %v342_v34 = vsel %vm311_vm0, 0.0, %v6372_v55  ;;  %v345_v32 = vsel %vm311_vm0, 0.0, %v6374_v60  ;;  %v579_v3 = vshrl.u32 %v578_v63, 7 }
  0x48   : > { %505 = vperm.xlu1 %3320, %v335_v57   ;;  %510 = vperm.xlu0 %3314, %v337_v30   ;;  %v347_v57 = vsel %vm311_vm0, 0.0, %v6376_v62 }
  0x4c   : > { %515 = vperm.xlu1 %3320, %v338_v22   ;;  %520 = vperm.xlu0 %3314, %v339_v17  }
  0x50   : > { %525 = vperm.xlu1 %3320, %v340_v18   ;;  %530 = vperm.xlu0 %3314, %v341_v16  }
  0x54   : > { %535 = vperm.xlu1 %3320, %v342_v34   ;;  %540 = vperm.xlu0 %3314, %v343_v43  }
  0x58   : > { %545 = vperm.xlu1 %3320, %v345_v32   ;;  %550 = vperm.xlu0 %3314, %v346_v44  }
  0x5c   : > { %555 = vperm.xlu1 %3320, %v347_v57   ;;  %560 = vperm.xlu0 %3314, %v348_v46   ;;  %v6386_v46 = vld [vmem:[#allocation10_spill] sm:$0xff] }
  0x60   : > { %565 = vperm.xlu1 %3320, %v3664_v59   ;;  %570 = vperm.xlu0 %3314, %v3667_v5   ;;  %v397_v59 = vunpack.c.l.bf16 %v395_v26  ;;  %v580_v5 = vsub.s32 0, %v579_v3 }
  0x64   : > { %575 = vperm.xlu1 %3320, %v3670_v7   ;;  %661 = vperm.xlu0 %3314, %v3651_v41   ;;  %v396_v41 = vunpack.c.l.bf16 %v394_v4  ;;  %v1165_v7 = vsub.s32 2, %v579_v3 }
  0x68   : > { %666 = vperm.xlu1 %3320, %v3656_v45   ;;  %671 = vperm.xlu0 %3314, %v3661_v39   ;;  %v836_v45 = vsub.s32 1, %v579_v3  ;;  %v6378_v39 = vld [vmem:[#allocation5_spill] sm:$0xff] }
  0x6c   : > { %676 = vperm.xlu1 %3320, %v3675_v6   ;;  %681 = vperm.xlu0 %3314, %v3680_v8   ;;  %v2436_v6 = vsub.s32 7, %v579_v3  ;;  %v3953_v8 = vrot.slane %v396_v41, %v836_v45 }
  0x70   : > { %686 = vperm.xlu1 %3320, %v3685_v9   ;;  %691 = vperm.xlu0 %3314, %v3690_v10   ;;  %v2356_v9 = vsub.s32 6, %v579_v3  ;;  %v1519_v10 = vsub.s32 3, %v579_v3 }
  0x74   : > { %696 = vperm.xlu1 %3320, %v3695_v11   ;;  %701 = vperm.xlu0 %3314, %v3700_v12   ;;  %v1628_v11 = vsub.s32 4, %v579_v3  ;;  %v6379_v12 = vld [vmem:[#allocation6_spill] sm:$0xff] }
  0x78   : > { %706 = vperm.xlu1 %3320, %v3705_v13   ;;  %711 = vperm.xlu0 %3314, %v3710_v14   ;;  %v6380_v13 = vld [vmem:[#allocation7_spill] sm:$0xff]  ;;  %v3957_v14 = vrot.slane %v396_v41, %v1165_v7 }
  0x7c   : > { %716 = vperm.xlu1 %3320, %v3715_v15   ;;  %721 = vperm.xlu0 %3314, %v3720_v19   ;;  %v3959_v15 = vrot.slane %v396_v41, %v2436_v6  ;;  %v3961_v19 = vrot.slane %v397_v59, %v580_v5 }
  0x80   : > { %726 = vperm.xlu1 %3320, %v3725_v21   ;;  %731 = vperm.xlu0 %3314, %v3730_v23   ;;  %v3963_v21 = vrot.slane %v396_v41, %v580_v5 }
  0x82   : > { %6381 = vst [vmem:[#allocation5_spill] sm:$0xff] %v3963_v21 }
  0x84   : > { %736 = vperm.xlu1 %3320, %v3735_v27   ;;  %741 = vperm.xlu0 %3314, %v3740_v29   ;;  %v1992_v27 = vsub.s32 5, %v579_v3 }
  0x86   : > { %v3980_v18 = vrot.slane %v396_v41, %v1992_v27 }
  0x88   : > { %746 = vperm.xlu1 %3320, %v3745_v31   ;;  %751 = vperm.xlu0 %3314, %v3750_v33   ;;  %v3965_v33 = vrot.slane %v396_v41, %v2356_v9 }
  0x8a   : > { %6382 = vst [vmem:[#allocation6_spill] sm:$0xff] %v3965_v33 }
  0x8c   : > { %756 = vperm.xlu1 %3320, %v3755_v35   ;;  %761 = vperm.xlu0 %3314, %v3762_v47   ;;  %v3967_v35 = vrot.slane %v396_v41, %v1519_v10  ;;  %v3969_v47 = vrot.slane %v396_v41, %v1628_v11  ;;  %v6387_v41 = vld [vmem:[#allocation11_spill] sm:$0xff] }
  0x90   : > { %766 = vperm.xlu1 %3320, %v3767_v20   ;;  %771 = vperm.xlu0 %3314, %v3772_v24  }
  0x94   : > { %776 = vperm.xlu1 %3320, %v3777_v52   ;;  %781 = vperm.xlu0 %3314, %v6378_v39  }
  0x98   : > { %786 = vperm.xlu1 %3320, %v6379_v12   ;;  %791 = vperm.xlu0 %3314, %v6380_v13  }
  0x9a   : > { %v3317_v23 = vpop.permute.xlu0 %3316 }
  0x9b   : > { %v3319_v29 = vunpack.i.h.bf16 %v3317_v23  ;;  %v3318_v31 = vunpack.i.l.bf16 %v3317_v23 }
  0x9c   : > { %796 = vperm.xlu1 %3320, %v6383_v48   ;;  %801 = vperm.xlu0 %3314, %v6384_v50  }
  0x9d   : > { %v839_v20 = vmul.f32 %v3319_v29, %v3953_v8  ;;  %v1168_v24 = vmul.f32 %v3319_v29, %v3957_v14  ;;  %v2453_v52 = vmul.f32 %v3319_v29, %v3959_v15  ;;  %v2785_v30 = vmul.f32 %v3319_v29, %v3961_v19  ;;  %v6391_v29 = vld [vmem:[#allocation12_spill] sm:$0xff] }
  0x9e   : > { %v582_v22 = vmul.f32 %v3318_v31, %v3963_v21  ;;  %v838_v49 = vmul.f32 %v3318_v31, %v3953_v8  ;;  %v1167_v17 = vmul.f32 %v3318_v31, %v3957_v14  ;;  %v2452_v60 = vmul.f32 %v3318_v31, %v3959_v15 }
  0x9f   : > { %v984_v54 = vrot.slane %v839_v20, 1  ;;  %v1313_v16 = vrot.slane %v1168_v24, 2  ;;  %v2604_v55 = vrot.slane %v2453_v52, 1  ;;  %v2936_v34 = vrot.slane %v2785_v30, 2  ;;  %v411_v61 = vpop.permute.xlu1 %410  ;;  %v406_v44 = vpop.permute.xlu0 %405  ;;  %v6392_v20 = vld [vmem:[#allocation13_spill] sm:$0xff] }
  0xa0   : > { %v983_v56 = vrot.slane %v838_v49, 1  ;;  %v1312_v43 = vrot.slane %v1167_v17, 2  ;;  %v2784_v32 = vmul.f32 %v3318_v31, %v3961_v19  ;;  %v3985_v62 = vmul.f32 %v3318_v31, %v3965_v33  ;;  %806 = vperm.xlu1 %3320, %v6386_v46   ;;  %811 = vperm.xlu0 %3314, %v6387_v41  }
  0xa1   : > { %v3988_v57 = vmul.f32 %v3953_v8, %v406_v44  ;;  %v3991_v2 = vmul.f32 %v3957_v14, %v406_v44  ;;  %v2603_v4 = vrot.slane %v2452_v60, 1  ;;  %v3998_v39 = vmul.f32 %v3963_v21, %v406_v44 }
  0xa2   : > { %6385 = vst [vmem:[#allocation7_spill] sm:$0xff] %v3985_v62  ;;  %v985_v63 = vsel %vm982_vm1, %v983_v56, %v984_v54  ;;  %v1314_v3 = vsel %vm1311_vm2, %v1312_v43, %v1313_v16  ;;  %v2935_v26 = vrot.slane %v2784_v32, 2  ;;  %v1521_v59 = vmul.f32 %v3967_v35, %v406_v44 }
  0xa3   : > { %v1127_v45 = vadd.f32 %v985_v63, %v582_v22  ;;  %v4002_v5 = vmul.f32 %v3969_v47, %v406_v44  ;;  %v4005_v7 = vsel %vm982_vm1, %v2603_v4, %v2604_v55  ;;  %v4012_v10 = vmul.f32 %v3980_v18, %v406_v44  ;;  %v416_v11 = vpop.permute.xlu1 %415  ;;  %v4014_v12 = vpop.permute.xlu0 %420 }
  0xa4   : > { %6388 = vst [vmem:[#allocation8_spill] sm:$0xff] %v4005_v7  ;;  %v4008_v6 = vsel %vm1311_vm2, %v2935_v26, %v2936_v34  ;;  %816 = vperm.xlu1 %3320, %v6391_v29   ;;  %v4022_v31 = vmul.f32 %v3967_v35, %v411_v61  ;;  %821 = vperm.xlu0 %3314, %v6392_v20  }
  0xa5   : > { %6389 = vst [vmem:[#allocation9_spill] sm:$0xff] %v4008_v6  ;;  %v4016_v13 = vadd.f32 %v1314_v3, %v1127_v45  ;;  %v4026_v24 = vmul.f32 %v3965_v33, %v411_v61  ;;  %v4029_v52 = vmul.f32 %v3953_v8, %v411_v61  ;;  %v4032_v30 = vmul.f32 %v3957_v14, %v411_v61 }
  0xa6   : > { %v4035_v48 = vmul.f32 %v3969_v47, %v411_v61  ;;  %v4038_v22 = vmul.f32 %v3963_v21, %v411_v61  ;;  %v4041_v49 = vmul.f32 %v3980_v18, %v411_v61  ;;  %v4044_v17 = vmul.f32 %v3959_v15, %v411_v61 }
  0xa7   : > { %6390 = vst [vmem:[#allocation10_spill] sm:$0xff] %v4016_v13  ;;  %v4047_v50 = vmul.f32 %v3961_v19, %v411_v61  ;;  %v4050_v16 = vpop.permute.xlu1 %425  ;;  %v4052_v55 = vpop.permute.xlu0 %430  ;;  %v4055_v34 = vadd.f32 %v1521_v59, %v4016_v13  ;;  %v4063_v61 = vmul.f32 %v3963_v21, %v416_v11  ;;  %v4066_v44 = vmul.f32 %v3953_v8, %v416_v11 }
  0xa8   : > { %826 = vperm.xlu1 %3320, %v3836_v25   ;;  %831 = vperm.xlu0 %3314, %v3839_v53   ;;  %v4071_v63 = vmul.f32 %v3957_v14, %v416_v11  ;;  %v4074_v3 = vmul.f32 %v3969_v47, %v416_v11  ;;  %v4077_v25 = vmul.f32 %v3980_v18, %v416_v11 }
  0xa9   : > { %v4081_v26 = vmul.f32 %v3967_v35, %v416_v11  ;;  %v4084_v41 = vmul.f32 %v3959_v15, %v416_v11  ;;  %v4087_v53 = vmul.f32 %v3961_v19, %v416_v11  ;;  %v4095_v4 = vmul.f32 %v3965_v33, %v416_v11 }
  0xaa   : > { %v4107_v29 = vmul.f32 %v3963_v21, %v4014_v12  ;;  %v4126_v54 = vmul.f32 %v3953_v8, %v4014_v12  ;;  %v4130_v27 = vmul.f32 %v3957_v14, %v4014_v12  ;;  %v4141_v43 = vmul.f32 %v3969_v47, %v4014_v12 }
  0xab   : > { %v4089_v45 = vpop.permute.xlu1 %435  ;;  %v441_v59 = vpop.permute.xlu0 %440  ;;  %v4148_v23 = vmul.f32 %v3967_v35, %v4014_v12  ;;  %v4158_v62 = vmul.f32 %v3965_v33, %v4014_v12  ;;  %v4179_v9 = vmul.f32 %v3957_v14, %v4050_v16  ;;  %v4188_v7 = vmul.f32 %v3967_v35, %v4050_v16 }
  0xac   : > { %6393 = vst [vmem:[#allocation11_spill] sm:$0xff] %v4089_v45  ;;  %v4098_v32 = vmul.f32 %v3953_v8, %v441_v59  ;;  %v4101_v60 = vmul.f32 %v3957_v14, %v441_v59  ;;  %1494 = vperm.xlu1 %3320, %v3842_v58   ;;  %6396 = vst [vmem:[#allocation14_spill] sm:$0xff] %v4107_v29  ;;  %v4110_v20 = vmul.f32 %v3963_v21, %v441_v59 }
  0xad   : > { %v4113_v11 = vmul.f32 %v3967_v35, %v441_v59  ;;  %v4116_v46 = vmul.f32 %v3969_v47, %v441_v59  ;;  %v4119_v56 = vmul.f32 %v3980_v18, %v441_v59  ;;  %1499 = vperm.xlu0 %3314, %v3845_v38   ;;  %6400 = vst [vmem:[#allocation18_spill] sm:$0xff] %v4130_v27  ;;  %6401 = vst [vmem:[#allocation19_spill] sm:$0xff] %v4141_v43 }
  0xae   : > { %6394 = vst [vmem:[#allocation12_spill] sm:$0xff] %v4098_v32  ;;  %6395 = vst [vmem:[#allocation13_spill] sm:$0xff] %v4101_v60  ;;  %v4152_v59 = vmul.f32 %v3980_v18, %v4014_v12  ;;  %v4166_v58 = vmul.f32 %v3961_v19, %v4014_v12  ;;  %v4192_v60 = vmul.f32 %v3969_v47, %v4050_v16 }
  0xaf   : > { %6397 = vst [vmem:[#allocation15_spill] sm:$0xff] %v4110_v20  ;;  %6398 = vst [vmem:[#allocation16_spill] sm:$0xff] %v4116_v46  ;;  %v4135_v6 = vpop.permute.xlu1 %445  ;;  %v4137_v38 = vpop.permute.xlu0 %450  ;;  %v4196_v32 = vmul.f32 %v3980_v18, %v4050_v16  ;;  %v4211_v29 = vmul.f32 %v3965_v33, %v4050_v16  ;;  %v4220_v43 = vmul.f32 %v3963_v21, %v4052_v55 }
  0xb0   : > { %6399 = vst [vmem:[#allocation17_spill] sm:$0xff] %v4119_v56  ;;  %1504 = vperm.xlu1 %3320, %v3848_v42   ;;  %6402 = vst [vmem:[#allocation20_spill] sm:$0xff] %v4152_v59  ;;  %v4162_v42 = vmul.f32 %v3959_v15, %v4014_v12  ;;  %v4171_v56 = vmul.f32 %v3963_v21, %v4050_v16  ;;  %v4204_v59 = vmul.f32 %v3959_v15, %v4050_v16 }
  0xb1   : > { %1509 = vperm.xlu0 %3314, %v3854_v37   ;;  %v4175_v37 = vmul.f32 %v3953_v8, %v4050_v16  ;;  %6405 = vst [vmem:[#allocation23_spill] sm:$0xff] %v4179_v9  ;;  %6406 = vst [vmem:[#allocation24_spill] sm:$0xff] %v4188_v7  ;;  %v4228_v27 = vmul.f32 %v3957_v14, %v4052_v55  ;;  %v4237_v12 = vmul.f32 %v3967_v35, %v4052_v55 }
  0xb2   : > { %6403 = vst [vmem:[#allocation21_spill] sm:$0xff] %v4171_v56  ;;  %6407 = vst [vmem:[#allocation25_spill] sm:$0xff] %v4192_v60  ;;  %v4251_v9 = vmul.f32 %v3965_v33, %v4052_v55  ;;  %v4266_v60 = vmul.f32 %v3953_v8, %v4089_v45 }
  0xb3   : > { %6404 = vst [vmem:[#allocation22_spill] sm:$0xff] %v4175_v37  ;;  %v4181_v46 = vpop.permute.xlu1 %455  ;;  %v4183_v20 = vpop.permute.xlu0 %460  ;;  %6408 = vst [vmem:[#allocation26_spill] sm:$0xff] %v4196_v32  ;;  %v4245_v32 = vmul.f32 %v3980_v18, %v4052_v55  ;;  %v4289_v37 = vmul.f32 %v3961_v19, %v4089_v45 }
  0xb4   : > { %1514 = vperm.xlu1 %3320, %v3857_v36   ;;  %6409 = vst [vmem:[#allocation27_spill] sm:$0xff] %v4204_v59  ;;  %6410 = vst [vmem:[#allocation28_spill] sm:$0xff] %v4211_v29  ;;  %v4215_v36 = vmul.f32 %v3961_v19, %v4050_v16  ;;  %v4255_v16 = vmul.f32 %v3959_v15, %v4052_v55  ;;  %v4285_v29 = vmul.f32 %v3965_v33, %v4089_v45 }
  0xb5   : > { %1603 = vperm.xlu0 %3314, %v3851_v0   ;;  %6412 = vst [vmem:[#allocation30_spill] sm:$0xff] %v4220_v43  ;;  %v4224_v0 = vmul.f32 %v3953_v8, %v4052_v55  ;;  %6414 = vst [vmem:[#allocation32_spill] sm:$0xff] %v4228_v27  ;;  %v4241_v43 = vmul.f32 %v3969_v47, %v4052_v55  ;;  %v4335_v27 = vmul.f32 %v3953_v8, %v4135_v6 }
  0xb6   : > { %6411 = vst [vmem:[#allocation29_spill] sm:$0xff] %v4215_v36  ;;  %6416 = vst [vmem:[#allocation34_spill] sm:$0xff] %v4237_v12  ;;  %v4259_v12 = vmul.f32 %v3961_v19, %v4052_v55 }
  0xb7   : > { %6413 = vst [vmem:[#allocation31_spill] sm:$0xff] %v4224_v0  ;;  %v4230_v7 = vpop.permute.xlu1 %465  ;;  %v4232_v56 = vpop.permute.xlu0 %470  ;;  %6417 = vst [vmem:[#allocation35_spill] sm:$0xff] %v4241_v43  ;;  %v4301_v0 = vmul.f32 %v3967_v35, %v4135_v6  ;;  %v4399_v43 = vmul.f32 %v3967_v35, %v4137_v38 }
  0xb8   : > { %6415 = vst [vmem:[#allocation33_spill] sm:$0xff] %v4232_v56  ;;  %6418 = vst [vmem:[#allocation36_spill] sm:$0xff] %v4245_v32  ;;  %1608 = vperm.xlu1 %3320, %v3860_v1  }
  0xb9   : > { %6419 = vst [vmem:[#allocation37_spill] sm:$0xff] %v4251_v9  ;;  %6420 = vst [vmem:[#allocation38_spill] sm:$0xff] %v4255_v16  ;;  %1613 = vperm.xlu0 %3314, %v3863_v40   ;;  %v4270_v9 = vmul.f32 %v3969_v47, %v4089_v45  ;;  %v4277_v40 = vmul.f32 %v3959_v15, %v4089_v45 }
  0xba   : > { %6421 = vst [vmem:[#allocation39_spill] sm:$0xff] %v4259_v12  ;;  %6422 = vst [vmem:[#allocation40_spill] sm:$0xff] %v4266_v60 }
  0xbb   : > { %6423 = vst [vmem:[#allocation41_spill] sm:$0xff] %v4270_v9  ;;  %6424 = vst [vmem:[#allocation42_spill] sm:$0xff] %v4277_v40  ;;  %v476_v59 = vpop.permute.xlu1 %475  ;;  %v4279_v1 = vpop.permute.xlu0 %480  ;;  %v4371_v9 = vmul.f32 %v3963_v21, %v4137_v38  ;;  %v4403_v40 = vmul.f32 %v3965_v33, %v4137_v38 }
  0xbc   : > { %6425 = vst [vmem:[#allocation43_spill] sm:$0xff] %v4285_v29  ;;  %6426 = vst [vmem:[#allocation44_spill] sm:$0xff] %v4289_v37  ;;  %v4292_v55 = vmul.f32 %v3953_v8, %v476_v59  ;;  %v4295_v36 = vmul.f32 %v3957_v14, %v476_v59  ;;  %1618 = vperm.xlu1 %3320, %v3872_v51   ;;  %v4304_v60 = vmul.f32 %v3963_v21, %v476_v59 }
  0xbd   : > { %6429 = vst [vmem:[#allocation47_spill] sm:$0xff] %v4301_v0  ;;  %v4307_v45 = vmul.f32 %v3967_v35, %v476_v59  ;;  %v4310_v29 = vmul.f32 %v3969_v47, %v476_v59  ;;  %v4313_v12 = vmul.f32 %v3980_v18, %v476_v59  ;;  %1623 = vperm.xlu0 %3314, %v3875_v28   ;;  %6442 = vst [vmem:[#allocation60_spill] sm:$0xff] %v4371_v9 }
  0xbe   : > { %6427 = vst [vmem:[#allocation45_spill] sm:$0xff] %v4292_v55  ;;  %6428 = vst [vmem:[#allocation46_spill] sm:$0xff] %v4295_v36  ;;  %v4327_v59 = vmul.f32 %v3965_v33, %v4135_v6  ;;  %v4331_v28 = vadd.f32 %v4113_v11, %v4016_v13  ;;  %v4339_v51 = vmul.f32 %v3957_v14, %v4135_v6 }
  0xbf   : > { %6430 = vst [vmem:[#allocation48_spill] sm:$0xff] %v4304_v60  ;;  %6431 = vst [vmem:[#allocation49_spill] sm:$0xff] %v4310_v29  ;;  %v4321_v16 = vpop.permute.xlu1 %485  ;;  %v4323_v32 = vpop.permute.xlu0 %490  ;;  %v4343_v60 = vmul.f32 %v3969_v47, %v4135_v6  ;;  %v4347_v0 = vmul.f32 %v3980_v18, %v4135_v6  ;;  %v4351_v11 = vmul.f32 %v3959_v15, %v4135_v6 }
  0xc0   : > { %6432 = vst [vmem:[#allocation50_spill] sm:$0xff] %v4313_v12  ;;  %6433 = vst [vmem:[#allocation51_spill] sm:$0xff] %v4327_v59  ;;  %v4356_v29 = vmul.f32 %v3963_v21, %v4135_v6  ;;  %v4360_v36 = vmul.f32 %v3961_v19, %v4135_v6  ;;  %v4364_v55 = vmul.f32 %v3953_v8, %v4137_v38 }
  0xc1   : > { %6434 = vst [vmem:[#allocation52_spill] sm:$0xff] %v4331_v28  ;;  %6435 = vst [vmem:[#allocation53_spill] sm:$0xff] %v4339_v51  ;;  %v4382_v59 = vmul.f32 %v3957_v14, %v4137_v38  ;;  %v4387_v28 = vmul.f32 %v3969_v47, %v4137_v38  ;;  %v4391_v9 = vmul.f32 %v3980_v18, %v4137_v38 }
  0xc2   : > { %6436 = vst [vmem:[#allocation54_spill] sm:$0xff] %v4343_v60  ;;  %6437 = vst [vmem:[#allocation55_spill] sm:$0xff] %v4347_v0  ;;  %v4395_v6 = vmul.f32 %v3959_v15, %v4137_v38  ;;  %v4407_v37 = vmul.f32 %v3961_v19, %v4137_v38 }
  0xc3   : > { %6438 = vst [vmem:[#allocation56_spill] sm:$0xff] %v4351_v11  ;;  %6439 = vst [vmem:[#allocation57_spill] sm:$0xff] %v4356_v29  ;;  %v4373_v12 = vpop.permute.xlu1 %495  ;;  %v4375_v29 = vpop.permute.xlu0 %500  ;;  %v4417_v11 = vmul.f32 %v3963_v21, %v4181_v46 }
  0xc4   : > { %6440 = vst [vmem:[#allocation58_spill] sm:$0xff] %v4360_v36  ;;  %6441 = vst [vmem:[#allocation59_spill] sm:$0xff] %v4364_v55  ;;  %v4430_v36 = vmul.f32 %v3969_v47, %v4181_v46 }
  0xc5   : > { %6443 = vst [vmem:[#allocation61_spill] sm:$0xff] %v4375_v29  ;;  %6444 = vst [vmem:[#allocation62_spill] sm:$0xff] %v4387_v28  ;;  %v4411_v29 = vmul.f32 %v3953_v8, %v4181_v46  ;;  %v4497_v28 = vmul.f32 %v3969_v47, %v4183_v20 }
  0xc6   : > { %6445 = vst [vmem:[#allocation63_spill] sm:$0xff] %v4391_v9  ;;  %6446 = vst [vmem:[#allocation64_spill] sm:$0xff] %v4395_v6  ;;  %v4473_v6 = vmul.f32 %v3959_v15, %v4181_v46 }
  0xc7   : > { %6447 = vst [vmem:[#allocation65_spill] sm:$0xff] %v4399_v43  ;;  %6448 = vst [vmem:[#allocation66_spill] sm:$0xff] %v4403_v40  ;;  %v4421_v43 = vmul.f32 %v3957_v14, %v4181_v46  ;;  %v4423_v40 = vpop.permute.xlu1 %505  ;;  %v511_v38 = vpop.permute.xlu0 %510 }
  0xc8   : > { %6449 = vst [vmem:[#allocation67_spill] sm:$0xff] %v4407_v37  ;;  %6450 = vst [vmem:[#allocation68_spill] sm:$0xff] %v4411_v29  ;;  %v4433_v55 = vmul.f32 %v3953_v8, %v511_v38  ;;  %v4444_v60 = vmul.f32 %v3963_v21, %v511_v38  ;;  %v4447_v51 = vmul.f32 %v3967_v35, %v511_v38 }
  0xc9   : > { %6451 = vst [vmem:[#allocation69_spill] sm:$0xff] %v4417_v11  ;;  %6452 = vst [vmem:[#allocation70_spill] sm:$0xff] %v4423_v40  ;;  %v4436_v11 = vmul.f32 %v3957_v14, %v511_v38  ;;  %v4441_v40 = vmul.f32 %v3967_v35, %v4181_v46  ;;  %v4450_v0 = vmul.f32 %v3969_v47, %v511_v38 }
  0xca   : > { %6453 = vst [vmem:[#allocation71_spill] sm:$0xff] %v4430_v36  ;;  %6454 = vst [vmem:[#allocation72_spill] sm:$0xff] %v4433_v55  ;;  %v4453_v37 = vmul.f32 %v3980_v18, %v511_v38  ;;  %v4469_v38 = vmul.f32 %v3965_v33, %v4181_v46  ;;  %v4477_v29 = vmul.f32 %v3961_v19, %v4181_v46 }
  0xcb   : > { %6455 = vst [vmem:[#allocation73_spill] sm:$0xff] %v4436_v11  ;;  %6456 = vst [vmem:[#allocation74_spill] sm:$0xff] %v4441_v40  ;;  %v4460_v40 = vmul.f32 %v3980_v18, %v4181_v46  ;;  %v4463_v9 = vpop.permute.xlu1 %515  ;;  %v4483_v11 = vmul.f32 %v3953_v8, %v4183_v20  ;;  %v4493_v46 = vmul.f32 %v3963_v21, %v4183_v20 }
  0xcc   : > { %6457 = vst [vmem:[#allocation75_spill] sm:$0xff] %v4444_v60  ;;  %6458 = vst [vmem:[#allocation76_spill] sm:$0xff] %v4447_v51  ;;  %v4465_v51 = vpop.permute.xlu0 %520  ;;  %v4507_v55 = vmul.f32 %v3980_v18, %v4183_v20  ;;  %v4524_v60 = vmul.f32 %v3961_v19, %v4183_v20  ;;  %v4566_v36 = vmul.f32 %v3965_v33, %v4230_v7 }
  0xcd   : > { %6459 = vst [vmem:[#allocation77_spill] sm:$0xff] %v4450_v0  ;;  %6460 = vst [vmem:[#allocation78_spill] sm:$0xff] %v4453_v37  ;;  %v4503_v0 = vmul.f32 %v3967_v35, %v4183_v20  ;;  %v4520_v37 = vmul.f32 %v3959_v15, %v4183_v20 }
  0xce   : > { %6461 = vst [vmem:[#allocation79_spill] sm:$0xff] %v4460_v40  ;;  %6462 = vst [vmem:[#allocation80_spill] sm:$0xff] %v4463_v9  ;;  %v4516_v40 = vmul.f32 %v3965_v33, %v4183_v20 }
  0xcf   : > { %6463 = vst [vmem:[#allocation81_spill] sm:$0xff] %v4465_v51  ;;  %6464 = vst [vmem:[#allocation82_spill] sm:$0xff] %v4473_v6  ;;  %v4487_v51 = vmul.f32 %v3957_v14, %v4183_v20  ;;  %v4509_v9 = vpop.permute.xlu1 %525  ;;  %v4542_v20 = vmul.f32 %v3967_v35, %v4230_v7 }
  0xd0   : > { %6465 = vst [vmem:[#allocation83_spill] sm:$0xff] %v4477_v29  ;;  %6466 = vst [vmem:[#allocation84_spill] sm:$0xff] %v4483_v11  ;;  %v4511_v6 = vpop.permute.xlu0 %530  ;;  %v4546_v11 = vmul.f32 %v3969_v47, %v4230_v7  ;;  %v4574_v29 = vmul.f32 %v3953_v8, %v4232_v56 }
  0xd1   : > { %6467 = vst [vmem:[#allocation85_spill] sm:$0xff] %v4487_v51  ;;  %6468 = vst [vmem:[#allocation86_spill] sm:$0xff] %v4493_v46  ;;  %v4533_v46 = vmul.f32 %v3953_v8, %v4230_v7  ;;  %v4557_v51 = vmul.f32 %v3959_v15, %v4230_v7 }
  0xd2   : > { %6469 = vst [vmem:[#allocation87_spill] sm:$0xff] %v4497_v28  ;;  %6470 = vst [vmem:[#allocation88_spill] sm:$0xff] %v4503_v0  ;;  %v4570_v28 = vmul.f32 %v3961_v19, %v4230_v7  ;;  %v4584_v0 = vmul.f32 %v3959_v15, %v4232_v56 }
  0xd3   : > { %6471 = vst [vmem:[#allocation89_spill] sm:$0xff] %v4507_v55  ;;  %6472 = vst [vmem:[#allocation90_spill] sm:$0xff] %v4509_v9  ;;  %v4529_v9 = vmul.f32 %v3963_v21, %v4230_v7  ;;  %v4559_v55 = vpop.permute.xlu1 %535 }
  0xd4   : > { %6473 = vst [vmem:[#allocation91_spill] sm:$0xff] %v4511_v6  ;;  %6474 = vst [vmem:[#allocation92_spill] sm:$0xff] %v4516_v40  ;;  %v4537_v6 = vmul.f32 %v3957_v14, %v4230_v7  ;;  %v4594_v40 = vmul.f32 %v3961_v19, %v4232_v56 }
  0xd5   : > { %6475 = vst [vmem:[#allocation93_spill] sm:$0xff] %v4529_v9  ;;  %6476 = vst [vmem:[#allocation94_spill] sm:$0xff] %v4533_v46  ;;  %v4550_v9 = vmul.f32 %v3980_v18, %v4230_v7  ;;  %v4601_v46 = vmul.f32 %v3967_v35, %v4279_v1 }
  0xd6   : > { %6477 = vst [vmem:[#allocation95_spill] sm:$0xff] %v4537_v6  ;;  %6478 = vst [vmem:[#allocation96_spill] sm:$0xff] %v4542_v20  ;;  %v4561_v20 = vpop.permute.xlu0 %540 }
  0xd7   : > { %6479 = vst [vmem:[#allocation97_spill] sm:$0xff] %v4546_v11  ;;  %6480 = vst [vmem:[#allocation98_spill] sm:$0xff] %v4550_v9  ;;  %v546_v6 = vpop.permute.xlu1 %545  ;;  %v4615_v9 = vmul.f32 %v3953_v8, %v4279_v1  ;;  %v4619_v11 = vmul.f32 %v3957_v14, %v4279_v1 }
  0xd8   : > { %6481 = vst [vmem:[#allocation99_spill] sm:$0xff] %v4559_v55  ;;  %6482 = vst [vmem:[#allocation100_spill] sm:$0xff] %v4561_v20  ;;  %v4580_v20 = vmul.f32 %v3969_v47, %v4232_v56  ;;  %v4622_v55 = vmul.f32 %v3953_v8, %v546_v6 }
  0xd9   : > { %6483 = vst [vmem:[#allocation101_spill] sm:$0xff] %v4566_v36  ;;  %6484 = vst [vmem:[#allocation102_spill] sm:$0xff] %v4570_v28  ;;  %v4590_v36 = vmul.f32 %v3965_v33, %v4232_v56  ;;  %v4611_v56 = vmul.f32 %v3965_v33, %v4279_v1 }
  0xda   : > { %6485 = vst [vmem:[#allocation103_spill] sm:$0xff] %v4574_v29  ;;  %6486 = vst [vmem:[#allocation104_spill] sm:$0xff] %v4580_v20  ;;  %v4603_v7 = vpop.permute.xlu0 %550  ;;  %v4633_v20 = vmul.f32 %v3963_v21, %v546_v6 }
  0xdb   : > { %6487 = vst [vmem:[#allocation105_spill] sm:$0xff] %v4584_v0  ;;  %6488 = vst [vmem:[#allocation106_spill] sm:$0xff] %v4590_v36  ;;  %v4607_v36 = vadd.f32 %v4307_v45, %v4016_v13  ;;  %v4630_v13 = vmul.f32 %v3963_v21, %v4279_v1  ;;  %v4656_v29 = vpop.permute.xlu1 %555  ;;  %v4662_v0 = vmul.f32 %v3959_v15, %v4279_v1 }
  0xdc   : > { %6489 = vst [vmem:[#allocation107_spill] sm:$0xff] %v4594_v40  ;;  %6490 = vst [vmem:[#allocation108_spill] sm:$0xff] %v4601_v46  ;;  %v4639_v46 = vmul.f32 %v3969_v47, %v546_v6  ;;  %v4648_v40 = vmul.f32 %v3969_v47, %v4279_v1  ;;  %v4666_v45 = vmul.f32 %v3961_v19, %v4279_v1 }
  0xdd   : > { %6491 = vst [vmem:[#allocation109_spill] sm:$0xff] %v4603_v7  ;;  %6492 = vst [vmem:[#allocation110_spill] sm:$0xff] %v4607_v36  ;;  %v4625_v7 = vmul.f32 %v3957_v14, %v546_v6  ;;  %v4642_v36 = vmul.f32 %v3980_v18, %v546_v6 }
  0xde   : > { %6493 = vst [vmem:[#allocation111_spill] sm:$0xff] %v4611_v56  ;;  %6494 = vst [vmem:[#allocation112_spill] sm:$0xff] %v4615_v9  ;;  %v4636_v56 = vmul.f32 %v3967_v35, %v546_v6  ;;  %v4658_v6 = vpop.permute.xlu0 %560  ;;  %v4705_v9 = vmul.f32 %v3965_v33, %v4321_v16 }
  0xdf   : > { %6495 = vst [vmem:[#allocation113_spill] sm:$0xff] %v4619_v11  ;;  %6496 = vst [vmem:[#allocation114_spill] sm:$0xff] %v4622_v55  ;;  %v4688_v11 = vmul.f32 %v3967_v35, %v4321_v16  ;;  %v4709_v55 = vmul.f32 %v3959_v15, %v4321_v16 }
  0xe0   : > { %6497 = vst [vmem:[#allocation115_spill] sm:$0xff] %v4625_v7  ;;  %6498 = vst [vmem:[#allocation116_spill] sm:$0xff] %v4630_v13  ;;  %v4673_v13 = vmul.f32 %v3953_v8, %v4321_v16  ;;  %v4679_v7 = vmul.f32 %v3963_v21, %v4321_v16 }
  0xe1   : > { %6499 = vst [vmem:[#allocation117_spill] sm:$0xff] %v4633_v20  ;;  %6500 = vst [vmem:[#allocation118_spill] sm:$0xff] %v4636_v56  ;;  %v4652_v20 = vmul.f32 %v3980_v18, %v4279_v1  ;;  %v4683_v1 = vmul.f32 %v3957_v14, %v4321_v16  ;;  %v4692_v56 = vmul.f32 %v3969_v47, %v4321_v16 }
  0xe2   : > { %6501 = vst [vmem:[#allocation119_spill] sm:$0xff] %v4639_v46  ;;  %6502 = vst [vmem:[#allocation120_spill] sm:$0xff] %v4642_v36  ;;  %v4700_v36 = vpop.permute.xlu0 %570  ;;  %v4722_v46 = vmul.f32 %v3953_v8, %v4323_v32 }
  0xe3   : > { %6503 = vst [vmem:[#allocation121_spill] sm:$0xff] %v4648_v40  ;;  %6504 = vst [vmem:[#allocation122_spill] sm:$0xff] %v4652_v20  ;;  %v4743_v20 = vmul.f32 %v3980_v18, %v4323_v32 }
  0xe4   : > { %6505 = vst [vmem:[#allocation123_spill] sm:$0xff] %v4656_v29  ;;  %6506 = vst [vmem:[#allocation124_spill] sm:$0xff] %v4658_v6  ;;  %v4696_v29 = vmul.f32 %v3980_v18, %v4321_v16  ;;  %v4698_v6 = vpop.permute.xlu1 %565 }
  0xe5   : > { %6507 = vst [vmem:[#allocation125_spill] sm:$0xff] %v4662_v0  ;;  %6508 = vst [vmem:[#allocation126_spill] sm:$0xff] %v4666_v45  ;;  %v4733_v45 = vmul.f32 %v3969_v47, %v4323_v32  ;;  %v4739_v0 = vmul.f32 %v3967_v35, %v4323_v32 }
  0xe6   : > { %6509 = vst [vmem:[#allocation127_spill] sm:$0xff] %v4673_v13  ;;  %6510 = vst [vmem:[#allocation128_spill] sm:$0xff] %v4679_v7  ;;  %v4713_v7 = vmul.f32 %v3961_v19, %v4321_v16  ;;  %v662_v13 = vpop.permute.xlu0 %661 }
  0xe7   : > { %6511 = vst [vmem:[#allocation129_spill] sm:$0xff] %v4683_v1  ;;  %6512 = vst [vmem:[#allocation130_spill] sm:$0xff] %v4688_v11  ;;  %v4754_v1 = vmul.f32 %v3959_v15, %v4323_v32  ;;  %v1995_v16 = vmul.f32 %v3980_v18, %v662_v13 }
  0xe8   : > { %6513 = vst [vmem:[#allocation131_spill] sm:$0xff] %v4692_v56  ;;  %6514 = vst [vmem:[#allocation132_spill] sm:$0xff] %v4696_v29 }
  0xe9   : > { %6515 = vst [vmem:[#allocation133_spill] sm:$0xff] %v4698_v6  ;;  %6516 = vst [vmem:[#allocation134_spill] sm:$0xff] %v4700_v36  ;;  %v4718_v6 = vmul.f32 %v3963_v21, %v4323_v32  ;;  %v4726_v36 = vmul.f32 %v3957_v14, %v4323_v32  ;;  %v2155_v11 = vrot.slane %v1995_v16, 2 }
  0xea   : > { %6517 = vst [vmem:[#allocation135_spill] sm:$0xff] %v4705_v9  ;;  %6518 = vst [vmem:[#allocation136_spill] sm:$0xff] %v4709_v55  ;;  %v4745_v9 = vpop.permute.xlu1 %575  ;;  %v4750_v55 = vmul.f32 %v3965_v33, %v4323_v32  ;;  %v4779_v33 = vmul.f32 %v3957_v14, %v4373_v12 }
  0xeb   : > { %6519 = vst [vmem:[#allocation137_spill] sm:$0xff] %v4713_v7  ;;  %6520 = vst [vmem:[#allocation138_spill] sm:$0xff] %v4718_v6  ;;  %v4758_v6 = vmul.f32 %v3961_v19, %v4323_v32  ;;  %v1170_v7 = vmul.f32 %v3957_v14, %v662_v13  ;;  %v4772_v32 = vmul.f32 %v3953_v8, %v4373_v12 }
  0xec   : > { %6521 = vst [vmem:[#allocation139_spill] sm:$0xff] %v4722_v46  ;;  %6522 = vst [vmem:[#allocation140_spill] sm:$0xff] %v4726_v36  ;;  %v841_v46 = vmul.f32 %v3953_v8, %v662_v13 }
  0xed   : > { %6523 = vst [vmem:[#allocation141_spill] sm:$0xff] %v4739_v0  ;;  %6524 = vst [vmem:[#allocation142_spill] sm:$0xff] %v4745_v9  ;;  %v1631_v9 = vmul.f32 %v3969_v47, %v662_v13  ;;  %v1316_v29 = vrot.slane %v1170_v7, 2  ;;  %v6533_v7 = vrot.slane %v4002_v5, 1  ;;  %v6534_v13 = vrot.slane %v4012_v10, 2 }
  0xee   : > { %6525 = vst [vmem:[#allocation143_spill] sm:$0xff] %v4750_v55  ;;  %6526 = vst [vmem:[#allocation144_spill] sm:$0xff] %v4754_v1  ;;  %v4768_v55 = vmul.f32 %v3963_v21, %v4373_v12  ;;  %v987_v0 = vrot.slane %v841_v46, 1  ;;  %v667_v40 = vpop.permute.xlu1 %666  ;;  %v6531_v21 = vrot.slane %v3988_v57, 1  ;;  %v6532_v46 = vrot.slane %v3991_v2, 2 }
  0xef   : > { %6527 = vst [vmem:[#allocation145_spill] sm:$0xff] %v4758_v6  ;;  %6529 = vst [vmem:[#allocation147_spill] sm:$0xff] %v4772_v32  ;;  %v1791_v56 = vrot.slane %v1631_v9, 1  ;;  %v2156_v36 = vsel %vm1311_vm2, %v6534_v13, %v2155_v11  ;;  %v843_v57 = vmul.f32 %v3953_v8, %v667_v40  ;;  %v1633_v2 = vmul.f32 %v3969_v47, %v667_v40 }
  0xf0   : > { %6528 = vst [vmem:[#allocation146_spill] sm:$0xff] %v4768_v55  ;;  %6530 = vst [vmem:[#allocation148_spill] sm:$0xff] %v4779_v33  ;;  %v988_v55 = vsel %vm982_vm1, %v6531_v21, %v987_v0  ;;  %v1317_v9 = vsel %vm1311_vm2, %v6532_v46, %v1316_v29  ;;  %v1172_v21 = vmul.f32 %v3957_v14, %v667_v40  ;;  %v6535_v33 = vrot.slane %v4029_v52, 1 }
  0xf1   : > { %v1792_v16 = vsel %vm982_vm1, %v6533_v7, %v1791_v56  ;;  %v1128_v28 = vadd.f32 %v988_v55, %v3998_v39  ;;  %v1997_v29 = vmul.f32 %v3980_v18, %v667_v40  ;;  %v2439_v5 = vmul.f32 %v3959_v15, %v667_v40  ;;  %v672_v7 = vpop.permute.xlu0 %671 }
  0xf2   : > { %v1950_v32 = vadd.f32 %v1792_v16, %v4055_v34  ;;  %v2771_v10 = vmul.f32 %v3961_v19, %v667_v40  ;;  %v990_v39 = vrot.slane %v843_v57, 1  ;;  %v1319_v55 = vrot.slane %v1172_v21, 2 }
  0xf3   : > { %v1457_v56 = vadd.f32 %v1317_v9, %v1128_v28  ;;  %v1794_v34 = vrot.slane %v1633_v2, 1  ;;  %v2158_v11 = vrot.slane %v1997_v29, 2  ;;  %v2583_v13 = vrot.slane %v2439_v5, 1 }
  0xf4   : > { %v2314_v0 = vadd.f32 %v2156_v36, %v1950_v32  ;;  %v2915_v46 = vrot.slane %v2771_v10, 2  ;;  %v991_v1 = vsel %vm982_vm1, %v6535_v33, %v990_v39  ;;  %v6536_v40 = vrot.slane %v4032_v30, 2 }
  0xf5   : > { %v1562_v16 = vadd.f32 %v4022_v31, %v1457_v56  ;;  %v1129_v28 = vadd.f32 %v991_v1, %v4038_v22  ;;  %v6537_v32 = vrot.slane %v4035_v48, 1  ;;  %v6538_v31 = vrot.slane %v4041_v49, 2 }
  0xf6   : > { %v2394_v6 = vadd.f32 %v4026_v24, %v2314_v0  ;;  %v1320_v36 = vsel %vm1311_vm2, %v6536_v40, %v1319_v55  ;;  %v6539_v52 = vrot.slane %v4044_v17, 1  ;;  %v6540_v21 = vrot.slane %v4047_v50, 2  ;;  %v677_v55 = vpop.permute.xlu1 %676 }
  0xf7   : > { %v1795_v9 = vsel %vm982_vm1, %v6537_v32, %v1794_v34  ;;  %v2159_v24 = vsel %vm1311_vm2, %v6538_v31, %v2158_v11  ;;  %v845_v22 = vmul.f32 %v3953_v8, %v672_v7  ;;  %v1458_v1 = vadd.f32 %v1320_v36, %v1129_v28 }
  0xf8   : > { %v2584_v33 = vsel %vm982_vm1, %v6539_v52, %v2583_v13  ;;  %v1951_v57 = vadd.f32 %v1795_v9, %v1562_v16  ;;  %v2916_v2 = vsel %vm1311_vm2, %v6540_v21, %v2915_v46  ;;  %v1174_v48 = vmul.f32 %v3957_v14, %v672_v7 }
  0xf9   : > { %v2726_v30 = vadd.f32 %v2584_v33, %v2394_v6  ;;  %v1635_v29 = vmul.f32 %v3969_v47, %v672_v7  ;;  %v1999_v49 = vmul.f32 %v3980_v18, %v672_v7  ;;  %v993_v17 = vrot.slane %v845_v22, 1 }
  0xfa   : > { %v2315_v5 = vadd.f32 %v2159_v24, %v1951_v57  ;;  %v2441_v56 = vmul.f32 %v3959_v15, %v672_v7  ;;  %v1563_v6 = vadd.f32 %v4081_v26, %v1458_v1  ;;  %v1322_v0 = vrot.slane %v1174_v48, 2 }
  0xfb   : > { %v3058_v10 = vadd.f32 %v2916_v2, %v2726_v30  ;;  %v1797_v50 = vrot.slane %v1635_v29, 1  ;;  %v2161_v39 = vrot.slane %v1999_v49, 2  ;;  %v6541_v13 = vrot.slane %v4066_v44, 1 }
  0xfc   : > { %v2395_v11 = vadd.f32 %v4095_v4, %v2315_v5  ;;  %v2586_v16 = vrot.slane %v2441_v56, 1  ;;  %v6542_v36 = vrot.slane %v4071_v63, 2  ;;  %v6543_v26 = vrot.slane %v4074_v3, 1  ;;  %v682_v56 = vpop.permute.xlu0 %681 }
  0xfd   : > { %v3098_v34 = vpack.c.bf16 %v3058_v10, %v3058_v10  ;;  %v994_v46 = vsel %vm982_vm1, %v6541_v13, %v993_v17  ;;  %v6544_v9 = vrot.slane %v4077_v25, 2  ;;  %v2773_v4 = vmul.f32 %v3961_v19, %v672_v7 }
  0xfe   : > { %v1130_v40 = vadd.f32 %v994_v46, %v4063_v61  ;;  %v1323_v28 = vsel %vm1311_vm2, %v6542_v36, %v1322_v0  ;;  %v1798_v32 = vsel %vm982_vm1, %v6543_v26, %v1797_v50  ;;  %v6545_v61 = vrot.slane %v4084_v41, 1  ;;  %v6548_v0 = vld [vmem:[#allocation14_spill] sm:$0xff] }
  0xff   : > { %v2162_v31 = vsel %vm1311_vm2, %v6544_v9, %v2161_v39  ;;  %3139 = vst.msk [vmem:[%s4845_s4] sm:$0xf] %vm3138_vm3, %v3098_v34  ;;  %v1952_v44 = vadd.f32 %v1798_v32, %v1563_v6  ;;  %v847_v3 = vmul.f32 %v3953_v8, %v677_v55  ;;  %v1176_v25 = vmul.f32 %v3957_v14, %v677_v55 }
 0x100   : > { %v2587_v63 = vsel %vm982_vm1, %v6545_v61, %v2586_v16  ;;  %v1459_v24 = vadd.f32 %v1323_v28, %v1130_v40  ;;  %v1637_v33 = vmul.f32 %v3969_v47, %v677_v55  ;;  %v2918_v30 = vrot.slane %v2773_v4, 2 }
 0x101   : > { %v2727_v52 = vadd.f32 %v2587_v63, %v2395_v11  ;;  %v2316_v57 = vadd.f32 %v2162_v31, %v1952_v44  ;;  %v996_v21 = vrot.slane %v847_v3, 1  ;;  %v2001_v2 = vmul.f32 %v3980_v18, %v677_v55  ;;  %v6551_v11 = vld [vmem:[#allocation19_spill] sm:$0xff] }
 0x102   : > { %v1325_v22 = vrot.slane %v1176_v25, 2  ;;  %v1564_v41 = vadd.f32 %v4148_v23, %v1459_v24  ;;  %v1800_v1 = vrot.slane %v1637_v33, 1  ;;  %v2443_v48 = vmul.f32 %v3959_v15, %v677_v55  ;;  %v6549_v23 = vld [vmem:[#allocation18_spill] sm:$0xff]  ;;  %v6556_v24 = vld [vmem:[#allocation24_spill] sm:$0xff] }
 0x103   : > { %v6546_v7 = vrot.slane %v4087_v53, 2  ;;  %v6547_v49 = vrot.slane %v4126_v54, 1  ;;  %v2164_v10 = vrot.slane %v2001_v2, 2  ;;  %v2396_v17 = vadd.f32 %v4158_v62, %v2316_v57  ;;  %v6553_v54 = vld [vmem:[#allocation20_spill] sm:$0xff] }
 0x104   : > { %v6550_v39 = vrot.slane %v6549_v23, 2  ;;  %v6552_v53 = vrot.slane %v6551_v11, 1  ;;  %v6554_v16 = vrot.slane %v6553_v54, 2  ;;  %v2589_v36 = vrot.slane %v2443_v48, 1  ;;  %v6566_v54 = vld [vmem:[#allocation26_spill] sm:$0xff] }
 0x105   : > { %v2919_v29 = vsel %vm1311_vm2, %v6546_v7, %v2918_v30  ;;  %v997_v5 = vsel %vm982_vm1, %v6547_v49, %v996_v21  ;;  %v2775_v62 = vmul.f32 %v3961_v19, %v677_v55  ;;  %v849_v32 = vmul.f32 %v3953_v8, %v682_v56  ;;  %v6558_v30 = vld [vmem:[#allocation28_spill] sm:$0xff] }
 0x106   : > { %v3059_v6 = vadd.f32 %v2919_v29, %v2727_v52  ;;  %v1131_v50 = vadd.f32 %v997_v5, %v6548_v0  ;;  %v1326_v34 = vsel %vm1311_vm2, %v6550_v39, %v1325_v22  ;;  %v1801_v13 = vsel %vm982_vm1, %v6552_v53, %v1800_v1  ;;  %v687_v22 = vpop.permute.xlu1 %686  ;;  %v6559_v1 = vld [vmem:[#allocation22_spill] sm:$0xff]  ;;  %v6561_v29 = vld [vmem:[#allocation23_spill] sm:$0xff] }
 0x107   : > { %v1953_v46 = vadd.f32 %v1801_v13, %v1564_v41  ;;  %v2165_v40 = vsel %vm1311_vm2, %v6554_v16, %v2164_v10  ;;  %v1178_v9 = vmul.f32 %v3957_v14, %v682_v56  ;;  %v6555_v44 = vrot.slane %v4162_v42, 1  ;;  %v6563_v10 = vld [vmem:[#allocation21_spill] sm:$0xff] }
 0x108   : > { %v3099_v28 = vpack.c.bf16 %v3059_v6, %v3059_v6  ;;  %v1460_v26 = vadd.f32 %v1326_v34, %v1131_v50  ;;  %v2921_v63 = vrot.slane %v2775_v62, 2  ;;  %v1639_v4 = vmul.f32 %v3969_v47, %v682_v56  ;;  %v6564_v6 = vld [vmem:[#allocation25_spill] sm:$0xff] }
 0x109   : > { %v2317_v31 = vadd.f32 %v2165_v40, %v1953_v46  ;;  %v2590_v61 = vsel %vm982_vm1, %v6555_v44, %v2589_v36  ;;  %v999_v55 = vrot.slane %v849_v32, 1  ;;  %v1328_v25 = vrot.slane %v1178_v9, 2 }
 0x10a   : > { %3140 = vst.msk [vmem:[%s4845_s4 + $0x4] sm:$0xf] %vm3138_vm3, %v3099_v28  ;;  %v2728_v3 = vadd.f32 %v2590_v61, %v2396_v17  ;;  %v1565_v52 = vadd.f32 %v6556_v24, %v1460_v26  ;;  %v6557_v33 = vrot.slane %v4166_v58, 2  ;;  %v1803_v2 = vrot.slane %v1639_v4, 1  ;;  %v6568_v26 = vld [vmem:[#allocation27_spill] sm:$0xff]  ;;  %v6570_v61 = vld [vmem:[#allocation29_spill] sm:$0xff] }
 0x10b   : > { %v2397_v21 = vadd.f32 %v6558_v30, %v2317_v31  ;;  %v2003_v42 = vmul.f32 %v3980_v18, %v682_v56  ;;  %v6560_v48 = vrot.slane %v6559_v1, 1  ;;  %v6562_v49 = vrot.slane %v6561_v29, 2  ;;  %v6572_v24 = vld [vmem:[#allocation34_spill] sm:$0xff] }
 0x10c   : > { %v2922_v57 = vsel %vm1311_vm2, %v6557_v33, %v2921_v63  ;;  %v2445_v58 = vmul.f32 %v3959_v15, %v682_v56  ;;  %v6565_v0 = vrot.slane %v6564_v6, 1  ;;  %v2777_v39 = vmul.f32 %v3961_v19, %v682_v56 }
 0x10d   : > { %v3060_v41 = vadd.f32 %v2922_v57, %v2728_v3  ;;  %v1000_v7 = vsel %vm982_vm1, %v6560_v48, %v999_v55  ;;  %v1329_v5 = vsel %vm1311_vm2, %v6562_v49, %v1328_v25  ;;  %v2167_v23 = vrot.slane %v2003_v42, 2  ;;  %v692_v55 = vpop.permute.xlu0 %691  ;;  %v6573_v25 = vld [vmem:[#allocation31_spill] sm:$0xff]  ;;  %v6575_v42 = vld [vmem:[#allocation37_spill] sm:$0xff]  ;;  %v6576_v48 = vld [vmem:[#allocation30_spill] sm:$0xff] }
 0x10e   : > { %v1132_v17 = vadd.f32 %v1000_v7, %v6563_v10  ;;  %v1804_v50 = vsel %vm982_vm1, %v6565_v0, %v1803_v2  ;;  %v2592_v53 = vrot.slane %v2445_v58, 1  ;;  %v851_v13 = vmul.f32 %v3953_v8, %v687_v22  ;;  %v6577_v7 = vld [vmem:[#allocation32_spill] sm:$0xff]  ;;  %v6579_v58 = vld [vmem:[#allocation35_spill] sm:$0xff] }
 0x10f   : > { %v3100_v34 = vpack.c.bf16 %v3060_v41, %v3060_v41  ;;  %v1954_v11 = vadd.f32 %v1804_v50, %v1565_v52  ;;  %v6567_v16 = vrot.slane %v6566_v54, 2  ;;  %v2924_v36 = vrot.slane %v2777_v39, 2 }
 0x110   : > { %v1461_v46 = vadd.f32 %v1329_v5, %v1132_v17  ;;  %v1180_v62 = vmul.f32 %v3957_v14, %v687_v22  ;;  %v6569_v32 = vrot.slane %v6568_v26, 1  ;;  %v1002_v9 = vrot.slane %v851_v13, 1 }
 0x111   : > { %v2168_v40 = vsel %vm1311_vm2, %v6567_v16, %v2167_v23  ;;  %3141 = vst.msk [vmem:[%s4845_s4 + $0x8] sm:$0xf] %vm3138_vm3, %v3100_v34  ;;  %v1641_v31 = vmul.f32 %v3969_v47, %v687_v22  ;;  %v6571_v63 = vrot.slane %v6570_v61, 2  ;;  %v6574_v33 = vrot.slane %v6573_v25, 1 }
 0x112   : > { %v2318_v28 = vadd.f32 %v2168_v40, %v1954_v11  ;;  %v2593_v56 = vsel %vm982_vm1, %v6569_v32, %v2592_v53  ;;  %v1331_v3 = vrot.slane %v1180_v62, 2  ;;  %v1566_v52 = vadd.f32 %v6572_v24, %v1461_v46  ;;  %v6581_v53 = vld [vmem:[#allocation36_spill] sm:$0xff]  ;;  %v697_v32 = vpop.permute.xlu1 %696 }
 0x113   : > { %v2729_v44 = vadd.f32 %v2593_v56, %v2397_v21  ;;  %v2925_v4 = vsel %vm1311_vm2, %v6571_v63, %v2924_v36  ;;  %v1003_v57 = vsel %vm982_vm1, %v6574_v33, %v1002_v9  ;;  %v1806_v30 = vrot.slane %v1641_v31, 1  ;;  %v6585_v31 = vld [vmem:[#allocation39_spill] sm:$0xff] }
 0x114   : > { %v2005_v2 = vmul.f32 %v3980_v18, %v687_v22  ;;  %v2398_v41 = vadd.f32 %v6575_v42, %v2318_v28  ;;  %v1133_v21 = vadd.f32 %v1003_v57, %v6576_v48  ;;  %v6578_v29 = vrot.slane %v6577_v7, 2  ;;  %v702_v48 = vpop.permute.xlu0 %701 }
 0x115   : > { %v3061_v1 = vadd.f32 %v2925_v4, %v2729_v44  ;;  %v2447_v5 = vmul.f32 %v3959_v15, %v687_v22  ;;  %v6580_v10 = vrot.slane %v6579_v58, 1  ;;  %v2779_v0 = vmul.f32 %v3961_v19, %v687_v22  ;;  %v6583_v22 = vld [vmem:[#allocation38_spill] sm:$0xff] }
 0x116   : > { %v1332_v49 = vsel %vm1311_vm2, %v6578_v29, %v1331_v3  ;;  %v2170_v6 = vrot.slane %v2005_v2, 2  ;;  %v853_v50 = vmul.f32 %v3953_v8, %v692_v55  ;;  %v6582_v13 = vrot.slane %v6581_v53, 2  ;;  %v6587_v3 = vld [vmem:[#allocation43_spill] sm:$0xff]  ;;  %v6592_v53 = vld [vmem:[#allocation44_spill] sm:$0xff] }
 0x117   : > { %v1807_v17 = vsel %vm982_vm1, %v6580_v10, %v1806_v30  ;;  %v3101_v23 = vpack.c.bf16 %v3061_v1, %v3061_v1  ;;  %v4933_v39 = vadd.f32 %v1332_v49, %v1133_v21  ;;  %v2595_v11 = vrot.slane %v2447_v5, 1 }
 0x118   : > { %v1955_v34 = vadd.f32 %v1807_v17, %v1566_v52  ;;  %v2171_v46 = vsel %vm1311_vm2, %v6582_v13, %v2170_v6  ;;  %v2927_v54 = vrot.slane %v2779_v0, 2  ;;  %v1005_v16 = vrot.slane %v853_v50, 1  ;;  %v6588_v52 = vld [vmem:[#allocation40_spill] sm:$0xff]  ;;  %v6590_v6 = vld [vmem:[#allocation42_spill] sm:$0xff] }
 0x119   : > { %v4939_v40 = vmul.f32 %v3957_v14, %v692_v55  ;;  %3142 = vst.msk [vmem:[%s4845_s4 + $0xc] sm:$0xf] %vm3138_vm3, %v3101_v23  ;;  %v6584_v62 = vrot.slane %v6583_v22, 1  ;;  %v4947_v26 = vmul.f32 %v3969_v47, %v692_v55  ;;  %v4951_v56 = vmul.f32 %v3967_v35, %v4373_v12  ;;  %v6596_v22 = vld [vmem:[#allocation13_spill] sm:$0xff] }
 0x11a   : > { %v2319_v36 = vadd.f32 %v2171_v46, %v1955_v34  ;;  %v6586_v44 = vrot.slane %v6585_v31, 2  ;;  %v4957_v63 = vmul.f32 %v3980_v18, %v692_v55  ;;  %v4961_v4 = vmul.f32 %v3969_v47, %v4373_v12  ;;  %v6599_v31 = vld [vmem:[#allocation16_spill] sm:$0xff] }
 0x11b   : > { %v2596_v28 = vsel %vm982_vm1, %v6584_v62, %v2595_v11  ;;  %v6589_v25 = vrot.slane %v6588_v52, 1  ;;  %v2449_v30 = vmul.f32 %v3959_v15, %v692_v55  ;;  %v2781_v42 = vmul.f32 %v3961_v19, %v692_v55 }
 0x11c   : > { %v2730_v9 = vadd.f32 %v2596_v28, %v2398_v41  ;;  %v2928_v61 = vsel %vm1311_vm2, %v6586_v44, %v2927_v54  ;;  %v2399_v24 = vadd.f32 %v6587_v3, %v2319_v36  ;;  %v855_v41 = vmul.f32 %v3953_v8, %v697_v32  ;;  %v6594_v54 = vld [vmem:[#allocation12_spill] sm:$0xff]  ;;  %v6601_v3 = vld [vmem:[#allocation17_spill] sm:$0xff] }
 0x11d   : > { %v4967_v33 = vsel %vm982_vm1, %v6589_v25, %v1005_v16  ;;  %v1184_v1 = vmul.f32 %v3957_v14, %v697_v32  ;;  %v1809_v21 = vrot.slane %v4947_v26, 1  ;;  %v2598_v7 = vrot.slane %v2449_v30, 1 }
 0x11e   : > { %v3062_v2 = vadd.f32 %v2928_v61, %v2730_v9  ;;  %v1647_v29 = vmul.f32 %v3969_v47, %v697_v32  ;;  %v2011_v49 = vmul.f32 %v3980_v18, %v697_v32  ;;  %v2930_v58 = vrot.slane %v2781_v42, 2  ;;  %v6598_v32 = vld [vmem:[#allocation15_spill] sm:$0xff] }
 0x11f   : > { %v1008_v10 = vrot.slane %v855_v41, 1  ;;  %v1337_v17 = vrot.slane %v1184_v1, 2  ;;  %v6591_v0 = vrot.slane %v6590_v6, 1  ;;  %v857_v34 = vmul.f32 %v3953_v8, %v702_v48 }
 0x120   : > { %v3102_v5 = vpack.c.bf16 %v3062_v2, %v3062_v2  ;;  %v1815_v50 = vrot.slane %v1647_v29, 1  ;;  %v2179_v23 = vrot.slane %v2011_v49, 2  ;;  %v6593_v13 = vrot.slane %v6592_v53, 2  ;;  %v6603_v2 = vld [vmem:[#allocation52_spill] sm:$0xff] }
 0x121   : > { %v2599_v55 = vsel %vm982_vm1, %v6591_v0, %v2598_v7  ;;  %v6595_v16 = vrot.slane %v6594_v54, 1  ;;  %v6597_v62 = vrot.slane %v6596_v22, 2  ;;  %v6600_v44 = vrot.slane %v6599_v31, 1  ;;  %v6605_v0 = vld [vmem:[#allocation57_spill] sm:$0xff] }
 0x122   : > { %3143 = vst.msk [vmem:[%s4845_s4 + $0x10] sm:$0xf] %vm3138_vm3, %v3102_v5  ;;  %v2731_v11 = vadd.f32 %v2599_v55, %v2399_v24  ;;  %v2931_v46 = vsel %vm1311_vm2, %v6593_v13, %v2930_v58  ;;  %v6602_v24 = vrot.slane %v6601_v3, 2  ;;  %v1011_v25 = vrot.slane %v857_v34, 1  ;;  %v6608_v54 = vld [vmem:[#allocation53_spill] sm:$0xff] }
 0x123   : > { %v1009_v36 = vsel %vm982_vm1, %v6595_v16, %v1008_v10  ;;  %v1338_v28 = vsel %vm1311_vm2, %v6597_v62, %v1337_v17  ;;  %v1816_v61 = vsel %vm982_vm1, %v6600_v44, %v1815_v50  ;;  %v1186_v41 = vmul.f32 %v3957_v14, %v702_v48  ;;  %v707_v10 = vpop.permute.xlu1 %706  ;;  %v6612_v44 = vld [vmem:[#allocation55_spill] sm:$0xff] }
 0x124   : > { %v1135_v9 = vadd.f32 %v1009_v36, %v6598_v32  ;;  %v2180_v52 = vsel %vm1311_vm2, %v6602_v24, %v2179_v23  ;;  %v3063_v30 = vadd.f32 %v2931_v46, %v2731_v11  ;;  %v1958_v42 = vadd.f32 %v1816_v61, %v6603_v2  ;;  %v6606_v23 = vld [vmem:[#allocation47_spill] sm:$0xff]  ;;  %v6610_v32 = vld [vmem:[#allocation54_spill] sm:$0xff]  ;;  %v6614_v24 = vld [vmem:[#allocation56_spill] sm:$0xff] }
 0x125   : > { %v1649_v1 = vmul.f32 %v3969_v47, %v702_v48  ;;  %v6604_v29 = vrot.slane %v4335_v27, 1  ;;  %v2013_v5 = vmul.f32 %v3980_v18, %v702_v48  ;;  %v2455_v58 = vmul.f32 %v3959_v15, %v702_v48  ;;  %v6607_v27 = vld [vmem:[#allocation51_spill] sm:$0xff] }
 0x126   : > { %v1464_v7 = vadd.f32 %v1338_v28, %v1135_v9  ;;  %v3103_v17 = vpack.c.bf16 %v3063_v30, %v3063_v30  ;;  %v2322_v6 = vadd.f32 %v2180_v52, %v1958_v42  ;;  %v1340_v50 = vrot.slane %v1186_v41, 2 }
 0x127   : > { %v1012_v49 = vsel %vm982_vm1, %v6604_v29, %v1011_v25  ;;  %v1818_v11 = vrot.slane %v1649_v1, 1  ;;  %v2182_v53 = vrot.slane %v2013_v5, 2  ;;  %v2607_v13 = vrot.slane %v2455_v58, 1  ;;  %v6616_v1 = vld [vmem:[#allocation65_spill] sm:$0xff]  ;;  %v6617_v58 = vld [vmem:[#allocation58_spill] sm:$0xff] }
 0x128   : > { %v1136_v55 = vadd.f32 %v1012_v49, %v6605_v0  ;;  %v1570_v34 = vadd.f32 %v6606_v23, %v1464_v7  ;;  %3144 = vst.msk [vmem:[%s4845_s4 + $0x14] sm:$0xf] %vm3138_vm3, %v3103_v17  ;;  %v2402_v46 = vadd.f32 %v6607_v27, %v2322_v6  ;;  %v6609_v16 = vrot.slane %v6608_v54, 2  ;;  %v6619_v0 = vld [vmem:[#allocation59_spill] sm:$0xff] }
 0x129   : > { %v2787_v22 = vmul.f32 %v3961_v19, %v702_v48  ;;  %v859_v62 = vmul.f32 %v3953_v8, %v707_v10  ;;  %v6611_v9 = vrot.slane %v6610_v32, 1  ;;  %v6613_v61 = vrot.slane %v6612_v44, 2 }
 0x12a   : > { %v1341_v36 = vsel %vm1311_vm2, %v6609_v16, %v1340_v50  ;;  %v6615_v52 = vrot.slane %v6614_v24, 1  ;;  %v1188_v48 = vmul.f32 %v3957_v14, %v707_v10  ;;  %v1651_v29 = vmul.f32 %v3969_v47, %v707_v10  ;;  %v6622_v16 = vld [vmem:[#allocation66_spill] sm:$0xff] }
 0x12b   : > { %v1465_v28 = vadd.f32 %v1341_v36, %v1136_v55  ;;  %v1819_v31 = vsel %vm982_vm1, %v6611_v9, %v1818_v11  ;;  %v2183_v3 = vsel %vm1311_vm2, %v6613_v61, %v2182_v53  ;;  %v2939_v42 = vrot.slane %v2787_v22, 2  ;;  %v6621_v53 = vld [vmem:[#allocation60_spill] sm:$0xff] }
 0x12c   : > { %v2608_v25 = vsel %vm982_vm1, %v6615_v52, %v2607_v13  ;;  %v1959_v30 = vadd.f32 %v1819_v31, %v1570_v34  ;;  %v1014_v41 = vrot.slane %v859_v62, 1  ;;  %v2015_v49 = vmul.f32 %v3980_v18, %v707_v10  ;;  %v712_v34 = vpop.permute.xlu0 %711  ;;  %v6624_v31 = vld [vmem:[#allocation62_spill] sm:$0xff] }
 0x12d   : > { %v2734_v2 = vadd.f32 %v2608_v25, %v2402_v46  ;;  %v1571_v7 = vadd.f32 %v6616_v1, %v1465_v28  ;;  %v6618_v17 = vrot.slane %v6617_v58, 2  ;;  %v6620_v55 = vrot.slane %v6619_v0, 1  ;;  %v6626_v25 = vld [vmem:[#allocation63_spill] sm:$0xff] }
 0x12e   : > { %v2323_v5 = vadd.f32 %v2183_v3, %v1959_v30  ;;  %v2457_v23 = vmul.f32 %v3959_v15, %v707_v10  ;;  %v1343_v27 = vrot.slane %v1188_v48, 2  ;;  %v1821_v46 = vrot.slane %v1651_v29, 1 }
 0x12f   : > { %v2940_v6 = vsel %vm1311_vm2, %v6618_v17, %v2939_v42  ;;  %v1015_v50 = vsel %vm982_vm1, %v6620_v55, %v1014_v41  ;;  %v2185_v54 = vrot.slane %v2015_v49, 2  ;;  %v2789_v62 = vmul.f32 %v3961_v19, %v707_v10  ;;  %v6628_v42 = vld [vmem:[#allocation64_spill] sm:$0xff] }
 0x130   : > { %v3066_v11 = vadd.f32 %v2940_v6, %v2734_v2  ;;  %v1137_v13 = vadd.f32 %v1015_v50, %v6621_v53  ;;  %v2403_v36 = vadd.f32 %v6622_v16, %v2323_v5  ;;  %v2610_v22 = vrot.slane %v2457_v23, 1  ;;  %v6630_v5 = vld [vmem:[#allocation74_spill] sm:$0xff]  ;;  %v6631_v6 = vld [vmem:[#allocation67_spill] sm:$0xff]  ;;  %v6633_v50 = vld [vmem:[#allocation68_spill] sm:$0xff] }
 0x131   : > { %v6623_v32 = vrot.slane %v4382_v59, 2  ;;  %v6625_v44 = vrot.slane %v6624_v31, 1  ;;  %v861_v3 = vmul.f32 %v3953_v8, %v712_v34  ;;  %v6627_v30 = vrot.slane %v6626_v25, 2  ;;  %v6635_v16 = vld [vmem:[#allocation69_spill] sm:$0xff] }
 0x132   : > { %v3106_v28 = vpack.c.bf16 %v3066_v11, %v3066_v11  ;;  %v6629_v41 = vrot.slane %v6628_v42, 1  ;;  %v2942_v48 = vrot.slane %v2789_v62, 2  ;;  %v1190_v29 = vmul.f32 %v3957_v14, %v712_v34 }
 0x133   : > { %v1344_v9 = vsel %vm1311_vm2, %v6623_v32, %v1343_v27  ;;  %v1822_v61 = vsel %vm982_vm1, %v6625_v44, %v1821_v46  ;;  %v2186_v2 = vsel %vm1311_vm2, %v6627_v30, %v2185_v54  ;;  %v1017_v1 = vrot.slane %v861_v3, 1  ;;  %v717_v27 = vpop.permute.xlu1 %716  ;;  %v6637_v3 = vld [vmem:[#allocation71_spill] sm:$0xff] }
 0x134   : > { %v1466_v24 = vadd.f32 %v1344_v9, %v1137_v13  ;;  %v1960_v52 = vadd.f32 %v1822_v61, %v1571_v7  ;;  %v2611_v10 = vsel %vm982_vm1, %v6629_v41, %v2610_v22  ;;  %3147 = vst.msk [vmem:[%s4845_s4 + $0x20] sm:$0xf] %vm3138_vm3, %v3106_v28  ;;  %v1653_v7 = vmul.f32 %v3969_v47, %v712_v34  ;;  %v6639_v30 = vld [vmem:[#allocation79_spill] sm:$0xff] }
 0x135   : > { %v2735_v59 = vadd.f32 %v2611_v10, %v2403_v36  ;;  %v2017_v17 = vmul.f32 %v3980_v18, %v712_v34  ;;  %v6632_v0 = vrot.slane %v6631_v6, 2  ;;  %v6634_v23 = vrot.slane %v6633_v50, 1  ;;  %v6646_v50 = vld [vmem:[#allocation84_spill] sm:$0xff] }
 0x136   : > { %v2324_v49 = vadd.f32 %v2186_v2, %v1960_v52  ;;  %v1572_v58 = vadd.f32 %v6630_v5, %v1466_v24  ;;  %v1346_v53 = vrot.slane %v1190_v29, 2  ;;  %v2459_v13 = vmul.f32 %v3959_v15, %v712_v34  ;;  %v6643_v29 = vld [vmem:[#allocation88_spill] sm:$0xff] }
 0x137   : > { %v2943_v55 = vsel %vm1311_vm2, %v6632_v0, %v2942_v48  ;;  %v1018_v11 = vsel %vm982_vm1, %v6634_v23, %v1017_v1  ;;  %v1824_v22 = vrot.slane %v1653_v7, 1  ;;  %v6636_v62 = vrot.slane %v4421_v43, 2  ;;  %v6641_v43 = vld [vmem:[#allocation82_spill] sm:$0xff]  ;;  %v6644_v7 = vld [vmem:[#allocation83_spill] sm:$0xff] }
 0x138   : > { %v3067_v46 = vadd.f32 %v2943_v55, %v2735_v59  ;;  %v2404_v54 = vadd.f32 %v4469_v38, %v2324_v49  ;;  %v1138_v36 = vadd.f32 %v1018_v11, %v6635_v16  ;;  %v2188_v32 = vrot.slane %v2017_v17, 2 }
 0x139   : > { %v1347_v28 = vsel %vm1311_vm2, %v6636_v62, %v1346_v53  ;;  %v2613_v9 = vrot.slane %v2459_v13, 1  ;;  %v2791_v31 = vmul.f32 %v3961_v19, %v712_v34  ;;  %v6638_v24 = vrot.slane %v6637_v3, 1  ;;  %v6649_v62 = vld [vmem:[#allocation92_spill] sm:$0xff] }
 0x13a   : > { %v3107_v44 = vpack.c.bf16 %v3067_v46, %v3067_v46  ;;  %v1467_v61 = vadd.f32 %v1347_v28, %v1138_v36  ;;  %v863_v25 = vmul.f32 %v3953_v8, %v717_v27  ;;  %v6640_v2 = vrot.slane %v6639_v30, 2  ;;  %v722_v46 = vpop.permute.xlu0 %721  ;;  %v6654_v30 = vld [vmem:[#allocation89_spill] sm:$0xff] }
 0x13b   : > { %v1825_v52 = vsel %vm982_vm1, %v6638_v24, %v1824_v22  ;;  %v6642_v41 = vrot.slane %v6641_v43, 1  ;;  %v2945_v59 = vrot.slane %v2791_v31, 2  ;;  %v1192_v1 = vmul.f32 %v3957_v14, %v717_v27 }
 0x13c   : > { %v1961_v38 = vadd.f32 %v1825_v52, %v1572_v58  ;;  %v2189_v42 = vsel %vm1311_vm2, %v6640_v2, %v2188_v32  ;;  %3148 = vst.msk [vmem:[%s4845_s4 + $0x24] sm:$0xf] %vm3138_vm3, %v3107_v44  ;;  %v1020_v48 = vrot.slane %v863_v25, 1  ;;  %v1573_v49 = vadd.f32 %v6643_v29, %v1467_v61  ;;  %v6652_v52 = vld [vmem:[#allocation87_spill] sm:$0xff] }
 0x13d   : > { %v2614_v10 = vsel %vm982_vm1, %v6642_v41, %v2613_v9  ;;  %v6645_v58 = vrot.slane %v6644_v7, 2  ;;  %v1655_v6 = vmul.f32 %v3969_v47, %v717_v27  ;;  %v2019_v0 = vmul.f32 %v3980_v18, %v717_v27  ;;  %v6650_v9 = vld [vmem:[#allocation85_spill] sm:$0xff] }
 0x13e   : > { %v2736_v34 = vadd.f32 %v2614_v10, %v2404_v54  ;;  %v2325_v5 = vadd.f32 %v2189_v42, %v1961_v38  ;;  %v6647_v23 = vrot.slane %v6646_v50, 1  ;;  %v1349_v53 = vrot.slane %v1192_v1, 2  ;;  %v6648_v54 = vld [vmem:[#allocation86_spill] sm:$0xff]  ;;  %v6657_v1 = vld [vmem:[#allocation96_spill] sm:$0xff] }
 0x13f   : > { %v2946_v17 = vsel %vm1311_vm2, %v6645_v58, %v2945_v59  ;;  %v2461_v13 = vmul.f32 %v3959_v15, %v717_v27  ;;  %v1827_v36 = vrot.slane %v1655_v6, 1  ;;  %v2191_v22 = vrot.slane %v2019_v0, 2 }
 0x140   : > { %v3068_v55 = vadd.f32 %v2946_v17, %v2736_v34  ;;  %v1021_v11 = vsel %vm982_vm1, %v6647_v23, %v1020_v48  ;;  %v2405_v28 = vadd.f32 %v6649_v62, %v2325_v5  ;;  %v6651_v31 = vrot.slane %v6650_v9, 2 }
 0x141   : > { %v1139_v16 = vadd.f32 %v1021_v11, %v6648_v54  ;;  %v2616_v61 = vrot.slane %v2461_v13, 1  ;;  %v2793_v3 = vmul.f32 %v3961_v19, %v717_v27  ;;  %v6653_v25 = vrot.slane %v6652_v52, 1  ;;  %v727_v13 = vpop.permute.xlu1 %726  ;;  %v6661_v54 = vld [vmem:[#allocation101_spill] sm:$0xff] }
 0x142   : > { %v3108_v32 = vpack.c.bf16 %v3068_v55, %v3068_v55  ;;  %v1350_v44 = vsel %vm1311_vm2, %v6651_v31, %v1349_v53  ;;  %v6655_v2 = vrot.slane %v6654_v30, 2  ;;  %v865_v43 = vmul.f32 %v3953_v8, %v722_v46  ;;  %v6659_v55 = vld [vmem:[#allocation94_spill] sm:$0xff]  ;;  %v6665_v31 = vld [vmem:[#allocation97_spill] sm:$0xff] }
 0x143   : > { %v1468_v24 = vadd.f32 %v1350_v44, %v1139_v16  ;;  %v1828_v38 = vsel %vm982_vm1, %v6653_v25, %v1827_v36  ;;  %v6656_v10 = vrot.slane %v4520_v37, 1  ;;  %v2948_v34 = vrot.slane %v2793_v3, 2  ;;  %v6662_v36 = vld [vmem:[#allocation93_spill] sm:$0xff] }
 0x144   : > { %v2192_v42 = vsel %vm1311_vm2, %v6655_v2, %v2191_v22  ;;  %3149 = vst.msk [vmem:[%s4845_s4 + $0x28] sm:$0xf] %vm3138_vm3, %v3108_v32  ;;  %v1962_v41 = vadd.f32 %v1828_v38, %v1573_v49  ;;  %v1194_v27 = vmul.f32 %v3957_v14, %v722_v46  ;;  %v1023_v5 = vrot.slane %v865_v43, 1  ;;  %v6667_v38 = vld [vmem:[#allocation98_spill] sm:$0xff] }
 0x145   : > { %v2617_v59 = vsel %vm982_vm1, %v6656_v10, %v2616_v61  ;;  %v1574_v29 = vadd.f32 %v6657_v1, %v1468_v24  ;;  %v1657_v7 = vmul.f32 %v3969_v47, %v722_v46  ;;  %v6658_v17 = vrot.slane %v4524_v60, 2  ;;  %v6663_v60 = vld [vmem:[#allocation95_spill] sm:$0xff] }
 0x146   : > { %v2737_v48 = vadd.f32 %v2617_v59, %v2405_v28  ;;  %v2326_v58 = vadd.f32 %v2192_v42, %v1962_v41  ;;  %v1352_v0 = vrot.slane %v1194_v27, 2  ;;  %v2021_v49 = vmul.f32 %v3980_v18, %v722_v46 }
 0x147   : > { %v2949_v6 = vsel %vm1311_vm2, %v6658_v17, %v2948_v34  ;;  %v6660_v50 = vrot.slane %v6659_v55, 1  ;;  %v1830_v11 = vrot.slane %v1657_v7, 1  ;;  %v2463_v53 = vmul.f32 %v3959_v15, %v722_v46 }
 0x148   : > { %v3069_v37 = vadd.f32 %v2949_v6, %v2737_v48  ;;  %v2406_v16 = vadd.f32 %v6661_v54, %v2326_v58  ;;  %v6664_v62 = vrot.slane %v6663_v60, 2  ;;  %v2194_v32 = vrot.slane %v2021_v49, 2  ;;  %v6672_v58 = vld [vmem:[#allocation102_spill] sm:$0xff] }
 0x149   : > { %v1024_v23 = vsel %vm982_vm1, %v6660_v50, %v1023_v5  ;;  %v6666_v44 = vrot.slane %v6665_v31, 1  ;;  %v2619_v3 = vrot.slane %v2463_v53, 1  ;;  %v2795_v24 = vmul.f32 %v3961_v19, %v722_v46  ;;  %v6670_v5 = vld [vmem:[#allocation41_spill] sm:$0xff]  ;;  %v6674_v50 = vld [vmem:[#allocation106_spill] sm:$0xff] }
 0x14a   : > { %v1140_v22 = vadd.f32 %v1024_v23, %v6662_v36  ;;  %v1353_v28 = vsel %vm1311_vm2, %v6664_v62, %v1352_v0  ;;  %v3109_v9 = vpack.c.bf16 %v3069_v37, %v3069_v37  ;;  %v6668_v30 = vrot.slane %v6667_v38, 2 }
 0x14b   : > { %v1831_v61 = vsel %vm982_vm1, %v6666_v44, %v1830_v11  ;;  %v867_v42 = vmul.f32 %v3953_v8, %v727_v13  ;;  %v6669_v43 = vrot.slane %v4557_v51, 1  ;;  %v2951_v10 = vrot.slane %v2795_v24, 2  ;;  %v737_v11 = vpop.permute.xlu1 %736 }
 0x14c   : > { %v5133_v52 = vadd.f32 %v1353_v28, %v1140_v22  ;;  %v1963_v25 = vadd.f32 %v1831_v61, %v1574_v29  ;;  %v2195_v2 = vsel %vm1311_vm2, %v6668_v30, %v2194_v32  ;;  %3150 = vst.msk [vmem:[%s4845_s4 + $0x2c] sm:$0xf] %vm3138_vm3, %v3109_v9  ;;  %v5145_v59 = vmul.f32 %v3957_v14, %v727_v13  ;;  %v732_v29 = vpop.permute.xlu0 %731  ;;  %v6677_v9 = vld [vmem:[#allocation105_spill] sm:$0xff] }
 0x14d   : > { %v2620_v41 = vsel %vm982_vm1, %v6669_v43, %v2619_v3  ;;  %v5148_v46 = vmul.f32 %v3969_v47, %v727_v13  ;;  %v1026_v1 = vrot.slane %v867_v42, 1  ;;  %v6671_v7 = vrot.slane %v6670_v5, 1  ;;  %v6683_v5 = vld [vmem:[#allocation48_spill] sm:$0xff] }
 0x14e   : > { %v2327_v27 = vadd.f32 %v2195_v2, %v1963_v25  ;;  %v2738_v48 = vadd.f32 %v2620_v41, %v2406_v16  ;;  %v6673_v17 = vrot.slane %v6672_v58, 2  ;;  %v5162_v0 = vmul.f32 %v3980_v18, %v727_v13  ;;  %v6679_v2 = vld [vmem:[#allocation107_spill] sm:$0xff]  ;;  %v6681_v41 = vld [vmem:[#allocation45_spill] sm:$0xff]  ;;  %v6684_v58 = vld [vmem:[#allocation46_spill] sm:$0xff] }
 0x14f   : > { %v5156_v51 = vsel %vm982_vm1, %v6671_v7, %v1809_v21  ;;  %v2465_v49 = vmul.f32 %v3959_v15, %v727_v13  ;;  %v1833_v26 = vrot.slane %v5148_v46, 1  ;;  %v6675_v21 = vld [vmem:[#allocation103_spill] sm:$0xff]  ;;  %v2797_v36 = vmul.f32 %v3961_v19, %v727_v13  ;;  %v6732_v46 = vld [vmem:[#allocation144_spill] sm:$0xff] }
 0x150   : > { %v2952_v6 = vsel %vm1311_vm2, %v6673_v17, %v2951_v10  ;;  %v2407_v23 = vadd.f32 %v6674_v50, %v2327_v27  ;;  %v6676_v53 = vrot.slane %v6675_v21, 1  ;;  %v869_v22 = vmul.f32 %v3953_v8, %v732_v29 }
 0x151   : > { %v3070_v37 = vadd.f32 %v2952_v6, %v2738_v48  ;;  %v2622_v16 = vrot.slane %v2465_v49, 1  ;;  %v1198_v62 = vmul.f32 %v3957_v14, %v732_v29  ;;  %v1663_v28 = vmul.f32 %v3969_v47, %v732_v29  ;;  %v6686_v49 = vld [vmem:[#allocation49_spill] sm:$0xff] }
 0x152   : > { %v5171_v54 = vsel %vm982_vm1, %v6676_v53, %v1026_v1  ;;  %v2027_v32 = vmul.f32 %v3980_v18, %v732_v29  ;;  %v6678_v31 = vrot.slane %v6677_v9, 1  ;;  %v2954_v61 = vrot.slane %v2797_v36, 2  ;;  %v6689_v53 = vld [vmem:[#allocation50_spill] sm:$0xff] }
 0x153   : > { %v3110_v60 = vpack.c.bf16 %v3070_v37, %v3070_v37  ;;  %v1029_v3 = vrot.slane %v869_v22, 1  ;;  %v871_v24 = vmul.f32 %v3953_v8, %v737_v11  ;;  %v1358_v25 = vrot.slane %v1198_v62, 2  ;;  %v6691_v22 = vld [vmem:[#allocation112_spill] sm:$0xff] }
 0x154   : > { %v2623_v44 = vsel %vm982_vm1, %v6678_v31, %v2622_v16  ;;  %v1839_v38 = vrot.slane %v1663_v28, 1  ;;  %v2203_v30 = vrot.slane %v2027_v32, 2  ;;  %v6680_v42 = vrot.slane %v6679_v2, 2  ;;  %v6693_v31 = vld [vmem:[#allocation116_spill] sm:$0xff] }
 0x155   : > { %3151 = vst.msk [vmem:[%s4845_s4 + $0x30] sm:$0xf] %vm3138_vm3, %v3110_v60  ;;  %v2739_v13 = vadd.f32 %v2623_v44, %v2407_v23  ;;  %v6682_v10 = vrot.slane %v6681_v41, 1  ;;  %v1032_v48 = vrot.slane %v871_v24, 1  ;;  %v1200_v1 = vmul.f32 %v3957_v14, %v737_v11  ;;  %v6688_v23 = vld [vmem:[#allocation110_spill] sm:$0xff] }
 0x156   : > { %v2955_v43 = vsel %vm1311_vm2, %v6680_v42, %v2954_v61  ;;  %v6685_v17 = vrot.slane %v6684_v58, 2  ;;  %v6687_v37 = vrot.slane %v6686_v49, 1  ;;  %v6690_v16 = vrot.slane %v6689_v53, 2  ;;  %v6696_v42 = vld [vmem:[#allocation108_spill] sm:$0xff]  ;;  %v6698_v58 = vld [vmem:[#allocation121_spill] sm:$0xff]  ;;  %v6701_v53 = vld [vmem:[#allocation122_spill] sm:$0xff] }
 0x157   : > { %v1030_v27 = vsel %vm982_vm1, %v6682_v10, %v1029_v3  ;;  %v3071_v29 = vadd.f32 %v2955_v43, %v2739_v13  ;;  %v6692_v60 = vrot.slane %v6691_v22, 1  ;;  %v1361_v28 = vrot.slane %v1200_v1, 2  ;;  %v742_v3 = vpop.permute.xlu0 %741  ;;  %v6694_v13 = vld [vmem:[#allocation113_spill] sm:$0xff] }
 0x158   : > { %v1142_v7 = vadd.f32 %v1030_v27, %v6683_v5  ;;  %v1359_v6 = vsel %vm1311_vm2, %v6685_v17, %v1358_v25  ;;  %v1840_v50 = vsel %vm982_vm1, %v6687_v37, %v1839_v38  ;;  %v2204_v36 = vsel %vm1311_vm2, %v6690_v16, %v2203_v30  ;;  %v6700_v37 = vld [vmem:[#allocation130_spill] sm:$0xff] }
 0x159   : > { %v1966_v21 = vadd.f32 %v1840_v50, %v6688_v23  ;;  %v1033_v62 = vsel %vm982_vm1, %v6692_v60, %v1032_v48  ;;  %v3111_v32 = vpack.c.bf16 %v3071_v29, %v3071_v29  ;;  %v1665_v61 = vmul.f32 %v3969_v47, %v737_v11  ;;  %v6697_v48 = vld [vmem:[#allocation111_spill] sm:$0xff] }
 0x15a   : > { %v1471_v9 = vadd.f32 %v1359_v6, %v1142_v7  ;;  %v1143_v44 = vadd.f32 %v1033_v62, %v6693_v31  ;;  %v6695_v25 = vrot.slane %v6694_v13, 2  ;;  %v2029_v2 = vmul.f32 %v3980_v18, %v737_v11  ;;  %v6707_v13 = vld [vmem:[#allocation127_spill] sm:$0xff] }
 0x15b   : > { %v2330_v24 = vadd.f32 %v2204_v36, %v1966_v21  ;;  %v2469_v30 = vmul.f32 %v3959_v15, %v737_v11  ;;  %3152 = vst.msk [vmem:[%s4845_s4 + $0x34] sm:$0xf] %vm3138_vm3, %v3111_v32  ;;  %v1842_v10 = vrot.slane %v1665_v61, 1  ;;  %v2801_v27 = vmul.f32 %v3961_v19, %v737_v11  ;;  %v6703_v36 = vld [vmem:[#allocation125_spill] sm:$0xff]  ;;  %v6705_v32 = vld [vmem:[#allocation126_spill] sm:$0xff] }
 0x15c   : > { %v1362_v38 = vsel %vm1311_vm2, %v6695_v25, %v1361_v28  ;;  %v1578_v43 = vadd.f32 %v6696_v42, %v1471_v9  ;;  %v2206_v29 = vrot.slane %v2029_v2, 2  ;;  %v873_v7 = vmul.f32 %v3953_v8, %v742_v3  ;;  %v747_v42 = vpop.permute.xlu1 %746 }
 0x15d   : > { %v1472_v41 = vadd.f32 %v1362_v38, %v1143_v44  ;;  %v2410_v1 = vadd.f32 %v6697_v48, %v2330_v24  ;;  %v2628_v5 = vrot.slane %v2469_v30, 1  ;;  %v6699_v17 = vrot.slane %v6698_v58, 1 }
 0x15e   : > { %v2960_v49 = vrot.slane %v2801_v27, 2  ;;  %v1202_v23 = vmul.f32 %v3957_v14, %v742_v3  ;;  %v6702_v16 = vrot.slane %v6701_v53, 2  ;;  %v6704_v22 = vrot.slane %v6703_v36, 1  ;;  %v6710_v27 = vld [vmem:[#allocation129_spill] sm:$0xff]  ;;  %v6715_v36 = vld [vmem:[#allocation132_spill] sm:$0xff] }
 0x15f   : > { %v1843_v6 = vsel %vm982_vm1, %v6699_v17, %v1842_v10  ;;  %v1579_v50 = vadd.f32 %v6700_v37, %v1472_v41  ;;  %v1035_v62 = vrot.slane %v873_v7, 1  ;;  %v6706_v9 = vrot.slane %v6705_v32, 2  ;;  %v6709_v41 = vld [vmem:[#allocation128_spill] sm:$0xff] }
 0x160   : > { %v1967_v21 = vadd.f32 %v1843_v6, %v1578_v43  ;;  %v2207_v11 = vsel %vm1311_vm2, %v6702_v16, %v2206_v29  ;;  %v2629_v60 = vsel %vm982_vm1, %v6704_v22, %v2628_v5  ;;  %v1364_v44 = vrot.slane %v1202_v23, 2  ;;  %v6712_v5 = vld [vmem:[#allocation135_spill] sm:$0xff] }
 0x161   : > { %v2742_v28 = vadd.f32 %v2629_v60, %v2410_v1  ;;  %v2961_v31 = vsel %vm1311_vm2, %v6706_v9, %v2960_v49  ;;  %v1667_v61 = vmul.f32 %v3969_v47, %v742_v3  ;;  %v6708_v25 = vrot.slane %v6707_v13, 1  ;;  %v6713_v23 = vld [vmem:[#allocation131_spill] sm:$0xff] }
 0x162   : > { %v2331_v24 = vadd.f32 %v2207_v11, %v1967_v21  ;;  %v2031_v2 = vmul.f32 %v3980_v18, %v742_v3  ;;  %v2471_v30 = vmul.f32 %v3959_v15, %v742_v3  ;;  %v6711_v48 = vrot.slane %v6710_v27, 2 }
 0x163   : > { %v1036_v38 = vsel %vm982_vm1, %v6708_v25, %v1035_v62  ;;  %v3074_v43 = vadd.f32 %v2961_v31, %v2742_v28  ;;  %v1845_v29 = vrot.slane %v1667_v61, 1  ;;  %v2803_v6 = vmul.f32 %v3961_v19, %v742_v3  ;;  %v6717_v62 = vld [vmem:[#allocation136_spill] sm:$0xff]  ;;  %v6719_v61 = vld [vmem:[#allocation141_spill] sm:$0xff] }
 0x164   : > { %v1144_v10 = vadd.f32 %v1036_v38, %v6709_v41  ;;  %v1365_v1 = vsel %vm1311_vm2, %v6711_v48, %v1364_v44  ;;  %v2411_v7 = vadd.f32 %v6712_v5, %v2331_v24  ;;  %v2209_v58 = vrot.slane %v2031_v2, 2  ;;  %v6720_v25 = vld [vmem:[#allocation137_spill] sm:$0xff]  ;;  %v6722_v41 = vld [vmem:[#allocation139_spill] sm:$0xff] }
 0x165   : > { %v2631_v17 = vrot.slane %v2471_v30, 1  ;;  %v3114_v49 = vpack.c.bf16 %v3074_v43, %v3074_v43  ;;  %v6714_v21 = vrot.slane %v6713_v23, 1  ;;  %v875_v16 = vmul.f32 %v3953_v8, %v747_v42 }
 0x166   : > { %v1473_v37 = vadd.f32 %v1365_v1, %v1144_v10  ;;  %v6716_v22 = vrot.slane %v6715_v36, 2  ;;  %v6718_v28 = vrot.slane %v6717_v62, 1  ;;  %v2963_v9 = vrot.slane %v2803_v6, 2 }
 0x167   : > { %v1846_v53 = vsel %vm982_vm1, %v6714_v21, %v1845_v29  ;;  %3155 = vst.msk [vmem:[%s4845_s4 + $0x40] sm:$0xf] %vm3138_vm3, %v3114_v49  ;;  %v1038_v31 = vrot.slane %v875_v16, 1  ;;  %v1204_v44 = vmul.f32 %v3957_v14, %v747_v42  ;;  %v1669_v2 = vmul.f32 %v3969_v47, %v747_v42  ;;  %v6724_v29 = vld [vmem:[#allocation138_spill] sm:$0xff] }
 0x168   : > { %v1968_v11 = vadd.f32 %v1846_v53, %v1579_v50  ;;  %v2210_v60 = vsel %vm1311_vm2, %v6716_v22, %v2209_v58  ;;  %v2632_v32 = vsel %vm982_vm1, %v6718_v28, %v2631_v17  ;;  %v1580_v24 = vadd.f32 %v6719_v61, %v1473_v37  ;;  %v6725_v17 = vld [vmem:[#allocation143_spill] sm:$0xff]  ;;  %v6726_v37 = vld [vmem:[#allocation140_spill] sm:$0xff]  ;;  %v752_v61 = vpop.permute.xlu0 %751 }
 0x169   : > { %v2743_v3 = vadd.f32 %v2632_v32, %v2411_v7  ;;  %v6721_v50 = vrot.slane %v6720_v25, 2  ;;  %v2033_v30 = vmul.f32 %v3980_v18, %v747_v42  ;;  %v6723_v10 = vrot.slane %v6722_v41, 1  ;;  %v6734_v25 = vld [vmem:[#allocation148_spill] sm:$0xff] }
 0x16a   : > { %v2332_v13 = vadd.f32 %v2210_v60, %v1968_v11  ;;  %v1367_v48 = vrot.slane %v1204_v44, 2  ;;  %v2473_v1 = vmul.f32 %v3959_v15, %v747_v42  ;;  %v1848_v7 = vrot.slane %v1669_v2, 1  ;;  %v6728_v11 = vld [vmem:[#allocation104_spill] sm:$0xff] }
 0x16b   : > { %v2964_v38 = vsel %vm1311_vm2, %v6721_v50, %v2963_v9  ;;  %v1039_v27 = vsel %vm982_vm1, %v6723_v10, %v1038_v31  ;;  %v2212_v58 = vrot.slane %v2033_v30, 2  ;;  %v6727_v23 = vrot.slane %v6726_v37, 2 }
 0x16c   : > { %v3075_v43 = vadd.f32 %v2964_v38, %v2743_v3  ;;  %v1145_v5 = vadd.f32 %v1039_v27, %v6724_v29  ;;  %v2412_v6 = vadd.f32 %v6725_v17, %v2332_v13  ;;  %v2634_v53 = vrot.slane %v2473_v1, 1 }
 0x16d   : > { %v1368_v21 = vsel %vm1311_vm2, %v6727_v23, %v1367_v48  ;;  %v2805_v16 = vmul.f32 %v3961_v19, %v747_v42  ;;  %v6729_v36 = vrot.slane %v6728_v11, 1  ;;  %v6730_v28 = vrot.slane %v4733_v45, 1 }
 0x16e   : > { %v3115_v49 = vpack.c.bf16 %v3075_v43, %v3075_v43  ;;  %v1474_v62 = vadd.f32 %v1368_v21, %v1145_v5  ;;  %v6731_v3 = vrot.slane %v4743_v20, 2  ;;  %v6733_v31 = vrot.slane %v6732_v46, 1  ;;  %v6737_v43 = vld [vmem:[#allocation6_spill] sm:$0xff] }
 0x16f   : > { %v5278_v22 = vsel %vm982_vm1, %v6729_v36, %v1833_v26  ;;  %v1849_v32 = vsel %vm982_vm1, %v6730_v28, %v1848_v7  ;;  %v2966_v26 = vrot.slane %v2805_v16, 2  ;;  %v1369_v50 = vrot.slane %v6734_v25, 2  ;;  %v757_v16 = vpop.permute.xlu1 %756 }
 0x170   : > { %3156 = vst.msk [vmem:[%s4845_s4 + $0x44] sm:$0xf] %vm3138_vm3, %v3115_v49  ;;  %v1969_v9 = vadd.f32 %v1849_v32, %v1580_v24  ;;  %v2213_v42 = vsel %vm1311_vm2, %v6731_v3, %v2212_v58  ;;  %v2635_v44 = vsel %vm982_vm1, %v6733_v31, %v2634_v53  ;;  %v1850_v45 = vrot.slane %v4961_v4, 1  ;;  %v6735_v24 = vld [vmem:[#allocation145_spill] sm:$0xff]  ;;  %v6741_v3 = vld [vmem:[#allocation146_spill] sm:$0xff] }
 0x171   : > { %v2744_v13 = vadd.f32 %v2635_v44, %v2412_v6  ;;  %v2034_v38 = vmul.f32 %v3980_v18, %v4373_v12  ;;  %v6736_v30 = vrot.slane %v6735_v24, 2  ;;  %v2376_v41 = vmul.f32 %v6737_v43, %v4373_v12  ;;  %v6740_v32 = vld [vmem:[#allocation61_spill] sm:$0xff] }
 0x172   : > { %v2333_v2 = vadd.f32 %v2213_v42, %v1969_v9  ;;  %v2474_v10 = vmul.f32 %v3959_v15, %v4373_v12  ;;  %v2806_v48 = vmul.f32 %v3961_v19, %v4373_v12  ;;  %v877_v4 = vmul.f32 %v3953_v8, %v752_v61 }
 0x173   : > { %v2967_v20 = vsel %vm1311_vm2, %v6736_v30, %v2966_v26  ;;  %v1206_v1 = vmul.f32 %v3957_v14, %v752_v61  ;;  %v1581_v29 = vadd.f32 %v4951_v56, %v1474_v62  ;;  %v2214_v5 = vrot.slane %v2034_v38, 2  ;;  %v6738_v56 = vld [vmem:[#allocation147_spill] sm:$0xff] }
 0x174   : > { %v3076_v27 = vadd.f32 %v2967_v20, %v2744_v13  ;;  %v2413_v7 = vadd.f32 %v2376_v41, %v2333_v2  ;;  %v1671_v58 = vmul.f32 %v3969_v47, %v752_v61  ;;  %v1041_v6 = vrot.slane %v877_v4, 1  ;;  %v6742_v13 = vld [vmem:[#allocation5_spill] sm:$0xff] }
 0x175   : > { %v1370_v49 = vrot.slane %v1206_v1, 2  ;;  %v2035_v37 = vmul.f32 %v3980_v18, %v752_v61  ;;  %v2636_v23 = vrot.slane %v2474_v10, 1  ;;  %v2475_v12 = vmul.f32 %v3959_v15, %v752_v61 }
 0x176   : > { %v3116_v17 = vpack.c.bf16 %v3076_v27, %v3076_v27  ;;  %v1851_v21 = vrot.slane %v1671_v58, 1  ;;  %v2807_v53 = vmul.f32 %v3961_v19, %v752_v61  ;;  %v2968_v11 = vrot.slane %v2806_v48, 2 }
 0x177   : > { %v6739_v36 = vrot.slane %v6738_v56, 1  ;;  %v2215_v28 = vrot.slane %v2035_v37, 2  ;;  %v878_v9 = vmul.f32 %v3953_v8, %v6740_v32  ;;  %v2637_v31 = vrot.slane %v2475_v12, 1 }
 0x178   : > { %3157 = vst.msk [vmem:[%s4845_s4 + $0x48] sm:$0xf] %vm3138_vm3, %v3116_v17  ;;  %v1852_v46 = vsel %vm982_vm1, %v1850_v45, %v1851_v21  ;;  %v2969_v44 = vrot.slane %v2807_v53, 2  ;;  %v1371_v26 = vsel %vm1311_vm2, %v1369_v50, %v1370_v49  ;;  %v602_v25 = vmul.f32 %v6742_v13, %v6740_v32 }
 0x179   : > { %v1042_v62 = vsel %vm982_vm1, %v6739_v36, %v1041_v6  ;;  %v1970_v61 = vadd.f32 %v1852_v46, %v1581_v29  ;;  %v879_v38 = vmul.f32 %v3953_v8, %v757_v16  ;;  %v2216_v24 = vsel %vm1311_vm2, %v2214_v5, %v2215_v28 }
 0x17a   : > { %v1146_v42 = vadd.f32 %v1042_v62, %v6741_v3  ;;  %v2638_v30 = vsel %vm982_vm1, %v2636_v23, %v2637_v31  ;;  %v1043_v20 = vrot.slane %v878_v9, 1  ;;  %v1207_v45 = vmul.f32 %v3957_v14, %v6740_v32 }
 0x17b   : > { %v2745_v41 = vadd.f32 %v2638_v30, %v2413_v7  ;;  %v1044_v10 = vrot.slane %v879_v38, 1  ;;  %v1208_v27 = vmul.f32 %v3957_v14, %v757_v16  ;;  %v2970_v50 = vsel %vm1311_vm2, %v2968_v11, %v2969_v44  ;;  %v762_v30 = vpop.permute.xlu0 %761 }
 0x17c   : > { %v1475_v2 = vadd.f32 %v1371_v26, %v1146_v42  ;;  %v1542_v48 = vmul.f32 %v3967_v35, %v6740_v32  ;;  %v1672_v4 = vmul.f32 %v3969_v47, %v6740_v32  ;;  %v1673_v1 = vmul.f32 %v3969_v47, %v757_v16  ;;  %v6743_v26 = vld [vmem:[#allocation70_spill] sm:$0xff] }
 0x17d   : > { %v2334_v29 = vadd.f32 %v2216_v24, %v1970_v61  ;;  %v3077_v5 = vadd.f32 %v2970_v50, %v2745_v41  ;;  %v1045_v7 = vsel %vm982_vm1, %v1043_v20, %v1044_v10  ;;  %v2036_v58 = vmul.f32 %v3980_v18, %v6740_v32 }
 0x17e   : > { %v1373_v17 = vrot.slane %v1208_v27, 2  ;;  %v1582_v6 = vadd.f32 %v1542_v48, %v1475_v2  ;;  %v1853_v49 = vrot.slane %v1672_v4, 1  ;;  %v1854_v37 = vrot.slane %v1673_v1, 1 }
 0x17f   : > { %v3117_v23 = vpack.c.bf16 %v3077_v5, %v3077_v5  ;;  %v1147_v21 = vadd.f32 %v1045_v7, %v602_v25  ;;  %v1372_v12 = vrot.slane %v1207_v45, 2  ;;  %v2037_v53 = vmul.f32 %v3980_v18, %v757_v16 }
 0x180   : > { %v1855_v11 = vsel %vm982_vm1, %v1853_v49, %v1854_v37  ;;  %v2217_v56 = vrot.slane %v2036_v58, 2  ;;  %v2377_v36 = vmul.f32 %v6737_v43, %v6740_v32  ;;  %v2476_v62 = vmul.f32 %v3959_v15, %v6740_v32 }
 0x181   : > { %3158 = vst.msk [vmem:[%s4845_s4 + $0x4c] sm:$0xf] %vm3138_vm3, %v3117_v23  ;;  %v1971_v28 = vadd.f32 %v1855_v11, %v1582_v6  ;;  %v2218_v9 = vrot.slane %v2037_v53, 2  ;;  %v2477_v3 = vmul.f32 %v3959_v15, %v757_v16  ;;  %v2808_v42 = vmul.f32 %v3961_v19, %v6740_v32 }
 0x182   : > { %v1374_v46 = vsel %vm1311_vm2, %v1372_v12, %v1373_v17  ;;  %v2414_v31 = vadd.f32 %v2377_v36, %v2334_v29  ;;  %v2809_v44 = vmul.f32 %v3961_v19, %v757_v16  ;;  %v880_v61 = vmul.f32 %v3953_v8, %v6743_v26 }
 0x183   : > { %v2219_v25 = vsel %vm1311_vm2, %v2217_v56, %v2218_v9  ;;  %v2639_v38 = vrot.slane %v2476_v62, 1  ;;  %v2640_v2 = vrot.slane %v2477_v3, 1  ;;  %v5357_v24 = vmul.f32 %v3969_v47, %v6743_v26  ;;  %v6744_v9 = vld [vmem:[#allocation80_spill] sm:$0xff] }
 0x184   : > { %v5359_v20 = vadd.f32 %v1374_v46, %v1147_v21  ;;  %v2335_v32 = vadd.f32 %v2219_v25, %v1971_v28  ;;  %v2971_v41 = vrot.slane %v2808_v42, 2  ;;  %v2972_v10 = vrot.slane %v2809_v44, 2  ;;  %v767_v21 = vpop.permute.xlu1 %766 }
 0x185   : > { %v2641_v45 = vsel %vm982_vm1, %v2639_v38, %v2640_v2  ;;  %v2378_v16 = vmul.f32 %v6737_v43, %v6743_v26  ;;  %v2478_v27 = vmul.f32 %v3959_v15, %v6743_v26  ;;  %v2810_v50 = vmul.f32 %v3961_v19, %v6743_v26  ;;  %v6745_v38 = vld [vmem:[#allocation10_spill] sm:$0xff]  ;;  %v6746_v2 = vld [vmem:[#allocation76_spill] sm:$0xff] }
 0x186   : > { %v2746_v48 = vadd.f32 %v2641_v45, %v2414_v31  ;;  %v1046_v4 = vrot.slane %v880_v61, 1  ;;  %v1856_v1 = vrot.slane %v5357_v24, 1  ;;  %v881_v29 = vmul.f32 %v3953_v8, %v762_v30 }
 0x187   : > { %v2973_v5 = vsel %vm1311_vm2, %v2971_v41, %v2972_v10  ;;  %v2415_v7 = vadd.f32 %v2378_v16, %v2335_v32  ;;  %v5372_v58 = vmul.f32 %v3957_v14, %v762_v30  ;;  %v5375_v17 = vmul.f32 %v3969_v47, %v762_v30 }
 0x188   : > { %v3078_v6 = vadd.f32 %v2973_v5, %v2746_v48  ;;  %v2642_v49 = vrot.slane %v2478_v27, 1  ;;  %v1047_v37 = vrot.slane %v881_v29, 1  ;;  %v2479_v23 = vmul.f32 %v3959_v15, %v762_v30  ;;  %v6747_v5 = vld [vmem:[#allocation72_spill] sm:$0xff] }
 0x189   : > { %v2974_v12 = vrot.slane %v2810_v50, 2  ;;  %v5380_v11 = vmul.f32 %v3980_v18, %v762_v30  ;;  %v2811_v56 = vmul.f32 %v3961_v19, %v762_v30  ;;  %v1857_v62 = vrot.slane %v5375_v17, 1 }
 0x18a   : > { %v3118_v36 = vpack.c.bf16 %v3078_v6, %v3078_v6  ;;  %v2643_v28 = vrot.slane %v2479_v23, 1  ;;  %v1546_v3 = vmul.f32 %v3967_v35, %v6744_v9  ;;  %v5387_v42 = vsel %vm982_vm1, %v1046_v4, %v1047_v37  ;;  %v6749_v23 = vld [vmem:[#allocation75_spill] sm:$0xff] }
 0x18b   : > { %v2975_v46 = vrot.slane %v2811_v56, 2  ;;  %v2380_v31 = vmul.f32 %v6737_v43, %v6744_v9  ;;  %v883_v44 = vmul.f32 %v3953_v8, %v767_v21  ;;  %v1212_v25 = vmul.f32 %v3957_v14, %v767_v21 }
 0x18c   : > { %3159 = vst.msk [vmem:[%s4845_s4 + $0x50] sm:$0xf] %vm3138_vm3, %v3118_v36  ;;  %v2644_v61 = vsel %vm982_vm1, %v2642_v49, %v2643_v28  ;;  %v1585_v30 = vadd.f32 %v6746_v2, %v6745_v38  ;;  %v1679_v32 = vmul.f32 %v3969_v47, %v767_v21  ;;  %v2043_v16 = vmul.f32 %v3980_v18, %v767_v21  ;;  %v6752_v28 = vld [vmem:[#allocation77_spill] sm:$0xff] }
 0x18d   : > { %v2747_v41 = vadd.f32 %v2644_v61, %v2415_v7  ;;  %v2976_v10 = vsel %vm1311_vm2, %v2974_v12, %v2975_v46  ;;  %v1050_v45 = vrot.slane %v883_v44, 1  ;;  %v1379_v27 = vrot.slane %v1212_v25, 2  ;;  %v6750_v12 = vld [vmem:[#allocation73_spill] sm:$0xff]  ;;  %v772_v25 = vpop.permute.xlu0 %771 }
 0x18e   : > { %v1863_v50 = vrot.slane %v1679_v32, 1  ;;  %v605_v48 = vmul.f32 %v6742_v13, %v6744_v9  ;;  %v884_v4 = vmul.f32 %v3953_v8, %v6744_v9  ;;  %v6748_v6 = vrot.slane %v6747_v5, 1 }
 0x18f   : > { %v3079_v29 = vadd.f32 %v2976_v10, %v2747_v41  ;;  %v2227_v7 = vrot.slane %v2043_v16, 2  ;;  %v1213_v37 = vmul.f32 %v3957_v14, %v6744_v9  ;;  %v6751_v56 = vrot.slane %v6750_v12, 2  ;;  %v6754_v41 = vld [vmem:[#allocation78_spill] sm:$0xff] }
 0x190   : > { %v1051_v49 = vsel %vm982_vm1, %v6748_v6, %v1050_v45  ;;  %v6753_v46 = vrot.slane %v6752_v28, 1  ;;  %v1052_v61 = vrot.slane %v884_v4, 1  ;;  %v6755_v10 = vrot.slane %v6754_v41, 2 }
 0x191   : > { %v1149_v21 = vadd.f32 %v1051_v49, %v6749_v23  ;;  %v1380_v36 = vsel %vm1311_vm2, %v6751_v56, %v1379_v27  ;;  %v3119_v2 = vpack.c.bf16 %v3079_v29, %v3079_v29  ;;  %v1381_v16 = vrot.slane %v1213_v37, 2 }
 0x192   : > { %v1864_v44 = vsel %vm982_vm1, %v6753_v46, %v1863_v50  ;;  %v2228_v45 = vsel %vm1311_vm2, %v6755_v10, %v2227_v7  ;;  %v1680_v6 = vmul.f32 %v3969_v47, %v6744_v9  ;;  %v2044_v27 = vmul.f32 %v3980_v18, %v6744_v9  ;;  %v6756_v10 = vld [vmem:[#allocation81_spill] sm:$0xff] }
 0x193   : > { %v1974_v32 = vadd.f32 %v1864_v44, %v1585_v30  ;;  %v1478_v5 = vadd.f32 %v1380_v36, %v1149_v21  ;;  %v2482_v49 = vmul.f32 %v3959_v15, %v6744_v9  ;;  %3160 = vst.msk [vmem:[%s4845_s4 + $0x54] sm:$0xf] %vm3138_vm3, %v3119_v2  ;;  %v2814_v30 = vmul.f32 %v3961_v19, %v6744_v9 }
 0x194   : > { %v885_v4 = vmul.f32 %v3953_v8, %v772_v25  ;;  %v1214_v29 = vmul.f32 %v3957_v14, %v772_v25  ;;  %v1865_v37 = vrot.slane %v1680_v6, 1  ;;  %v2229_v23 = vrot.slane %v2044_v27, 2 }
 0x195   : > { %v2338_v50 = vadd.f32 %v2228_v45, %v1974_v32  ;;  %v1586_v7 = vadd.f32 %v1546_v3, %v1478_v5  ;;  %v2648_v21 = vrot.slane %v2482_v49, 1  ;;  %v2980_v56 = vrot.slane %v2814_v30, 2  ;;  %v777_v32 = vpop.permute.xlu1 %776 }
 0x196   : > { %v1053_v36 = vrot.slane %v885_v4, 1  ;;  %v1382_v28 = vrot.slane %v1214_v29, 2  ;;  %v1681_v46 = vmul.f32 %v3969_v47, %v772_v25  ;;  %v2045_v44 = vmul.f32 %v3980_v18, %v772_v25 }
 0x197   : > { %v2418_v12 = vadd.f32 %v2380_v31, %v2338_v50  ;;  %v2483_v2 = vmul.f32 %v3959_v15, %v772_v25  ;;  %v2815_v9 = vmul.f32 %v3961_v19, %v772_v25  ;;  %v606_v45 = vmul.f32 %v6742_v13, %v6756_v10 }
 0x198   : > { %v1054_v41 = vsel %vm982_vm1, %v1052_v61, %v1053_v36  ;;  %v1383_v3 = vsel %vm1311_vm2, %v1381_v16, %v1382_v28  ;;  %v886_v31 = vmul.f32 %v3953_v8, %v6756_v10  ;;  %v1866_v6 = vrot.slane %v1681_v46, 1 }
 0x199   : > { %v1150_v5 = vadd.f32 %v1054_v41, %v605_v48  ;;  %v2230_v27 = vrot.slane %v2045_v44, 2  ;;  %v2649_v49 = vrot.slane %v2483_v2, 1  ;;  %v2981_v50 = vrot.slane %v2815_v9, 2 }
 0x19a   : > { %v887_v30 = vmul.f32 %v3953_v8, %v777_v32  ;;  %v1055_v4 = vrot.slane %v886_v31, 1  ;;  %v1215_v25 = vmul.f32 %v3957_v14, %v6756_v10  ;;  %v1867_v16 = vsel %vm982_vm1, %v1865_v37, %v1866_v6 }
 0x19b   : > { %v1479_v61 = vadd.f32 %v1383_v3, %v1150_v5  ;;  %v2231_v29 = vsel %vm1311_vm2, %v2229_v23, %v2230_v27  ;;  %v2650_v36 = vsel %vm982_vm1, %v2648_v21, %v2649_v49  ;;  %v1975_v28 = vadd.f32 %v1867_v16, %v1586_v7 }
 0x19c   : > { %v2750_v53 = vadd.f32 %v2650_v36, %v2418_v12  ;;  %v2982_v48 = vsel %vm1311_vm2, %v2980_v56, %v2981_v50  ;;  %v1056_v46 = vrot.slane %v887_v30, 1  ;;  %v1216_v44 = vmul.f32 %v3957_v14, %v777_v32 }
 0x19d   : > { %v1384_v2 = vrot.slane %v1215_v25, 2  ;;  %v1547_v9 = vmul.f32 %v3967_v35, %v6756_v10  ;;  %v1682_v41 = vmul.f32 %v3969_v47, %v6756_v10  ;;  %v2339_v3 = vadd.f32 %v2231_v29, %v1975_v28 }
 0x19e   : > { %v3082_v37 = vadd.f32 %v2982_v48, %v2750_v53  ;;  %v1057_v23 = vsel %vm982_vm1, %v1055_v4, %v1056_v46  ;;  %v1683_v7 = vmul.f32 %v3969_v47, %v777_v32  ;;  %v1385_v12 = vrot.slane %v1216_v44, 2 }
 0x19f   : > { %v1151_v21 = vadd.f32 %v1057_v23, %v606_v45  ;;  %v1587_v56 = vadd.f32 %v1547_v9, %v1479_v61  ;;  %v1868_v31 = vrot.slane %v1682_v41, 1  ;;  %v2046_v27 = vmul.f32 %v3980_v18, %v6756_v10  ;;  %v6757_v9 = vld [vmem:[#allocation90_spill] sm:$0xff] }
 0x1a0   : > { %v3122_v5 = vpack.c.bf16 %v3082_v37, %v3082_v37  ;;  %v1869_v6 = vrot.slane %v1683_v7, 1  ;;  %v2047_v49 = vmul.f32 %v3980_v18, %v777_v32  ;;  %v1386_v50 = vsel %vm1311_vm2, %v1384_v2, %v1385_v12 }
 0x1a1   : > { %v2381_v53 = vmul.f32 %v6737_v43, %v6756_v10  ;;  %v2484_v30 = vmul.f32 %v3959_v15, %v6756_v10  ;;  %v2485_v45 = vmul.f32 %v3959_v15, %v777_v32  ;;  %v1480_v4 = vadd.f32 %v1386_v50, %v1151_v21 }
 0x1a2   : > { %3163 = vst.msk [vmem:[%s4845_s4 + $0x60] sm:$0xf] %vm3138_vm3, %v3122_v5  ;;  %v1870_v25 = vsel %vm982_vm1, %v1868_v31, %v1869_v6  ;;  %v2232_v61 = vrot.slane %v2046_v27, 2  ;;  %v2233_v16 = vrot.slane %v2047_v49, 2  ;;  %v2816_v44 = vmul.f32 %v3961_v19, %v6756_v10  ;;  %v782_v27 = vpop.permute.xlu0 %781 }
 0x1a3   : > { %v1976_v29 = vadd.f32 %v1870_v25, %v1587_v56  ;;  %v2419_v36 = vadd.f32 %v2381_v53, %v2339_v3  ;;  %v2651_v28 = vrot.slane %v2484_v30, 1  ;;  %v2652_v48 = vrot.slane %v2485_v45, 1 }
 0x1a4   : > { %v2234_v46 = vsel %vm1311_vm2, %v2232_v61, %v2233_v16  ;;  %v2817_v2 = vmul.f32 %v3961_v19, %v777_v32  ;;  %v607_v41 = vmul.f32 %v6742_v13, %v6757_v9  ;;  %v888_v7 = vmul.f32 %v3953_v8, %v6757_v9 }
 0x1a5   : > { %v2340_v37 = vadd.f32 %v2234_v46, %v1976_v29  ;;  %v2653_v23 = vsel %vm982_vm1, %v2651_v28, %v2652_v48  ;;  %v1217_v3 = vmul.f32 %v3957_v14, %v6757_v9  ;;  %v2983_v12 = vrot.slane %v2816_v44, 2 }
 0x1a6   : > { %v2751_v21 = vadd.f32 %v2653_v23, %v2419_v36  ;;  %v2984_v56 = vrot.slane %v2817_v2, 2  ;;  %v1548_v10 = vmul.f32 %v3967_v35, %v6757_v9  ;;  %v1058_v31 = vrot.slane %v888_v7, 1 }
 0x1a7   : > { %v1387_v32 = vrot.slane %v1217_v3, 2  ;;  %v1684_v5 = vmul.f32 %v3969_v47, %v6757_v9  ;;  %v2048_v6 = vmul.f32 %v3980_v18, %v6757_v9  ;;  %v2382_v53 = vmul.f32 %v6737_v43, %v6757_v9 }
 0x1a8   : > { %v2985_v49 = vsel %vm1311_vm2, %v2983_v12, %v2984_v56  ;;  %v1588_v50 = vadd.f32 %v1548_v10, %v1480_v4  ;;  %v2486_v30 = vmul.f32 %v3959_v15, %v6757_v9  ;;  %v2818_v16 = vmul.f32 %v3961_v19, %v6757_v9  ;;  %v787_v12 = vpop.permute.xlu1 %786  ;;  %v6758_v56 = vld [vmem:[#allocation91_spill] sm:$0xff] }
 0x1a9   : > { %v3083_v45 = vadd.f32 %v2985_v49, %v2751_v21  ;;  %v1871_v25 = vrot.slane %v1684_v5, 1  ;;  %v2235_v61 = vrot.slane %v2048_v6, 2  ;;  %v2420_v29 = vadd.f32 %v2382_v53, %v2340_v37 }
 0x1aa   : > { %v2654_v36 = vrot.slane %v2486_v30, 1  ;;  %v889_v28 = vmul.f32 %v3953_v8, %v782_v27  ;;  %v1218_v48 = vmul.f32 %v3957_v14, %v782_v27  ;;  %v2986_v46 = vrot.slane %v2818_v16, 2 }
 0x1ab   : > { %v3123_v4 = vpack.c.bf16 %v3083_v45, %v3083_v45  ;;  %v1685_v44 = vmul.f32 %v3969_v47, %v782_v27  ;;  %v2049_v2 = vmul.f32 %v3980_v18, %v782_v27  ;;  %v2487_v3 = vmul.f32 %v3959_v15, %v782_v27 }
 0x1ac   : > { %v1059_v23 = vrot.slane %v889_v28, 1  ;;  %v1388_v7 = vrot.slane %v1218_v48, 2  ;;  %v2819_v21 = vmul.f32 %v3961_v19, %v782_v27  ;;  %v608_v10 = vmul.f32 %v6742_v13, %v6758_v56 }
 0x1ad   : > { %3164 = vst.msk [vmem:[%s4845_s4 + $0x64] sm:$0xf] %vm3138_vm3, %v3123_v4  ;;  %v1872_v9 = vrot.slane %v1685_v44, 1  ;;  %v2236_v37 = vrot.slane %v2049_v2, 2  ;;  %v890_v5 = vmul.f32 %v3953_v8, %v6758_v56  ;;  %v2655_v53 = vrot.slane %v2487_v3, 1 }
 0x1ae   : > { %v1060_v6 = vsel %vm982_vm1, %v1058_v31, %v1059_v23  ;;  %v1389_v49 = vsel %vm1311_vm2, %v1387_v32, %v1388_v7  ;;  %v2987_v30 = vrot.slane %v2819_v21, 2  ;;  %v891_v28 = vmul.f32 %v3953_v8, %v787_v12 }
 0x1af   : > { %v1152_v45 = vadd.f32 %v1060_v6, %v607_v41  ;;  %v1873_v27 = vsel %vm982_vm1, %v1871_v25, %v1872_v9  ;;  %v2237_v16 = vsel %vm1311_vm2, %v2235_v61, %v2236_v37  ;;  %v2656_v4 = vsel %vm982_vm1, %v2654_v36, %v2655_v53 }
 0x1b0   : > { %v1977_v48 = vadd.f32 %v1873_v27, %v1588_v50  ;;  %v2988_v44 = vsel %vm1311_vm2, %v2986_v46, %v2987_v30  ;;  %v1061_v2 = vrot.slane %v890_v5, 1  ;;  %v2752_v55 = vadd.f32 %v2656_v4, %v2420_v29 }
 0x1b1   : > { %v1481_v60 = vadd.f32 %v1389_v49, %v1152_v45  ;;  %v1062_v31 = vrot.slane %v891_v28, 1  ;;  %v1219_v32 = vmul.f32 %v3957_v14, %v6758_v56  ;;  %v1220_v41 = vmul.f32 %v3957_v14, %v787_v12 }
 0x1b2   : > { %v2341_v23 = vadd.f32 %v2237_v16, %v1977_v48  ;;  %v1549_v25 = vmul.f32 %v3967_v35, %v6758_v56  ;;  %v1686_v50 = vmul.f32 %v3969_v47, %v6758_v56  ;;  %v3084_v61 = vadd.f32 %v2988_v44, %v2752_v55 }
 0x1b3   : > { %v1063_v36 = vsel %vm982_vm1, %v1061_v2, %v1062_v31  ;;  %v1390_v46 = vrot.slane %v1219_v32, 2  ;;  %v1687_v29 = vmul.f32 %v3969_v47, %v787_v12  ;;  %v1391_v3 = vrot.slane %v1220_v41, 2 }
 0x1b4   : > { %v1153_v7 = vadd.f32 %v1063_v36, %v608_v10  ;;  %v1589_v21 = vadd.f32 %v1549_v25, %v1481_v60  ;;  %v1874_v9 = vrot.slane %v1686_v50, 1  ;;  %v3124_v37 = vpack.c.bf16 %v3084_v61, %v3084_v61 }
 0x1b5   : > { %v1875_v5 = vrot.slane %v1687_v29, 1  ;;  %v2050_v6 = vmul.f32 %v3980_v18, %v6758_v56  ;;  %v2051_v49 = vmul.f32 %v3980_v18, %v787_v12  ;;  %v2383_v55 = vmul.f32 %v6737_v43, %v6758_v56 }
 0x1b6   : > { %v2488_v30 = vmul.f32 %v3959_v15, %v6758_v56  ;;  %v2489_v10 = vmul.f32 %v3959_v15, %v787_v12  ;;  %3165 = vst.msk [vmem:[%s4845_s4 + $0x68] sm:$0xf] %vm3138_vm3, %v3124_v37  ;;  %v1392_v60 = vsel %vm1311_vm2, %v1390_v46, %v1391_v3  ;;  %v5538_v2 = vsel %vm982_vm1, %v1856_v1, %v1857_v62 }
 0x1b7   : > { %v1876_v45 = vsel %vm982_vm1, %v1874_v9, %v1875_v5  ;;  %v2238_v27 = vrot.slane %v2050_v6, 2  ;;  %v2239_v16 = vrot.slane %v2051_v49, 2  ;;  %v2421_v48 = vadd.f32 %v2383_v55, %v2341_v23  ;;  %v6759_v23 = vld [vmem:[#allocation99_spill] sm:$0xff] }
 0x1b8   : > { %v1978_v28 = vadd.f32 %v1876_v45, %v1589_v21  ;;  %v2657_v4 = vrot.slane %v2488_v30, 1  ;;  %v2658_v44 = vrot.slane %v2489_v10, 1  ;;  %v1482_v31 = vadd.f32 %v1392_v60, %v1153_v7  ;;  %v792_v7 = vpop.permute.xlu0 %791 }
 0x1b9   : > { %v2820_v32 = vmul.f32 %v3961_v19, %v6758_v56  ;;  %v2821_v41 = vmul.f32 %v3961_v19, %v787_v12  ;;  %v2240_v25 = vsel %vm1311_vm2, %v2238_v27, %v2239_v16  ;;  %v892_v61 = vmul.f32 %v3953_v8, %v6759_v23  ;;  %v797_v27 = vpop.permute.xlu1 %796 }
 0x1ba   : > { %v2659_v50 = vsel %vm982_vm1, %v2657_v4, %v2658_v44  ;;  %v1221_v17 = vmul.f32 %v3957_v14, %v6759_v23  ;;  %v1550_v62 = vmul.f32 %v3967_v35, %v6759_v23  ;;  %v2342_v46 = vadd.f32 %v2240_v25, %v1978_v28 }
 0x1bb   : > { %v2753_v24 = vadd.f32 %v2659_v50, %v2421_v48  ;;  %v2989_v36 = vrot.slane %v2820_v32, 2  ;;  %v2990_v1 = vrot.slane %v2821_v41, 2  ;;  %v609_v12 = vmul.f32 %v6742_v13, %v6759_v23 }
 0x1bc   : > { %v1688_v56 = vmul.f32 %v3969_v47, %v6759_v23  ;;  %v2052_v29 = vmul.f32 %v3980_v18, %v6759_v23  ;;  %v1064_v21 = vrot.slane %v892_v61, 1  ;;  %v1393_v9 = vrot.slane %v1221_v17, 2 }
 0x1bd   : > { %v2991_v3 = vsel %vm1311_vm2, %v2989_v36, %v2990_v1  ;;  %v1590_v37 = vadd.f32 %v1550_v62, %v1482_v31  ;;  %v2384_v49 = vmul.f32 %v6737_v43, %v6759_v23  ;;  %v2490_v55 = vmul.f32 %v3959_v15, %v6759_v23 }
 0x1be   : > { %v3085_v5 = vadd.f32 %v2991_v3, %v2753_v24  ;;  %v1877_v6 = vrot.slane %v1688_v56, 1  ;;  %v2241_v30 = vrot.slane %v2052_v29, 2  ;;  %v2822_v10 = vmul.f32 %v3961_v19, %v6759_v23 }
 0x1bf   : > { %v893_v60 = vmul.f32 %v3953_v8, %v792_v7  ;;  %v1222_v45 = vmul.f32 %v3957_v14, %v792_v7  ;;  %v2422_v28 = vadd.f32 %v2384_v49, %v2342_v46  ;;  %v1689_v48 = vmul.f32 %v3969_v47, %v792_v7 }
 0x1c0   : > { %v3125_v16 = vpack.c.bf16 %v3085_v5, %v3085_v5  ;;  %v2053_v4 = vmul.f32 %v3980_v18, %v792_v7  ;;  %v2491_v32 = vmul.f32 %v3959_v15, %v792_v7  ;;  %v2823_v41 = vmul.f32 %v3961_v19, %v792_v7 }
 0x1c1   : > { %v1065_v44 = vrot.slane %v893_v60, 1  ;;  %v1394_v31 = vrot.slane %v1222_v45, 2  ;;  %v1878_v25 = vrot.slane %v1689_v48, 1  ;;  %v5573_v23 = vmul.f32 %v3953_v8, %v797_v27 }
 0x1c2   : > { %3166 = vst.msk [vmem:[%s4845_s4 + $0x6c] sm:$0xf] %vm3138_vm3, %v3125_v16  ;;  %v2242_v50 = vrot.slane %v2053_v4, 2  ;;  %v5576_v61 = vmul.f32 %v3957_v14, %v797_v27  ;;  %v2660_v17 = vrot.slane %v2490_v55, 1  ;;  %v2661_v36 = vrot.slane %v2491_v32, 1  ;;  %v802_v4 = vpop.permute.xlu0 %801 }
 0x1c3   : > { %v1066_v24 = vsel %vm982_vm1, %v1064_v21, %v1065_v44  ;;  %v2993_v1 = vrot.slane %v2823_v41, 2  ;;  %v2992_v62 = vrot.slane %v2822_v10, 2  ;;  %v1395_v56 = vsel %vm1311_vm2, %v1393_v9, %v1394_v31 }
 0x1c4   : > { %6760 = vst [vmem:[#allocation14_spill] sm:$0xff] %v5576_v61  ;;  %v1154_v46 = vadd.f32 %v1066_v24, %v609_v12  ;;  %v1879_v29 = vsel %vm982_vm1, %v1877_v6, %v1878_v25  ;;  %v2243_v3 = vsel %vm1311_vm2, %v2241_v30, %v2242_v50  ;;  %v2662_v5 = vsel %vm982_vm1, %v2660_v17, %v2661_v36  ;;  %v6761_v12 = vld [vmem:[#allocation100_spill] sm:$0xff]  ;;  %v6764_v17 = vld [vmem:[#allocation109_spill] sm:$0xff]  ;;  %v6765_v36 = vld [vmem:[#allocation118_spill] sm:$0xff] }
 0x1c5   : > { %v1979_v7 = vadd.f32 %v1879_v29, %v1590_v37  ;;  %v2754_v55 = vadd.f32 %v2662_v5, %v2422_v28  ;;  %v2994_v21 = vsel %vm1311_vm2, %v2992_v62, %v2993_v1  ;;  %v2385_v9 = vmul.f32 %v6737_v43, %v6761_v12 }
 0x1c6   : > { %v5584_v60 = vadd.f32 %v1395_v56, %v1154_v46  ;;  %v2492_v37 = vmul.f32 %v3959_v15, %v6761_v12  ;;  %v2493_v6 = vmul.f32 %v3959_v15, %v797_v27  ;;  %v5594_v16 = vmul.f32 %v3969_v47, %v797_v27 }
 0x1c7   : > { %v2343_v10 = vadd.f32 %v2243_v3, %v1979_v7  ;;  %v3086_v30 = vadd.f32 %v2994_v21, %v2754_v55  ;;  %v5597_v28 = vmul.f32 %v3980_v18, %v797_v27  ;;  %v2824_v48 = vmul.f32 %v3961_v19, %v6761_v12  ;;  %v807_v55 = vpop.permute.xlu1 %806 }
 0x1c8   : > { %6762 = vst [vmem:[#allocation18_spill] sm:$0xff] %v5594_v16  ;;  %v2663_v31 = vrot.slane %v2492_v37, 1  ;;  %v2664_v32 = vrot.slane %v2493_v6, 1  ;;  %v2825_v41 = vmul.f32 %v3961_v19, %v797_v27  ;;  %v1554_v24 = vmul.f32 %v3967_v35, %v6764_v17  ;;  %v6799_v16 = vld [vmem:[#allocation33_spill] sm:$0xff] }
 0x1c9   : > { %6763 = vst [vmem:[#allocation19_spill] sm:$0xff] %v5597_v28  ;;  %v2423_v44 = vadd.f32 %v2385_v9, %v2343_v10  ;;  %v3126_v25 = vpack.c.bf16 %v3086_v30, %v3086_v30  ;;  %v2995_v50 = vrot.slane %v2824_v48, 2  ;;  %v1593_v1 = vadd.f32 %v6765_v36, %v6745_v38  ;;  %v6768_v36 = vld [vmem:[#allocation117_spill] sm:$0xff]  ;;  %v6797_v28 = vld [vmem:[#allocation11_spill] sm:$0xff] }
 0x1ca   : > { %v2665_v62 = vsel %vm982_vm1, %v2663_v31, %v2664_v32  ;;  %v2996_v46 = vrot.slane %v2825_v41, 2  ;;  %v2387_v56 = vmul.f32 %v6737_v43, %v6764_v17  ;;  %v897_v29 = vmul.f32 %v3953_v8, %v802_v4 }
 0x1cb   : > { %3167 = vst.msk [vmem:[%s4845_s4 + $0x70] sm:$0xf] %vm3138_vm3, %v3126_v25  ;;  %v2755_v7 = vadd.f32 %v2665_v62, %v2423_v44  ;;  %v1226_v27 = vmul.f32 %v3957_v14, %v802_v4  ;;  %v1695_v3 = vmul.f32 %v3969_v47, %v802_v4  ;;  %v2059_v5 = vmul.f32 %v3980_v18, %v802_v4  ;;  %v6766_v44 = vld [vmem:[#allocation114_spill] sm:$0xff] }
 0x1cc   : > { %v2997_v38 = vsel %vm1311_vm2, %v2995_v50, %v2996_v46  ;;  %v1071_v21 = vrot.slane %v897_v29, 1  ;;  %v612_v10 = vmul.f32 %v6742_v13, %v6764_v17  ;;  %v898_v9 = vmul.f32 %v3953_v8, %v6764_v17  ;;  %v6769_v46 = vld [vmem:[#allocation115_spill] sm:$0xff] }
 0x1cd   : > { %v3087_v37 = vadd.f32 %v2997_v38, %v2755_v7  ;;  %v1400_v6 = vrot.slane %v1226_v27, 2  ;;  %v1887_v30 = vrot.slane %v1695_v3, 1  ;;  %v2251_v48 = vrot.slane %v2059_v5, 2  ;;  %v6771_v27 = vld [vmem:[#allocation119_spill] sm:$0xff] }
 0x1ce   : > { %v6767_v31 = vrot.slane %v6766_v44, 1  ;;  %v899_v4 = vmul.f32 %v3953_v8, %v807_v55  ;;  %v1073_v41 = vrot.slane %v898_v9, 1  ;;  %v1227_v25 = vmul.f32 %v3957_v14, %v6764_v17  ;;  %v6773_v44 = vld [vmem:[#allocation120_spill] sm:$0xff] }
 0x1cf   : > { %v3127_v50 = vpack.c.bf16 %v3087_v37, %v3087_v37  ;;  %v6770_v29 = vrot.slane %v6769_v46, 2  ;;  %v6772_v3 = vrot.slane %v6771_v27, 1  ;;  %v1228_v45 = vmul.f32 %v3957_v14, %v807_v55 }
 0x1d0   : > { %v1072_v32 = vsel %vm982_vm1, %v6767_v31, %v1071_v21  ;;  %v6774_v21 = vrot.slane %v6773_v44, 2  ;;  %v1074_v9 = vrot.slane %v899_v4, 1  ;;  %v6800_v61 = vrot.slane %v4957_v63, 2 }
 0x1d1   : > { %v1156_v62 = vadd.f32 %v1072_v32, %v6768_v36  ;;  %v1401_v7 = vsel %vm1311_vm2, %v6770_v29, %v1400_v6  ;;  %v1888_v5 = vsel %vm982_vm1, %v6772_v3, %v1887_v30  ;;  %3168 = vst.msk [vmem:[%s4845_s4 + $0x74] sm:$0xf] %vm3138_vm3, %v3127_v50  ;;  %v1402_v32 = vrot.slane %v1227_v25, 2 }
 0x1d2   : > { %v1982_v38 = vadd.f32 %v1888_v5, %v1593_v1  ;;  %v2252_v31 = vsel %vm1311_vm2, %v6774_v21, %v2251_v48  ;;  %v1696_v36 = vmul.f32 %v3969_v47, %v6764_v17  ;;  %v1697_v6 = vmul.f32 %v3969_v47, %v807_v55 }
 0x1d3   : > { %v1485_v37 = vadd.f32 %v1401_v7, %v1156_v62  ;;  %v1075_v30 = vsel %vm982_vm1, %v1073_v41, %v1074_v9  ;;  %v1403_v1 = vrot.slane %v1228_v45, 2  ;;  %v2060_v29 = vmul.f32 %v3980_v18, %v6764_v17  ;;  %v6775_v9 = vld [vmem:[#allocation123_spill] sm:$0xff] }
 0x1d4   : > { %v2346_v46 = vadd.f32 %v2252_v31, %v1982_v38  ;;  %v1157_v4 = vadd.f32 %v1075_v30, %v612_v10  ;;  %v1889_v27 = vrot.slane %v1696_v36, 1  ;;  %v1890_v3 = vrot.slane %v1697_v6, 1 }
 0x1d5   : > { %v1594_v48 = vadd.f32 %v1554_v24, %v1485_v37  ;;  %v1404_v50 = vsel %vm1311_vm2, %v1402_v32, %v1403_v1  ;;  %v2061_v25 = vmul.f32 %v3980_v18, %v807_v55  ;;  %v2253_v62 = vrot.slane %v2060_v29, 2 }
 0x1d6   : > { %v2426_v5 = vadd.f32 %v2387_v56, %v2346_v46  ;;  %v1486_v7 = vadd.f32 %v1404_v50, %v1157_v4  ;;  %v1891_v44 = vsel %vm982_vm1, %v1889_v27, %v1890_v3  ;;  %v2496_v41 = vmul.f32 %v3959_v15, %v6764_v17 }
 0x1d7   : > { %v2497_v45 = vmul.f32 %v3959_v15, %v807_v55  ;;  %v1983_v38 = vadd.f32 %v1891_v44, %v1594_v48  ;;  %v2254_v21 = vrot.slane %v2061_v25, 2  ;;  %v2828_v24 = vmul.f32 %v3961_v19, %v6764_v17  ;;  %v812_v48 = vpop.permute.xlu0 %811 }
 0x1d8   : > { %v2829_v56 = vmul.f32 %v3961_v19, %v807_v55  ;;  %v2669_v10 = vrot.slane %v2496_v41, 1  ;;  %v613_v37 = vmul.f32 %v6742_v13, %v6775_v9  ;;  %v900_v32 = vmul.f32 %v3953_v8, %v6775_v9 }
 0x1d9   : > { %v2670_v31 = vrot.slane %v2497_v45, 1  ;;  %v2255_v36 = vsel %vm1311_vm2, %v2253_v62, %v2254_v21  ;;  %v3001_v6 = vrot.slane %v2828_v24, 2  ;;  %v1229_v30 = vmul.f32 %v3957_v14, %v6775_v9 }
 0x1da   : > { %v3002_v46 = vrot.slane %v2829_v56, 2  ;;  %v2347_v1 = vadd.f32 %v2255_v36, %v1983_v38  ;;  %v1076_v29 = vrot.slane %v900_v32, 1  ;;  %v1555_v55 = vmul.f32 %v3967_v35, %v6775_v9 }
 0x1db   : > { %v2671_v17 = vsel %vm982_vm1, %v2669_v10, %v2670_v31  ;;  %v1405_v3 = vrot.slane %v1229_v30, 2  ;;  %v1698_v50 = vmul.f32 %v3969_v47, %v6775_v9  ;;  %v2062_v62 = vmul.f32 %v3980_v18, %v6775_v9 }
 0x1dc   : > { %v2758_v4 = vadd.f32 %v2671_v17, %v2426_v5  ;;  %v3003_v27 = vsel %vm1311_vm2, %v3001_v6, %v3002_v46  ;;  %v1595_v25 = vadd.f32 %v1555_v55, %v1486_v7  ;;  %v2388_v44 = vmul.f32 %v6737_v43, %v6775_v9 }
 0x1dd   : > { %v2498_v41 = vmul.f32 %v3959_v15, %v6775_v9  ;;  %v1892_v38 = vrot.slane %v1698_v50, 1  ;;  %v2830_v5 = vmul.f32 %v3961_v19, %v6775_v9  ;;  %v901_v21 = vmul.f32 %v3953_v8, %v812_v48  ;;  %v817_v9 = vpop.permute.xlu1 %816 }
 0x1de   : > { %v3090_v45 = vadd.f32 %v3003_v27, %v2758_v4  ;;  %v2256_v24 = vrot.slane %v2062_v62, 2  ;;  %v2427_v56 = vadd.f32 %v2388_v44, %v2347_v1  ;;  %v1230_v10 = vmul.f32 %v3957_v14, %v812_v48  ;;  %v6776_v27 = vld [vmem:[#allocation124_spill] sm:$0xff] }
 0x1df   : > { %v2672_v7 = vrot.slane %v2498_v41, 1  ;;  %v3004_v32 = vrot.slane %v2830_v5, 2  ;;  %v1077_v36 = vrot.slane %v901_v21, 1  ;;  %v1699_v6 = vmul.f32 %v3969_v47, %v812_v48 }
 0x1e0   : > { %v3130_v31 = vpack.c.bf16 %v3090_v45, %v3090_v45  ;;  %v1406_v46 = vrot.slane %v1230_v10, 2  ;;  %v2063_v30 = vmul.f32 %v3980_v18, %v812_v48  ;;  %v2499_v17 = vmul.f32 %v3959_v15, %v812_v48 }
 0x1e1   : > { %v2831_v55 = vmul.f32 %v3961_v19, %v812_v48  ;;  %v1078_v1 = vsel %vm982_vm1, %v1076_v29, %v1077_v36  ;;  %v1893_v4 = vrot.slane %v1699_v6, 1  ;;  %v614_v50 = vmul.f32 %v6742_v13, %v6776_v27 }
 0x1e2   : > { %3171 = vst.msk [vmem:[%s4845_s4 + $0x80] sm:$0xf] %vm3138_vm3, %v3130_v31  ;;  %v902_v62 = vmul.f32 %v3953_v8, %v6776_v27  ;;  %v1158_v44 = vadd.f32 %v1078_v1, %v613_v37  ;;  %v1407_v41 = vsel %vm1311_vm2, %v1405_v3, %v1406_v46  ;;  %v2257_v45 = vrot.slane %v2063_v30, 2 }
 0x1e3   : > { %v2673_v5 = vrot.slane %v2499_v17, 1  ;;  %v1894_v21 = vsel %vm982_vm1, %v1892_v38, %v1893_v4  ;;  %v3005_v48 = vrot.slane %v2831_v55, 2  ;;  %v903_v10 = vmul.f32 %v3953_v8, %v817_v9 }
 0x1e4   : > { %v1079_v31 = vrot.slane %v902_v62, 1  ;;  %v1487_v49 = vadd.f32 %v1407_v41, %v1158_v44  ;;  %v1984_v29 = vadd.f32 %v1894_v21, %v1595_v25  ;;  %v2258_v36 = vsel %vm1311_vm2, %v2256_v24, %v2257_v45 }
 0x1e5   : > { %v2674_v6 = vsel %vm982_vm1, %v2672_v7, %v2673_v5  ;;  %v3006_v34 = vsel %vm1311_vm2, %v3004_v32, %v3005_v48  ;;  %v1080_v37 = vrot.slane %v903_v10, 1  ;;  %v1231_v3 = vmul.f32 %v3957_v14, %v6776_v27 }
 0x1e6   : > { %v2759_v53 = vadd.f32 %v2674_v6, %v2427_v56  ;;  %v2348_v46 = vadd.f32 %v2258_v36, %v1984_v29  ;;  %v1232_v38 = vmul.f32 %v3957_v14, %v817_v9  ;;  %v1556_v30 = vmul.f32 %v3967_v35, %v6776_v27 }
 0x1e7   : > { %v1700_v25 = vmul.f32 %v3969_v47, %v6776_v27  ;;  %v1081_v24 = vsel %vm982_vm1, %v1079_v31, %v1080_v37  ;;  %v1408_v56 = vrot.slane %v1231_v3, 2  ;;  %v1701_v7 = vmul.f32 %v3969_v47, %v817_v9 }
 0x1e8   : > { %v3091_v17 = vadd.f32 %v3006_v34, %v2759_v53  ;;  %v1159_v32 = vadd.f32 %v1081_v24, %v614_v50  ;;  %v1409_v55 = vrot.slane %v1232_v38, 2  ;;  %v1596_v1 = vadd.f32 %v1556_v30, %v1487_v49 }
 0x1e9   : > { %v1895_v4 = vrot.slane %v1700_v25, 1  ;;  %v1896_v44 = vrot.slane %v1701_v7, 1  ;;  %v2064_v41 = vmul.f32 %v3980_v18, %v6776_v27  ;;  %v2065_v45 = vmul.f32 %v3980_v18, %v817_v9 }
 0x1ea   : > { %v3131_v62 = vpack.c.bf16 %v3091_v17, %v3091_v17  ;;  %v2389_v34 = vmul.f32 %v6737_v43, %v6776_v27  ;;  %v2500_v53 = vmul.f32 %v3959_v15, %v6776_v27  ;;  %v2501_v50 = vmul.f32 %v3959_v15, %v817_v9  ;;  %v6777_v17 = vld [vmem:[#allocation133_spill] sm:$0xff] }
 0x1eb   : > { %v1410_v49 = vsel %vm1311_vm2, %v1408_v56, %v1409_v55  ;;  %v1897_v21 = vsel %vm982_vm1, %v1895_v4, %v1896_v44  ;;  %v2259_v48 = vrot.slane %v2064_v41, 2  ;;  %v2260_v10 = vrot.slane %v2065_v45, 2  ;;  %v822_v44 = vpop.permute.xlu0 %821 }
 0x1ec   : > { %3172 = vst.msk [vmem:[%s4845_s4 + $0x84] sm:$0xf] %vm3138_vm3, %v3131_v62  ;;  %v1985_v31 = vadd.f32 %v1897_v21, %v1596_v1  ;;  %v2428_v29 = vadd.f32 %v2389_v34, %v2348_v46  ;;  %v2675_v36 = vrot.slane %v2500_v53, 1  ;;  %v2676_v6 = vrot.slane %v2501_v50, 1 }
 0x1ed   : > { %v1488_v37 = vadd.f32 %v1410_v49, %v1159_v32  ;;  %v2261_v3 = vsel %vm1311_vm2, %v2259_v48, %v2260_v10  ;;  %v2832_v38 = vmul.f32 %v3961_v19, %v6776_v27  ;;  %v2833_v30 = vmul.f32 %v3961_v19, %v817_v9 }
 0x1ee   : > { %v2677_v25 = vsel %vm982_vm1, %v2675_v36, %v2676_v6  ;;  %v615_v24 = vmul.f32 %v6742_v13, %v6777_v17  ;;  %v904_v56 = vmul.f32 %v3953_v8, %v6777_v17  ;;  %v1233_v46 = vmul.f32 %v3957_v14, %v6777_v17 }
 0x1ef   : > { %v2349_v7 = vadd.f32 %v2261_v3, %v1985_v31  ;;  %v2760_v32 = vadd.f32 %v2677_v25, %v2428_v29  ;;  %v3007_v55 = vrot.slane %v2832_v38, 2  ;;  %v3008_v1 = vrot.slane %v2833_v30, 2 }
 0x1f0   : > { %v1082_v4 = vrot.slane %v904_v56, 1  ;;  %v1557_v27 = vmul.f32 %v3967_v35, %v6777_v17  ;;  %v1702_v9 = vmul.f32 %v3969_v47, %v6777_v17  ;;  %v2066_v62 = vmul.f32 %v3980_v18, %v6777_v17 }
 0x1f1   : > { %v3009_v41 = vsel %vm1311_vm2, %v3007_v55, %v3008_v1  ;;  %v1411_v45 = vrot.slane %v1233_v46, 2  ;;  %v2390_v34 = vmul.f32 %v6737_v43, %v6777_v17  ;;  %v2502_v53 = vmul.f32 %v3959_v15, %v6777_v17  ;;  %v6778_v1 = vld [vmem:[#allocation134_spill] sm:$0xff] }
 0x1f2   : > { %v3092_v50 = vadd.f32 %v3009_v41, %v2760_v32  ;;  %v1597_v49 = vadd.f32 %v1557_v27, %v1488_v37  ;;  %v1898_v21 = vrot.slane %v1702_v9, 1  ;;  %v2834_v48 = vmul.f32 %v3961_v19, %v6777_v17  ;;  %v827_v32 = vpop.permute.xlu1 %826 }
 0x1f3   : > { %v2262_v10 = vrot.slane %v2066_v62, 2  ;;  %v2429_v31 = vadd.f32 %v2390_v34, %v2349_v7  ;;  %v905_v29 = vmul.f32 %v3953_v8, %v822_v44  ;;  %v1234_v36 = vmul.f32 %v3957_v14, %v822_v44 }
 0x1f4   : > { %v3132_v6 = vpack.c.bf16 %v3092_v50, %v3092_v50  ;;  %v2678_v3 = vrot.slane %v2502_v53, 1  ;;  %v1703_v38 = vmul.f32 %v3969_v47, %v822_v44  ;;  %v2067_v30 = vmul.f32 %v3980_v18, %v822_v44 }
 0x1f5   : > { %v1083_v25 = vrot.slane %v905_v29, 1  ;;  %v1412_v56 = vrot.slane %v1234_v36, 2  ;;  %v2503_v37 = vmul.f32 %v3959_v15, %v822_v44  ;;  %v2835_v46 = vmul.f32 %v3961_v19, %v822_v44 }
 0x1f6   : > { %3173 = vst.msk [vmem:[%s4845_s4 + $0x88] sm:$0xf] %vm3138_vm3, %v3132_v6  ;;  %v3010_v17 = vrot.slane %v2834_v48, 2  ;;  %v1899_v7 = vrot.slane %v1703_v38, 1  ;;  %v2263_v55 = vrot.slane %v2067_v30, 2  ;;  %v906_v27 = vmul.f32 %v3953_v8, %v6778_v1 }
 0x1f7   : > { %v1084_v9 = vsel %vm982_vm1, %v1082_v4, %v1083_v25  ;;  %v2679_v62 = vrot.slane %v2503_v37, 1  ;;  %v3011_v41 = vrot.slane %v2835_v46, 2  ;;  %v616_v34 = vmul.f32 %v6742_v13, %v6778_v1 }
 0x1f8   : > { %v1160_v53 = vadd.f32 %v1084_v9, %v615_v24  ;;  %v1413_v50 = vsel %vm1311_vm2, %v1411_v45, %v1412_v56  ;;  %v1900_v44 = vsel %vm982_vm1, %v1898_v21, %v1899_v7  ;;  %v907_v29 = vmul.f32 %v3953_v8, %v827_v32 }
 0x1f9   : > { %v1986_v48 = vadd.f32 %v1900_v44, %v1597_v49  ;;  %v2264_v36 = vsel %vm1311_vm2, %v2262_v10, %v2263_v55  ;;  %v2680_v6 = vsel %vm982_vm1, %v2678_v3, %v2679_v62  ;;  %v1085_v38 = vrot.slane %v906_v27, 1 }
 0x1fa   : > { %v1489_v30 = vadd.f32 %v1413_v50, %v1160_v53  ;;  %v2761_v4 = vadd.f32 %v2680_v6, %v2429_v31  ;;  %v1086_v25 = vrot.slane %v907_v29, 1  ;;  %v1235_v37 = vmul.f32 %v3957_v14, %v6778_v1 }
 0x1fb   : > { %v3012_v24 = vsel %vm1311_vm2, %v3010_v17, %v3011_v41  ;;  %v1236_v45 = vmul.f32 %v3957_v14, %v827_v32  ;;  %v1558_v21 = vmul.f32 %v3967_v35, %v6778_v1  ;;  %v1704_v49 = vmul.f32 %v3969_v47, %v6778_v1 }
 0x1fc   : > { %v2350_v10 = vadd.f32 %v2264_v36, %v1986_v48  ;;  %v3093_v3 = vadd.f32 %v3012_v24, %v2761_v4  ;;  %v1087_v56 = vsel %vm982_vm1, %v1085_v38, %v1086_v25  ;;  %v1705_v31 = vmul.f32 %v3969_v47, %v827_v32 }
 0x1fd   : > { %v1414_v46 = vrot.slane %v1235_v37, 2  ;;  %v1415_v7 = vrot.slane %v1236_v45, 2  ;;  %v1598_v55 = vadd.f32 %v1558_v21, %v1489_v30  ;;  %v1901_v27 = vrot.slane %v1704_v49, 1  ;;  %v832_v37 = vpop.permute.xlu0 %831  ;;  %v6779_v49 = vld [vmem:[#allocation142_spill] sm:$0xff] }
 0x1fe   : > { %v3133_v17 = vpack.c.bf16 %v3093_v3, %v3093_v3  ;;  %v1902_v9 = vrot.slane %v1705_v31, 1  ;;  %v2068_v62 = vmul.f32 %v3980_v18, %v6778_v1  ;;  %v2069_v41 = vmul.f32 %v3980_v18, %v827_v32 }
 0x1ff   : > { %v1161_v53 = vadd.f32 %v1087_v56, %v616_v34  ;;  %v2391_v50 = vmul.f32 %v6737_v43, %v6778_v1  ;;  %v2504_v44 = vmul.f32 %v3959_v15, %v6778_v1  ;;  %v2505_v29 = vmul.f32 %v3959_v15, %v827_v32 }
 0x200   : > { %3174 = vst.msk [vmem:[%s4845_s4 + $0x8c] sm:$0xf] %vm3138_vm3, %v3133_v17  ;;  %v1416_v48 = vsel %vm1311_vm2, %v1414_v46, %v1415_v7  ;;  %v1903_v36 = vsel %vm982_vm1, %v1901_v27, %v1902_v9  ;;  %v2265_v6 = vrot.slane %v2068_v62, 2  ;;  %v2266_v38 = vrot.slane %v2069_v41, 2  ;;  %v1495_v41 = vpop.permute.xlu1 %1494 }
 0x201   : > { %v1987_v30 = vadd.f32 %v1903_v36, %v1598_v55  ;;  %v2430_v4 = vadd.f32 %v2391_v50, %v2350_v10  ;;  %v2681_v25 = vrot.slane %v2504_v44, 1  ;;  %v2682_v34 = vrot.slane %v2505_v29, 1 }
 0x202   : > { %v2267_v24 = vsel %vm1311_vm2, %v2265_v6, %v2266_v38  ;;  %v2836_v45 = vmul.f32 %v3961_v19, %v6778_v1  ;;  %v2837_v21 = vmul.f32 %v3961_v19, %v827_v32  ;;  %v2392_v3 = vmul.f32 %v6737_v43, %v6779_v49 }
 0x203   : > { %v2351_v56 = vadd.f32 %v2267_v24, %v1987_v30  ;;  %v2683_v31 = vsel %vm982_vm1, %v2681_v25, %v2682_v34  ;;  %v2506_v46 = vmul.f32 %v3959_v15, %v6779_v49  ;;  %v2838_v10 = vmul.f32 %v3961_v19, %v6779_v49  ;;  %v1500_v24 = vpop.permute.xlu0 %1499 }
 0x204   : > { %v2762_v7 = vadd.f32 %v2683_v31, %v2430_v4  ;;  %v3013_v55 = vrot.slane %v2836_v45, 2  ;;  %v3014_v27 = vrot.slane %v2837_v21, 2  ;;  %v5792_v17 = vmul.f32 %v3953_v8, %v832_v37 }
 0x205   : > { %v5795_v1 = vadd.f32 %v1416_v48, %v1161_v53  ;;  %v2431_v9 = vadd.f32 %v2392_v3, %v2351_v56  ;;  %v5798_v62 = vmul.f32 %v3957_v14, %v832_v37  ;;  %v2684_v44 = vrot.slane %v2506_v46, 1 }
 0x206   : > { %6780 = vst [vmem:[#allocation20_spill] sm:$0xff] %v5792_v17  ;;  %v3015_v50 = vsel %vm1311_vm2, %v3013_v55, %v3014_v27  ;;  %v5802_v29 = vmul.f32 %v3969_v47, %v832_v37  ;;  %v5805_v36 = vmul.f32 %v3980_v18, %v832_v37  ;;  %v3016_v38 = vrot.slane %v2838_v10, 2 }
 0x207   : > { %6781 = vst [vmem:[#allocation24_spill] sm:$0xff] %v5795_v1  ;;  %6782 = vst [vmem:[#allocation28_spill] sm:$0xff] %v5798_v62  ;;  %v3094_v6 = vadd.f32 %v3015_v50, %v2762_v7  ;;  %v2507_v53 = vmul.f32 %v3959_v15, %v832_v37  ;;  %v2839_v48 = vmul.f32 %v3961_v19, %v832_v37  ;;  %v1510_v4 = vpop.permute.xlu0 %1509 }
 0x208   : > { %6783 = vst [vmem:[#allocation22_spill] sm:$0xff] %v5802_v29  ;;  %6784 = vst [vmem:[#allocation23_spill] sm:$0xff] %v5805_v36  ;;  %v5813_v34 = vmul.f32 %v3969_v47, %v1495_v41  ;;  %v5816_v56 = vmul.f32 %v3980_v18, %v1495_v41  ;;  %v5820_v37 = vmul.f32 %v3967_v35, %v1495_v41 }
 0x209   : > { %v3134_v45 = vpack.c.bf16 %v3094_v6, %v3094_v6  ;;  %v2685_v21 = vrot.slane %v2507_v53, 1  ;;  %v3017_v3 = vrot.slane %v2839_v48, 2  ;;  %v5823_v46 = vmul.f32 %v3959_v15, %v1495_v41  ;;  %v1505_v6 = vpop.permute.xlu1 %1504 }
 0x20a   : > { %v5826_v10 = vmul.f32 %v3961_v19, %v1495_v41  ;;  %v5834_v50 = vmul.f32 %v6737_v43, %v1495_v41  ;;  %v5838_v31 = vmul.f32 %v3967_v35, %v1500_v24  ;;  %v5841_v25 = vmul.f32 %v3969_v47, %v1500_v24 }
 0x20b   : > { %3175 = vst.msk [vmem:[%s4845_s4 + $0x90] sm:$0xf] %vm3138_vm3, %v3134_v45  ;;  %v2686_v7 = vsel %vm982_vm1, %v2684_v44, %v2685_v21  ;;  %v3018_v55 = vsel %vm1311_vm2, %v3016_v38, %v3017_v3  ;;  %v5845_v44 = vmul.f32 %v3980_v18, %v1500_v24  ;;  %v5848_v38 = vmul.f32 %v3959_v15, %v1500_v24  ;;  %v1604_v49 = vpop.permute.xlu0 %1603 }
 0x20c   : > { %v2763_v53 = vadd.f32 %v2686_v7, %v2431_v9  ;;  %v5851_v41 = vmul.f32 %v3961_v19, %v1500_v24  ;;  %v5855_v3 = vmul.f32 %v6737_v43, %v1500_v24  ;;  %v5858_v7 = vmul.f32 %v3969_v47, %v1505_v6 }
 0x20d   : > { %v5863_v5 = vmul.f32 %v3967_v35, %v1505_v6  ;;  %v5866_v45 = vmul.f32 %v3980_v18, %v1505_v6  ;;  %v5871_v21 = vmul.f32 %v3959_v15, %v1505_v6  ;;  %v5875_v30 = vmul.f32 %v6737_v43, %v1505_v6  ;;  %v1515_v57 = vpop.permute.xlu1 %1514 }
 0x20e   : > { %v3095_v9 = vadd.f32 %v3018_v55, %v2763_v53  ;;  %v5878_v32 = vmul.f32 %v3961_v19, %v1505_v6  ;;  %v5881_v27 = vmul.f32 %v3969_v47, %v1510_v4  ;;  %v5887_v24 = vmul.f32 %v3967_v35, %v1510_v4 }
 0x20f   : > { %v5890_v53 = vmul.f32 %v3980_v18, %v1510_v4  ;;  %v5893_v48 = vmul.f32 %v3959_v15, %v1510_v4  ;;  %v5898_v29 = vmul.f32 %v6737_v43, %v1510_v4  ;;  %v5905_v62 = vmul.f32 %v3967_v35, %v1515_v57 }
 0x210   : > { %v3135_v55 = vpack.c.bf16 %v3095_v9, %v3095_v9  ;;  %6785 = vst [vmem:[#allocation21_spill] sm:$0xff] %v5881_v27  ;;  %6786 = vst [vmem:[#allocation25_spill] sm:$0xff] %v5887_v24  ;;  %v5908_v1 = vmul.f32 %v3969_v47, %v1515_v57  ;;  %v5911_v17 = vmul.f32 %v3980_v18, %v1515_v57  ;;  %v6803_v63 = vrot.slane %v5823_v46, 1 }
 0x211   : > { %6787 = vst [vmem:[#allocation26_spill] sm:$0xff] %v5890_v53  ;;  %6788 = vst [vmem:[#allocation27_spill] sm:$0xff] %v5893_v48  ;;  %v5920_v9 = vmul.f32 %v3959_v15, %v1515_v57  ;;  %v589_v24 = vmul.f32 %v6742_v13, %v6797_v28  ;;  %v1181_v6 = vmul.f32 %v3957_v14, %v6797_v28 }
 0x212   : > { %3176 = vst.msk [vmem:[%s4845_s4 + $0x94] sm:$0xf] %vm3138_vm3, %v3135_v55  ;;  %6789 = vst [vmem:[#allocation29_spill] sm:$0xff] %v5898_v29  ;;  %v5901_v55 = vmul.f32 %v3961_v19, %v1510_v4  ;;  %v5917_v4 = vmul.f32 %v6737_v43, %v1515_v57  ;;  %v1527_v43 = vmul.f32 %v3967_v35, %v6797_v28 }
 0x213   : > { %6791 = vst [vmem:[#allocation31_spill] sm:$0xff] %v5905_v62  ;;  %6792 = vst [vmem:[#allocation37_spill] sm:$0xff] %v5908_v1  ;;  %v5923_v62 = vmul.f32 %v3961_v19, %v1515_v57  ;;  %v1333_v57 = vrot.slane %v1181_v6, 2  ;;  %v2451_v36 = vmul.f32 %v3959_v15, %v1604_v49  ;;  %v2783_v29 = vmul.f32 %v3961_v19, %v1604_v49 }
 0x214   : > { %6790 = vst [vmem:[#allocation34_spill] sm:$0xff] %v5901_v55  ;;  %6793 = vst [vmem:[#allocation30_spill] sm:$0xff] %v5911_v17  ;;  %v2009_v55 = vmul.f32 %v3980_v18, %v1604_v49  ;;  %v1567_v48 = vadd.f32 %v1527_v43, %v4933_v39  ;;  %v6798_v17 = vrot.slane %v4939_v40, 2  ;;  %v1609_v43 = vpop.permute.xlu1 %1608 }
 0x215   : > { %6794 = vst [vmem:[#allocation32_spill] sm:$0xff] %v5917_v4  ;;  %6795 = vst [vmem:[#allocation35_spill] sm:$0xff] %v5920_v9  ;;  %v2006_v4 = vmul.f32 %v3980_v18, %v6797_v28  ;;  %v1134_v9 = vadd.f32 %v4967_v33, %v589_v24  ;;  %v596_v33 = vmul.f32 %v6742_v13, %v6799_v16 }
 0x216   : > { %6796 = vst [vmem:[#allocation36_spill] sm:$0xff] %v5923_v62  ;;  %v1645_v62 = vmul.f32 %v3969_v47, %v1604_v49  ;;  %v1335_v1 = vsel %vm1311_vm2, %v1333_v57, %v6798_v17  ;;  %v2176_v28 = vrot.slane %v2009_v55, 2  ;;  %v1956_v6 = vadd.f32 %v5156_v51, %v1567_v48 }
 0x217   : > { %v2172_v53 = vrot.slane %v2006_v4, 2  ;;  %v1463_v24 = vadd.f32 %v1335_v1, %v1134_v9  ;;  %v2601_v4 = vrot.slane %v2451_v36, 1  ;;  %v6801_v49 = vrot.slane %v5813_v34, 1 }
 0x218   : > { %v1812_v27 = vrot.slane %v1645_v62, 1  ;;  %v6802_v17 = vrot.slane %v5816_v56, 2  ;;  %v2933_v55 = vrot.slane %v2783_v29, 2  ;;  %v1141_v57 = vadd.f32 %v5171_v54, %v596_v33 }
 0x219   : > { %v2174_v39 = vsel %vm1311_vm2, %v2172_v53, %v6800_v61  ;;  %v1568_v1 = vadd.f32 %v5820_v37, %v1463_v24  ;;  %v2602_v61 = vsel %vm982_vm1, %v6803_v63, %v2601_v4  ;;  %v1195_v36 = vmul.f32 %v3957_v14, %v6799_v16 }
 0x21a   : > { %v1813_v40 = vsel %vm982_vm1, %v6801_v49, %v1812_v27  ;;  %v2177_v62 = vsel %vm1311_vm2, %v6802_v17, %v2176_v28  ;;  %v2320_v51 = vadd.f32 %v2174_v39, %v1956_v6  ;;  %v6804_v34 = vrot.slane %v5826_v10, 2 }
 0x21b   : > { %v1535_v56 = vmul.f32 %v3967_v35, %v6799_v16  ;;  %v1661_v29 = vmul.f32 %v3969_v47, %v1609_v43  ;;  %v2022_v54 = vmul.f32 %v3980_v18, %v6799_v16  ;;  %v1957_v46 = vadd.f32 %v1813_v40, %v1568_v1  ;;  %v6808_v1 = vld [vmem:[#allocation7_spill] sm:$0xff] }
 0x21c   : > { %v2934_v27 = vsel %vm1311_vm2, %v6804_v34, %v2933_v55  ;;  %v2400_v37 = vadd.f32 %v5834_v50, %v2320_v51  ;;  %v1354_v48 = vrot.slane %v1195_v36, 2  ;;  %v2025_v53 = vmul.f32 %v3980_v18, %v1609_v43 }
 0x21d   : > { %v1575_v9 = vadd.f32 %v1535_v56, %v5133_v52  ;;  %v1836_v28 = vrot.slane %v1661_v29, 1  ;;  %v2196_v10 = vrot.slane %v2022_v54, 2  ;;  %v2467_v33 = vmul.f32 %v3959_v15, %v1609_v43  ;;  %v1614_v54 = vpop.permute.xlu0 %1613 }
 0x21e   : > { %v2321_v24 = vadd.f32 %v2177_v62, %v1957_v46  ;;  %v2732_v6 = vadd.f32 %v2602_v61, %v2400_v37  ;;  %v6805_v39 = vrot.slane %v5145_v59, 2  ;;  %v2200_v49 = vrot.slane %v2025_v53, 2 }
 0x21f   : > { %v6806_v50 = vrot.slane %v5841_v25, 1  ;;  %v1964_v17 = vadd.f32 %v5278_v22, %v1575_v9  ;;  %v6807_v52 = vrot.slane %v5162_v0, 2  ;;  %v6809_v63 = vrot.slane %v5845_v44, 2  ;;  %v6810_v0 = vld [vmem:[#allocation8_spill] sm:$0xff] }
 0x220   : > { %v1356_v4 = vsel %vm1311_vm2, %v1354_v48, %v6805_v39  ;;  %v2401_v51 = vadd.f32 %v6808_v1, %v2321_v24  ;;  %v3064_v62 = vadd.f32 %v2934_v27, %v2732_v6  ;;  %v2625_v61 = vrot.slane %v2467_v33, 1  ;;  %v6812_v48 = vld [vmem:[#allocation9_spill] sm:$0xff] }
 0x221   : > { %v1470_v16 = vadd.f32 %v1356_v4, %v1141_v57  ;;  %v1837_v40 = vsel %vm982_vm1, %v6806_v50, %v1836_v28  ;;  %v2198_v55 = vsel %vm1311_vm2, %v2196_v10, %v6807_v52  ;;  %v2201_v59 = vsel %vm1311_vm2, %v6809_v63, %v2200_v49 }
 0x222   : > { %v2328_v25 = vadd.f32 %v2198_v55, %v1964_v17  ;;  %v2799_v36 = vmul.f32 %v3961_v19, %v1609_v43  ;;  %v603_v22 = vmul.f32 %v6742_v13, %v6743_v26  ;;  %v2733_v34 = vadd.f32 %v6810_v0, %v2401_v51 }
 0x223   : > { %v1576_v57 = vadd.f32 %v5838_v31, %v1470_v16  ;;  %v3104_v56 = vpack.c.bf16 %v3064_v62, %v3064_v62  ;;  %v6811_v29 = vrot.slane %v5848_v38, 1  ;;  %v1209_v44 = vmul.f32 %v3957_v14, %v6743_v26 }
 0x224   : > { %v2408_v31 = vadd.f32 %v5855_v3, %v2328_v25  ;;  %v2957_v46 = vrot.slane %v2799_v36, 2  ;;  %v1148_v43 = vadd.f32 %v5387_v42, %v603_v22  ;;  %v3065_v53 = vadd.f32 %v6812_v48, %v2733_v34 }
 0x225   : > { %v2626_v27 = vsel %vm982_vm1, %v6811_v29, %v2625_v61  ;;  %v1965_v37 = vadd.f32 %v1837_v40, %v1576_v57  ;;  %3145 = vst.msk [vmem:[%s4845_s4 + $0x18] sm:$0xf] %vm3138_vm3, %v3104_v56  ;;  %v1375_v9 = vrot.slane %v1209_v44, 2  ;;  %v1543_v38 = vmul.f32 %v3967_v35, %v6743_v26 }
 0x226   : > { %v2038_v28 = vmul.f32 %v3980_v18, %v6743_v26  ;;  %v2740_v33 = vadd.f32 %v2626_v27, %v2408_v31  ;;  %v6813_v24 = vrot.slane %v5851_v41, 2  ;;  %v1677_v42 = vmul.f32 %v3969_v47, %v1614_v54 }
 0x227   : > { %v2329_v10 = vadd.f32 %v2201_v59, %v1965_v37  ;;  %v3105_v6 = vpack.c.bf16 %v3065_v53, %v3065_v53  ;;  %v6814_v39 = vrot.slane %v5372_v58, 2  ;;  %v1583_v49 = vadd.f32 %v1543_v38, %v5359_v20  ;;  %v1619_v37 = vpop.permute.xlu1 %1618 }
 0x228   : > { %v2958_v3 = vsel %vm1311_vm2, %v6813_v24, %v2957_v46  ;;  %v2220_v16 = vrot.slane %v2038_v28, 2  ;;  %v1860_v17 = vrot.slane %v1677_v42, 1  ;;  %v6815_v52 = vrot.slane %v5380_v11, 2 }
 0x229   : > { %v1377_v4 = vsel %vm1311_vm2, %v1375_v9, %v6814_v39  ;;  %v2409_v50 = vadd.f32 %v6808_v1, %v2329_v10  ;;  %v3072_v40 = vadd.f32 %v2958_v3, %v2740_v33  ;;  %3146 = vst.msk [vmem:[%s4845_s4 + $0x1c] sm:$0xf] %vm3138_vm3, %v3105_v6  ;;  %v1972_v41 = vadd.f32 %v5538_v2, %v1583_v49  ;;  %v6821_v49 = vld [vmem:[#allocation14_spill] sm:$0xff] }
 0x22a   : > { %v1477_v26 = vadd.f32 %v1377_v4, %v1148_v43  ;;  %v2222_v55 = vsel %vm1311_vm2, %v2220_v16, %v6815_v52  ;;  %v2041_v58 = vmul.f32 %v3980_v18, %v1614_v54  ;;  %v2481_v51 = vmul.f32 %v3959_v15, %v1614_v54 }
 0x22b   : > { %v2741_v20 = vadd.f32 %v6810_v0, %v2409_v50  ;;  %v3112_v62 = vpack.c.bf16 %v3072_v40, %v3072_v40  ;;  %v6816_v59 = vrot.slane %v5858_v7, 1  ;;  %v2336_v57 = vadd.f32 %v2222_v55, %v1972_v41  ;;  %v6823_v41 = vld [vmem:[#allocation18_spill] sm:$0xff] }
 0x22c   : > { %v1584_v63 = vadd.f32 %v5863_v5, %v1477_v26  ;;  %v2224_v25 = vrot.slane %v2041_v58, 2  ;;  %v2646_v2 = vrot.slane %v2481_v51, 1  ;;  %v2813_v11 = vmul.f32 %v3961_v19, %v1614_v54  ;;  %v6825_v51 = vld [vmem:[#allocation21_spill] sm:$0xff] }
 0x22d   : > { %v1861_v61 = vsel %vm982_vm1, %v6816_v59, %v1860_v17  ;;  %v3073_v36 = vadd.f32 %v6812_v48, %v2741_v20  ;;  %3153 = vst.msk [vmem:[%s4845_s4 + $0x38] sm:$0xf] %vm3138_vm3, %v3112_v62  ;;  %v610_v34 = vmul.f32 %v6742_v13, %v6761_v12  ;;  %v894_v5 = vmul.f32 %v3953_v8, %v6761_v12 }
 0x22e   : > { %v1973_v22 = vadd.f32 %v1861_v61, %v1584_v63  ;;  %v2416_v7 = vadd.f32 %v5875_v30, %v2336_v57  ;;  %v6817_v56 = vrot.slane %v5866_v45, 2  ;;  %v6818_v27 = vrot.slane %v5871_v21, 1 }
 0x22f   : > { %v2978_v54 = vrot.slane %v2813_v11, 2  ;;  %v3113_v31 = vpack.c.bf16 %v3073_v36, %v3073_v36  ;;  %v1067_v43 = vrot.slane %v894_v5, 1  ;;  %v1223_v53 = vmul.f32 %v3957_v14, %v6761_v12  ;;  %v6828_v36 = vld [vmem:[#allocation19_spill] sm:$0xff]  ;;  %v6830_v5 = vld [vmem:[#allocation142_spill] sm:$0xff] }
 0x230   : > { %v2225_v29 = vsel %vm1311_vm2, %v6817_v56, %v2224_v25  ;;  %v2647_v44 = vsel %vm982_vm1, %v6818_v27, %v2646_v2  ;;  %v6819_v38 = vrot.slane %v5878_v32, 2  ;;  %v1551_v45 = vmul.f32 %v3967_v35, %v6761_v12  ;;  %v6831_v27 = vld [vmem:[#allocation26_spill] sm:$0xff] }
 0x231   : > { %v2337_v46 = vadd.f32 %v2225_v29, %v1973_v22  ;;  %v2748_v9 = vadd.f32 %v2647_v44, %v2416_v7  ;;  %v1690_v21 = vmul.f32 %v3969_v47, %v6761_v12  ;;  %3154 = vst.msk [vmem:[%s4845_s4 + $0x3c] sm:$0xf] %vm3138_vm3, %v3113_v31  ;;  %v6820_v10 = vrot.slane %v5573_v23, 1 }
 0x232   : > { %v2979_v30 = vsel %vm1311_vm2, %v6819_v38, %v2978_v54  ;;  %v1396_v24 = vrot.slane %v1223_v53, 2  ;;  %v1693_v3 = vmul.f32 %v3969_v47, %v1619_v37  ;;  %v1591_v6 = vadd.f32 %v1551_v45, %v5584_v60  ;;  %v6833_v38 = vld [vmem:[#allocation29_spill] sm:$0xff] }
 0x233   : > { %v2417_v28 = vadd.f32 %v6808_v1, %v2337_v46  ;;  %v1069_v33 = vsel %vm982_vm1, %v1067_v43, %v6820_v10  ;;  %v3080_v32 = vadd.f32 %v2979_v30, %v2748_v9  ;;  %v1880_v39 = vrot.slane %v1690_v21, 1  ;;  %v6834_v30 = vld [vmem:[#allocation27_spill] sm:$0xff]  ;;  %v1624_v10 = vpop.permute.xlu0 %1623 }
 0x234   : > { %v1155_v42 = vadd.f32 %v1069_v33, %v610_v34  ;;  %v6822_v16 = vrot.slane %v6821_v49, 2  ;;  %v1884_v40 = vrot.slane %v1693_v3, 1  ;;  %v2054_v23 = vmul.f32 %v3980_v18, %v6761_v12  ;;  %v6827_v12 = vld [vmem:[#allocation25_spill] sm:$0xff]  ;;  %v6836_v33 = vld [vmem:[#allocation34_spill] sm:$0xff] }
 0x235   : > { %v2749_v4 = vadd.f32 %v6810_v0, %v2417_v28  ;;  %v3120_v26 = vpack.c.bf16 %v3080_v32, %v3080_v32  ;;  %v6824_v52 = vrot.slane %v6823_v41, 1  ;;  %v2057_v58 = vmul.f32 %v3980_v18, %v1619_v37  ;;  %v6838_v32 = vld [vmem:[#allocation20_spill] sm:$0xff] }
 0x236   : > { %v1398_v50 = vsel %vm1311_vm2, %v1396_v24, %v6822_v16  ;;  %v6826_v20 = vrot.slane %v6825_v51, 1  ;;  %v2244_v59 = vrot.slane %v2054_v23, 2  ;;  %v2495_v25 = vmul.f32 %v3959_v15, %v1619_v37  ;;  %v6843_v51 = vld [vmem:[#allocation22_spill] sm:$0xff] }
 0x237   : > { %v1484_v17 = vadd.f32 %v1398_v50, %v1155_v42  ;;  %v1882_v55 = vsel %vm982_vm1, %v1880_v39, %v6824_v52  ;;  %v3081_v60 = vadd.f32 %v6812_v48, %v2749_v4  ;;  %3161 = vst.msk [vmem:[%s4845_s4 + $0x58] sm:$0xf] %vm3138_vm3, %v3120_v26  ;;  %v2248_v57 = vrot.slane %v2057_v58, 2 }
 0x238   : > { %v1885_v62 = vsel %vm982_vm1, %v6826_v20, %v1884_v40  ;;  %v1980_v63 = vadd.f32 %v1882_v55, %v1591_v6  ;;  %v2827_v2 = vmul.f32 %v3961_v19, %v1619_v37  ;;  %v6829_v22 = vrot.slane %v6828_v36, 2  ;;  %v6840_v6 = vld [vmem:[#allocation24_spill] sm:$0xff] }
 0x239   : > { %v1592_v61 = vadd.f32 %v6827_v12, %v1484_v17  ;;  %v3121_v11 = vpack.c.bf16 %v3081_v60, %v3081_v60  ;;  %v617_v7 = vmul.f32 %v6742_v13, %v6830_v5  ;;  %v908_v56 = vmul.f32 %v3953_v8, %v6830_v5  ;;  %v6841_v40 = vld [vmem:[#allocation28_spill] sm:$0xff] }
 0x23a   : > { %v2246_v34 = vsel %vm1311_vm2, %v2244_v59, %v6829_v22  ;;  %v6832_v44 = vrot.slane %v6831_v27, 2  ;;  %v2667_v46 = vrot.slane %v2495_v25, 1  ;;  %v2999_v37 = vrot.slane %v2827_v2, 2  ;;  %v6847_v22 = vld [vmem:[#allocation23_spill] sm:$0xff] }
 0x23b   : > { %v1981_v29 = vadd.f32 %v1885_v62, %v1592_v61  ;;  %v2344_v31 = vadd.f32 %v2246_v34, %v1980_v63  ;;  %3162 = vst.msk [vmem:[%s4845_s4 + $0x5c] sm:$0xf] %vm3138_vm3, %v3121_v11  ;;  %v1088_v43 = vrot.slane %v908_v56, 1  ;;  %v1237_v53 = vmul.f32 %v3957_v14, %v6830_v5  ;;  %v6846_v11 = vld [vmem:[#allocation35_spill] sm:$0xff] }
 0x23c   : > { %v2249_v54 = vsel %vm1311_vm2, %v6832_v44, %v2248_v57  ;;  %v1559_v13 = vmul.f32 %v3967_v35, %v6830_v5  ;;  %v6835_v45 = vrot.slane %v6834_v30, 1  ;;  %v1706_v28 = vmul.f32 %v3969_v47, %v6830_v5 }
 0x23d   : > { %v2345_v9 = vadd.f32 %v2249_v54, %v1981_v29  ;;  %v2424_v8 = vadd.f32 %v6833_v38, %v2344_v31  ;;  %v6837_v24 = vrot.slane %v6836_v33, 2  ;;  %v6839_v14 = vrot.slane %v6838_v32, 1 }
 0x23e   : > { %v2668_v21 = vsel %vm982_vm1, %v6835_v45, %v2667_v46  ;;  %v1417_v35 = vrot.slane %v1237_v53, 2  ;;  %v1599_v39 = vadd.f32 %v1559_v13, %v6840_v6  ;;  %v1904_v50 = vrot.slane %v1706_v28, 1  ;;  %v6851_v46 = vld [vmem:[#allocation30_spill] sm:$0xff]  ;;  %v6853_v13 = vld [vmem:[#allocation32_spill] sm:$0xff] }
 0x23f   : > { %v3000_v3 = vsel %vm1311_vm2, %v6837_v24, %v2999_v37  ;;  %v1090_v42 = vsel %vm982_vm1, %v1088_v43, %v6839_v14  ;;  %v2425_v4 = vadd.f32 %v6808_v1, %v2345_v9  ;;  %v2756_v49 = vadd.f32 %v2668_v21, %v2424_v8  ;;  %v6854_v8 = vld [vmem:[#allocation36_spill] sm:$0xff] }
 0x240   : > { %v1162_v16 = vadd.f32 %v1090_v42, %v617_v7  ;;  %v6842_v23 = vrot.slane %v6841_v40, 2  ;;  %v2070_v17 = vmul.f32 %v3980_v18, %v6830_v5  ;;  %v1709_v41 = vmul.f32 %v3969_v47, %v1624_v10  ;;  %v6845_v47 = vld [vmem:[#allocation31_spill] sm:$0xff]  ;;  %v6849_v7 = vld [vmem:[#allocation37_spill] sm:$0xff] }
 0x241   : > { %v2073_v52 = vmul.f32 %v3980_v18, %v1624_v10  ;;  %v2757_v55 = vadd.f32 %v6810_v0, %v2425_v4  ;;  %v3088_v58 = vadd.f32 %v3000_v3, %v2756_v49  ;;  %v6844_v20 = vrot.slane %v6843_v51, 1 }
 0x242   : > { %v1419_v26 = vsel %vm1311_vm2, %v1417_v35, %v6842_v23  ;;  %v2268_v59 = vrot.slane %v2070_v17, 2  ;;  %v1908_v12 = vrot.slane %v1709_v41, 1  ;;  %v2509_v18 = vmul.f32 %v3959_v15, %v1624_v10 }
 0x243   : > { %v1491_v60 = vadd.f32 %v1419_v26, %v1162_v16  ;;  %v1906_v62 = vsel %vm982_vm1, %v1904_v50, %v6844_v20  ;;  %v2272_v61 = vrot.slane %v2073_v52, 2  ;;  %v3089_v57 = vadd.f32 %v6812_v48, %v2757_v55 }
 0x244   : > { %v1988_v63 = vadd.f32 %v1906_v62, %v1599_v39  ;;  %v3128_v25 = vpack.c.bf16 %v3088_v58, %v3088_v58  ;;  %v2687_v36 = vrot.slane %v6846_v11, 1  ;;  %v6848_v34 = vrot.slane %v6847_v22, 2 }
 0x245   : > { %v1600_v2 = vadd.f32 %v6845_v47, %v1491_v60  ;;  %v6850_v56 = vrot.slane %v6849_v7, 1  ;;  %v2841_v27 = vmul.f32 %v3961_v19, %v1624_v10  ;;  %v3129_v44 = vpack.c.bf16 %v3089_v57, %v3089_v57 }
 0x246   : > { %v2270_v5 = vsel %vm1311_vm2, %v2268_v59, %v6848_v34  ;;  %3169 = vst.msk [vmem:[%s4845_s4 + $0x78] sm:$0xf] %vm3138_vm3, %v3128_v25  ;;  %v2688_v15 = vrot.slane %v2509_v18, 1  ;;  %v6852_v37 = vrot.slane %v6851_v46, 2  ;;  %v3019_v30 = vrot.slane %v6854_v8, 2 }
 0x247   : > { %v1909_v29 = vsel %vm982_vm1, %v6850_v56, %v1908_v12  ;;  %v2352_v54 = vadd.f32 %v2270_v5, %v1988_v63  ;;  %v3020_v53 = vrot.slane %v2841_v27, 2  ;;  %3170 = vst.msk [vmem:[%s4845_s4 + $0x7c] sm:$0xf] %vm3138_vm3, %v3129_v44 }
 0x248   : > { %v1989_v31 = vadd.f32 %v1909_v29, %v1600_v2  ;;  %v2273_v43 = vsel %vm1311_vm2, %v6852_v37, %v2272_v61  ;;  %v2689_v19 = vsel %vm982_vm1, %v2687_v36, %v2688_v15 }
 0x249   : > { %v2432_v9 = vadd.f32 %v6853_v13, %v2352_v54  ;;  %v3021_v28 = vsel %vm1311_vm2, %v3019_v30, %v3020_v53 }
 0x24a   : > { %v2353_v38 = vadd.f32 %v2273_v43, %v1989_v31 }
 0x24b   : > { %v2764_v21 = vadd.f32 %v2689_v19, %v2432_v9 }
 0x24c   : > { %v2433_v45 = vadd.f32 %v6808_v1, %v2353_v38 }
 0x24d   : > { %v3096_v33 = vadd.f32 %v3021_v28, %v2764_v21 }
 0x24e   : > { %v2765_v10 = vadd.f32 %v6810_v0, %v2433_v45 }
 0x24f   : > { %v3136_v3 = vpack.c.bf16 %v3096_v33, %v3096_v33 }
 0x250   : > { %v3097_v24 = vadd.f32 %v6812_v48, %v2765_v10 }
 0x251   : > { %3177 = vst.msk [vmem:[%s4845_s4 + $0x98] sm:$0xf] %vm3138_vm3, %v3136_v3 }
 0x252   : > { %v3137_v32 = vpack.c.bf16 %v3097_v24, %v3097_v24 }
 0x254   : > { %3178 = vst.msk [vmem:[%s4845_s4 + $0x9c] sm:$0xf] %vm3138_vm3, %v3137_v32 }
 0x255   : > { %3334 = shalt.err (!%p3331_p3)
}
 0x256   : > { %s3335_s23 = scalar_lea.hbm %s6152_s14, 2560  ;;  %s3339_s26 = scalar_lea.hbm %s6205_s2, 12800 }
 0x257   : > { %p3336_p4 = scmp.ne.s32.totalorder %s6152_s14, %s3335_s23  ;;  %p3340_p9 = scmp.lt.u32.totalorder %s6152_s14, %s6205_s2 }
 0x258   : > { %p3341_p10 = scmp.lt.u32.totalorder %s3339_s26, %s3335_s23  ;;  %p3343_p12 = scmp.lt.u32.totalorder %s3335_s23, %s6152_s14 }
 0x259   : > { %p3337_p7 = pnand %p3336_p4, %p3443_p5 }
 0x25a   : > { %p3342_p11 = por %p3341_p10, %p3340_p9 }
 0x25b   : > { %p3338_p8 = pneg %p3337_p7 }
 0x25c   : > { %p3344_p13 = por %p3343_p12, %p3342_p11 }
 0x25e   : > { %p3345_p0 = pnand %p3344_p13, %p3338_p8 }
 0x260   : > { %3348 = shalt.err (!%p3345_p0)
}
 0x261   : > { %s3388_s29 = smov 64   ;;  %s3389_s30 = smov 4  }
 0x262   : > { %3271 = dma.vmem_to_hbm [thread:$0]  (%p3443_p5), %s6156_s6, 2560, %s6152_s14, %s6162_s13, %s3388_s29, %s3388_s29, %s3389_s30  }
 0x263 PF: > { %p3277_p1 = scmp.ge.s32.totalorder %s3383_s12, 2  ;;  %s3209_s3 = sand.u32 1, %s3371_s9  }
 0x264   : > { %s3210_s4 = scalar_lea.sflag [#allocation3], %s3209_s3 }
 0x265   : > { %p3274_p2 = pnand %p3277_p1, %p3447_p6 }
 0x267   : > { %3366 = dma.done.wait (!%p3274_p2), %s3210_s4, 2560  }
 0x268   : > { %3368 = vsyncadd (!%p3274_p2), %s3210_s4, 4294964736  ;;  %p12_p3 = scmp.ge.s32.totalorder %s3430_s15, 7   ;;  %s6855_s9 = smov %s3375_s10 }
 0x269   : > { %s6856_s10 = smov %s3379_s11  ;;  %s6857_s11 = smov %s3441_s18 }
 0x26a   : > { %s6858_s12 = smov %s3430_s15  ;;  %14 = sbr.rel (!%p12_p3) target bundleno = 3 (0x3), region = 63 }
 0x271   :  { %3215 = vsyncpa [#allocation3], 1 }
 0x272   :  { %3217 = vsyncpa [#allocation3 + $0x1], 1 }

</bundles_post_ra>
